<compile_context>
chip_gen: v5e
topology: v5e:2x2
jax: 0.10.0
libtpu: 0.0.40
codegen_flags: <defaults>
</compile_context>

<pallas_src>
import functools
import math

import jax
import jax.numpy as jnp
from jax.experimental import pallas as pl
from jax.experimental.pallas import tpu as pltpu


# ------------------------------ Pallas kernel -------------------------------

def _fused_sage_kernel(dp_in, dp_hid, n_classes,
                       a_ref, x_hbm_ref,
                       w1l_ref, w1r_ref, b1_ref,
                       w2l_ref, w2r_ref, b2_ref,
                       wc_ref, bc_ref,
                       o_ref,
                       acc_ref, x_ref, h1_ref):
    """grid = (2, R, K): phase (conv1 / conv2+head), node row tiles, A-column
    reduction tiles.

    a_ref   : (tm, tk)        bf16  row-normalized adjacency tile (mean agg)
    x_hbm   : (Npad, dp_in)   bf16  node features, raw HBM ref (staged once)
    w*_ref  : padded, pre-transposed bf16 weights; b*_ref: (1, dp) f32 biases
    o_ref   : (tm, dp_out)    f32   log-probs (padded class lanes masked)
    acc_ref : (tm, dp_agg)    f32   VMEM aggregation accumulator
    x_ref   : (Npad, dp_in)   bf16  VMEM-resident input features
    h1_ref  : (Npad, dp_hid)  bf16  VMEM-resident layer-1 activations
    """
    phase = pl.program_id(0)
    r = pl.program_id(1)
    k = pl.program_id(2)
    nk = pl.num_programs(2)
    tm = a_ref.shape[0]
    tk = a_ref.shape[1]

    # One-time: stage node features into resident VMEM (single HBM pass).
    @pl.when((phase == 0) & (r == 0) & (k == 0))
    def _():
        pltpu.sync_copy(x_hbm_ref, x_ref)

    @pl.when(k == 0)
    def _():
        acc_ref[...] = jnp.zeros_like(acc_ref)

    k_start = pl.multiple_of(k * tk, tk)
    r_start = pl.multiple_of(r * tm, tm)

    # ---- aggregation: acc += A_norm[r, k] @ src[k] ----
    @pl.when(phase == 0)
    def _():  # source = resident x
        acc_ref[:, :dp_in] += jnp.dot(
            a_ref[...], x_ref[pl.ds(k_start, tk), :],
            preferred_element_type=jnp.float32)

    @pl.when(phase == 1)
    def _():  # source = resident layer-1 activations
        acc_ref[:, :dp_hid] += jnp.dot(
            a_ref[...], h1_ref[pl.ds(k_start, tk), :],
            preferred_element_type=jnp.float32)

    # ---- phase-0 epilogue: h1 = relu(agg @ W1l + x_r @ W1r + b1) ----
    @pl.when((k == nk - 1) & (phase == 0))
    def _():
        agg = acc_ref[:, :dp_in].astype(jnp.bfloat16)
        root = x_ref[pl.ds(r_start, tm), :]
        h = (jnp.dot(agg, w1l_ref[...], preferred_element_type=jnp.float32)
             + jnp.dot(root, w1r_ref[...], preferred_element_type=jnp.float32)
             + b1_ref[...])
        h1_ref[pl.ds(r_start, tm), :] = jnp.maximum(h, 0.0).astype(jnp.bfloat16)

    # ---- phase-1 epilogue: conv2 + Conv1d(k=1) head + log_softmax ----
    @pl.when((k == nk - 1) & (phase == 1))
    def _():
        agg = acc_ref[:, :dp_hid].astype(jnp.bfloat16)
        root = h1_ref[pl.ds(r_start, tm), :]
        h = (jnp.dot(agg, w2l_ref[...], preferred_element_type=jnp.float32)
             + jnp.dot(root, w2r_ref[...], preferred_element_type=jnp.float32)
             + b2_ref[...])
        h2 = jnp.maximum(h, 0.0).astype(jnp.bfloat16)
        logits = (jnp.dot(h2, wc_ref[...], preferred_element_type=jnp.float32)
                  + bc_ref[...])
        # mask padded class lanes so log_softmax spans only the real classes
        col = jax.lax.broadcasted_iota(jnp.int32, logits.shape, 1)
        logits = jnp.where(col < n_classes, logits, -1e30)
        m = jnp.max(logits, axis=1, keepdims=True)
        s = logits - m
        lse = jnp.log(jnp.sum(jnp.exp(s), axis=1, keepdims=True))
        o_ref[...] = s - lse


# -------------------------------- wrapper ------------------------------------

def _pad2(arr, rows, cols, dtype):
    out = jnp.zeros((rows, cols), dtype)
    return out.at[:arr.shape[0], :arr.shape[1]].set(arr.astype(dtype))


def sage_model_forward(x, edge_index, params, *, tm=256, tk=512):
    """Forward of SAGEModel (layer=2, dropout=False) as one fused Pallas call."""
    n, f_in = x.shape
    filt = params["w1l"].shape[0]
    n_classes = params["wc"].shape[0]

    # per-dimension padding to the 128-lane width
    dp_in = 128 * pl.cdiv(f_in, 128)
    dp_hid = 128 * pl.cdiv(filt, 128)
    dp_out = 128 * pl.cdiv(n_classes, 128)
    dp_agg = max(dp_in, dp_hid)

    tile = math.lcm(tm, tk)
    n_pad = tile * pl.cdiv(n, tile)
    r_tiles, k_tiles = n_pad // tm, n_pad // tk

    # dense mean-aggregation matrix, built in a single scatter pass
    # (normalized edge weights scattered directly; no counts + divide pass).
    src, dst = edge_index[0], edge_index[1]
    deg = jnp.zeros((n_pad,), jnp.float32).at[dst].add(1.0)
    inv_deg = 1.0 / jnp.maximum(deg, 1.0)
    a_norm = (jnp.zeros((n_pad, n_pad), jnp.float32)
              .at[dst, src].add(inv_deg[dst])).astype(jnp.bfloat16)

    # features cast once to bf16 (they feed the MXU in bf16 anyway)
    x_pad = _pad2(x, n_pad, dp_in, jnp.bfloat16)

    # pad + transpose weights (PyTorch [out, in] -> [in_pad, out_pad]) to bf16
    w1l = _pad2(params["w1l"].T, dp_in, dp_hid, jnp.bfloat16)
    w1r = _pad2(params["w1r"].T, dp_in, dp_hid, jnp.bfloat16)
    w2l = _pad2(params["w2l"].T, dp_hid, dp_hid, jnp.bfloat16)
    w2r = _pad2(params["w2r"].T, dp_hid, dp_hid, jnp.bfloat16)
    wc = _pad2(params["wc"][:, :, 0].T, dp_hid, dp_out, jnp.bfloat16)
    b1 = _pad2(params["b1"][None, :], 1, dp_hid, jnp.float32)
    b2 = _pad2(params["b2"][None, :], 1, dp_hid, jnp.float32)
    bc = _pad2(params["bc"][None, :], 1, dp_out, jnp.float32)

    a_spec = pl.BlockSpec((tm, tk), lambda p, r, k: (r, k))
    x_spec = pl.BlockSpec(memory_space=pl.ANY)          # raw HBM ref, staged once
    w1_spec = pl.BlockSpec((dp_in, dp_hid), lambda p, r, k: (0, 0))
    w2_spec = pl.BlockSpec((dp_hid, dp_hid), lambda p, r, k: (0, 0))
    wc_spec = pl.BlockSpec((dp_hid, dp_out), lambda p, r, k: (0, 0))
    bh_spec = pl.BlockSpec((1, dp_hid), lambda p, r, k: (0, 0))
    bo_spec = pl.BlockSpec((1, dp_out), lambda p, r, k: (0, 0))
    # output block index pinned during phase 0 -> no throwaway zero writebacks
    o_spec = pl.BlockSpec((tm, dp_out), lambda p, r, k: (r * p, 0))

    # size scoped VMEM from the actual working set, capped per generation
    vmem_bytes = int(
        2 * tm * tk * 2                                              # A tiles (dbl buf)
        + 2 * 2 * (2 * dp_in * dp_hid + 2 * dp_hid * dp_hid
                   + dp_hid * dp_out)                                # weights (dbl buf)
        + 2 * 4 * (2 * dp_hid + dp_out)                              # biases (dbl buf)
        + 2 * tm * dp_out * 4                                        # output block
        + tm * dp_agg * 4                                            # acc scratch
        + n_pad * dp_in * 2 + n_pad * dp_hid * 2                     # resident x, h1
    )
    try:
        vmem_cap = int(pltpu.get_tpu_info().vmem_capacity_bytes)
    except Exception:
        vmem_cap = 64 << 20
    vmem_limit = min(max(2 * vmem_bytes, 32 << 20), int(0.75 * vmem_cap))

    out = pl.pallas_call(
        functools.partial(_fused_sage_kernel, dp_in, dp_hid, n_classes),
        out_shape=jax.ShapeDtypeStruct((n_pad, dp_out), jnp.float32),
        grid_spec=pltpu.PrefetchScalarGridSpec(
            num_scalar_prefetch=0,
            grid=(2, r_tiles, k_tiles),
            in_specs=[a_spec, x_spec,
                      w1_spec, w1_spec, bh_spec,
                      w2_spec, w2_spec, bh_spec,
                      wc_spec, bo_spec],
            out_specs=o_spec,
            scratch_shapes=[pltpu.VMEM((tm, dp_agg), jnp.float32),
                            pltpu.VMEM((n_pad, dp_in), jnp.bfloat16),
                            pltpu.VMEM((n_pad, dp_hid), jnp.bfloat16)],
        ),
        compiler_params=pltpu.CompilerParams(
            dimension_semantics=("arbitrary", "arbitrary", "arbitrary"),
            vmem_limit_bytes=vmem_limit),
    )(a_norm, x_pad, w1l, w1r, b1, w2l, w2r, b2, wc, bc)

    return out[:n, :n_classes]


# --------------------------- reference & init --------------------------------

def sage_reference(x, edge_index, params):
    """Pure-JAX reference mirroring the kernel's bf16-input / f32-acc numerics."""
    n = x.shape[0]
    a = jnp.zeros((n, n), jnp.float32).at[edge_index[1], edge_index[0]].add(1.0)
    deg = jnp.sum(a, axis=1, keepdims=True)
    a_norm = (a / jnp.maximum(deg, 1.0)).astype(jnp.bfloat16)

    def bdot(lhs, rhs):
        return jnp.dot(lhs.astype(jnp.bfloat16), rhs.astype(jnp.bfloat16),
                       preferred_element_type=jnp.float32)

    agg1 = bdot(a_norm, x)
    h1 = jax.nn.relu(bdot(agg1, params["w1l"].T) + bdot(x, params["w1r"].T)
                     + params["b1"][None, :]).astype(jnp.bfloat16)
    agg2 = bdot(a_norm, h1)
    h2 = jax.nn.relu(bdot(agg2, params["w2l"].T) + bdot(h1, params["w2r"].T)
                     + params["b2"][None, :]).astype(jnp.bfloat16)
    logits = bdot(h2, params["wc"][:, :, 0].T) + params["bc"][None, :]
    return jax.nn.log_softmax(logits, axis=1)


def init_params(key, input_dim, filter_num, out_dim):
    ks = jax.random.split(key, 8)

    def unif(k, shape, fan_in):
        bound = 1.0 / jnp.sqrt(jnp.float32(fan_in))
        return jax.random.uniform(k, shape, jnp.float32, -bound, bound)

    return {
        # conv1 = SAGEConv(input_dim, filter_num): lin_l (neighbors, bias),
        # lin_r (root, no bias)
        "w1l": unif(ks[0], (filter_num, input_dim), input_dim),
        "b1":  unif(ks[1], (filter_num,), input_dim),
        "w1r": unif(ks[2], (filter_num, input_dim), input_dim),
        # conv2 = SAGEConv(filter_num, filter_num)
        "w2l": unif(ks[3], (filter_num, filter_num), filter_num),
        "b2":  unif(ks[4], (filter_num,), filter_num),
        "w2r": unif(ks[5], (filter_num, filter_num), filter_num),
        # Conv1d(filter_num, out_dim, kernel_size=1): weight [C, F, 1]
        "wc":  unif(ks[6], (out_dim, filter_num, 1), filter_num),
        "bc":  unif(ks[7], (out_dim,), filter_num),
    }


# ---------------------------------- main --------------------------------------

if __name__ == "__main__":
    key = jax.random.PRNGKey(0)
    N, INPUT_DIM, FILTER_NUM, OUT_DIM, NUM_EDGES = 200, 8, 32, 4, 400

    kx, ke1, ke2, kp = jax.random.split(key, 4)
    x = jax.random.normal(kx, (N, INPUT_DIM), jnp.float32)
    src = jax.random.randint(ke1, (NUM_EDGES,), 0, N, dtype=jnp.int32)
    dst = jax.random.randint(ke2, (NUM_EDGES,), 0, N, dtype=jnp.int32)
    edge_index = jnp.stack([src, dst], axis=0)

    params = init_params(kp, INPUT_DIM, FILTER_NUM, OUT_DIM)

    out = sage_model_forward(x, edge_index, params, tm=256, tk=512)
    out = jax.block_until_ready(out)

    assert out.shape == (N, OUT_DIM)
    # rows of log_softmax should exp-sum to ~1
    assert jnp.allclose(jnp.sum(jnp.exp(out), axis=1), 1.0, atol=1e-4)
    # match a pure-JAX reference with the same bf16/f32 numerics
    ref = sage_reference(x, edge_index, params)
    assert jnp.allclose(out, ref, atol=1e-2, rtol=1e-2), \
        float(jnp.max(jnp.abs(out - ref)))
    print("KERNEL_OK")
</pallas_src>

<mosaic_0001>
module attributes {stable_mosaic.version = 11 : i64} {
  func.func @_fused_sage_kernel(%arg0: i32, %arg1: i32, %arg2: i32, %arg3: memref<256x512xbf16, #tpu.memory_space<vmem>>, %arg4: memref<512x128xbf16, #tpu.memory_space<any>>, %arg5: memref<128x128xbf16, #tpu.memory_space<vmem>>, %arg6: memref<128x128xbf16, #tpu.memory_space<vmem>>, %arg7: memref<1x128xf32, #tpu.memory_space<vmem>>, %arg8: memref<128x128xbf16, #tpu.memory_space<vmem>>, %arg9: memref<128x128xbf16, #tpu.memory_space<vmem>>, %arg10: memref<1x128xf32, #tpu.memory_space<vmem>>, %arg11: memref<128x128xbf16, #tpu.memory_space<vmem>>, %arg12: memref<1x128xf32, #tpu.memory_space<vmem>>, %arg13: memref<256x128xf32, #tpu.memory_space<vmem>>, %arg14: memref<256x128xf32, #tpu.memory_space<vmem>>, %arg15: memref<512x128xbf16, #tpu.memory_space<vmem>>, %arg16: memref<512x128xbf16, #tpu.memory_space<vmem>>) attributes {dimension_semantics = [#tpu.dimension_semantics<arbitrary>, #tpu.dimension_semantics<arbitrary>, #tpu.dimension_semantics<arbitrary>], iteration_bounds = array<i64: 2, 2, 1>, scalar_prefetch = 0 : i64, scratch_operands = 3 : i64, tpu.core_type = #tpu.core_type<tc>, window_params = [{transform_indices = @transform_0, window_bounds = array<i64: 256, 512>}, {}, {pipeline_mode = #tpu.pipeline_mode<synchronous>, transform_indices = @transform_2, window_bounds = array<i64: 128, 128>}, {pipeline_mode = #tpu.pipeline_mode<synchronous>, transform_indices = @transform_3, window_bounds = array<i64: 128, 128>}, {pipeline_mode = #tpu.pipeline_mode<synchronous>, transform_indices = @transform_4, window_bounds = array<i64: 1, 128>}, {pipeline_mode = #tpu.pipeline_mode<synchronous>, transform_indices = @transform_5, window_bounds = array<i64: 128, 128>}, {pipeline_mode = #tpu.pipeline_mode<synchronous>, transform_indices = @transform_6, window_bounds = array<i64: 128, 128>}, {pipeline_mode = #tpu.pipeline_mode<synchronous>, transform_indices = @transform_7, window_bounds = array<i64: 1, 128>}, {pipeline_mode = #tpu.pipeline_mode<synchronous>, transform_indices = @transform_8, window_bounds = array<i64: 128, 128>}, {pipeline_mode = #tpu.pipeline_mode<synchronous>, transform_indices = @transform_9, window_bounds = array<i64: 1, 128>}, {transform_indices = @transform_10, window_bounds = array<i64: 256, 128>}]} {
    %c0_i32 = arith.constant 0 : i32
    %0 = arith.cmpi eq, %arg0, %c0_i32 : i32
    %c0_i32_0 = arith.constant 0 : i32
    %1 = arith.cmpi eq, %arg1, %c0_i32_0 : i32
    %2 = arith.andi %0, %1 : i1
    %c0_i32_1 = arith.constant 0 : i32
    %3 = arith.cmpi eq, %arg2, %c0_i32_1 : i32
    %4 = arith.andi %2, %3 : i1
    %5 = arith.extui %4 : i1 to i32
    %c0_i32_2 = arith.constant 0 : i32
    %6 = arith.cmpi ne, %5, %c0_i32_2 : i32
    scf.if %6 {
      "tpu.region"() ({
        %30 = tpu.sem_alloc : memref<!tpu.dma_semaphore, #tpu.memory_space<semaphore_mem>>
        tpu.enqueue_dma source(%arg4 : memref<512x128xbf16, #tpu.memory_space<any>>) target(%arg15 : memref<512x128xbf16, #tpu.memory_space<vmem>>) target_semaphore(%30 : memref<!tpu.dma_semaphore, #tpu.memory_space<semaphore_mem>>)
        tpu.wait_dma2 semaphore(%30 : memref<!tpu.dma_semaphore, #tpu.memory_space<semaphore_mem>>) src(%arg4 : memref<512x128xbf16, #tpu.memory_space<any>>) dst(%arg15 : memref<512x128xbf16, #tpu.memory_space<vmem>>)
        tpu.yield
      }) : () -> ()
    } else {
    }
    %c0_i32_3 = arith.constant 0 : i32
    %7 = arith.cmpi eq, %arg2, %c0_i32_3 : i32
    %8 = arith.extui %7 : i1 to i32
    %c0_i32_4 = arith.constant 0 : i32
    %9 = arith.cmpi ne, %8, %c0_i32_4 : i32
    scf.if %9 {
      %cst = arith.constant 0.000000e+00 : f32
      %30 = vector.broadcast %cst : f32 to vector<256x128xf32>
      %c0 = arith.constant 0 : index
      %c0_14 = arith.constant 0 : index
      %31 = vector.load %arg14[%c0, %c0_14] : memref<256x128xf32, #tpu.memory_space<vmem>>, vector<256x128xf32>
      tpu.vector_store %arg14[%c0, %c0_14], %30 {strides = array<i32>} : memref<256x128xf32, #tpu.memory_space<vmem>>, vector<256x128xf32>,
    } else {
    }
    %c512_i32 = arith.constant 512 : i32
    %10 = arith.muli %arg2, %c512_i32 : i32
    %11 = tpu.assume_multiple %10, 512 : i32
    %c256_i32 = arith.constant 256 : i32
    %12 = arith.muli %arg1, %c256_i32 : i32
    %13 = tpu.assume_multiple %12, 256 : i32
    %c0_i32_5 = arith.constant 0 : i32
    %14 = arith.cmpi eq, %arg0, %c0_i32_5 : i32
    %15 = arith.extui %14 : i1 to i32
    %c0_i32_6 = arith.constant 0 : i32
    %16 = arith.cmpi ne, %15, %c0_i32_6 : i32
    scf.if %16 {
      %c0 = arith.constant 0 : index
      %c0_14 = arith.constant 0 : index
      %30 = vector.load %arg14[%c0, %c0_14] : memref<256x128xf32, #tpu.memory_space<vmem>>, vector<256x128xf32>
      %c0_15 = arith.constant 0 : index
      %c0_16 = arith.constant 0 : index
      %31 = vector.load %arg3[%c0_15, %c0_16] : memref<256x512xbf16, #tpu.memory_space<vmem>>, vector<256x512xbf16>
      %32 = arith.index_cast %11 : i32 to index
      %c0_17 = arith.constant 0 : index
      %33 = vector.load %arg15[%32, %c0_17] : memref<512x128xbf16, #tpu.memory_space<vmem>>, vector<512x128xbf16>
      %cst = arith.constant dense<0.000000e+00> : vector<256x128xf32>
      %34 = tpu.matmul %31, %33, %cst {dimension_numbers = #tpu.dot_dimension_numbers<[1], [0], [0], [1], [0, 0, 1, 1], [], []>} : vector<256x512xbf16>, vector<512x128xbf16>, vector<256x128xf32> -> vector<256x128xf32>
      %35 = arith.addf %30, %34 : vector<256x128xf32>
      %c0_18 = arith.constant 0 : index
      %c0_19 = arith.constant 0 : index
      %36 = vector.load %arg14[%c0_18, %c0_19] : memref<256x128xf32, #tpu.memory_space<vmem>>, vector<256x128xf32>
      tpu.vector_store %arg14[%c0_18, %c0_19], %35 {strides = array<i32>} : memref<256x128xf32, #tpu.memory_space<vmem>>, vector<256x128xf32>,
    } else {
    }
    %c1_i32 = arith.constant 1 : i32
    %17 = arith.cmpi eq, %arg0, %c1_i32 : i32
    %18 = arith.extui %17 : i1 to i32
    %c0_i32_7 = arith.constant 0 : i32
    %19 = arith.cmpi ne, %18, %c0_i32_7 : i32
    scf.if %19 {
      %c0 = arith.constant 0 : index
      %c0_14 = arith.constant 0 : index
      %30 = vector.load %arg14[%c0, %c0_14] : memref<256x128xf32, #tpu.memory_space<vmem>>, vector<256x128xf32>
      %c0_15 = arith.constant 0 : index
      %c0_16 = arith.constant 0 : index
      %31 = vector.load %arg3[%c0_15, %c0_16] : memref<256x512xbf16, #tpu.memory_space<vmem>>, vector<256x512xbf16>
      %32 = arith.index_cast %11 : i32 to index
      %c0_17 = arith.constant 0 : index
      %33 = vector.load %arg16[%32, %c0_17] : memref<512x128xbf16, #tpu.memory_space<vmem>>, vector<512x128xbf16>
      %cst = arith.constant dense<0.000000e+00> : vector<256x128xf32>
      %34 = tpu.matmul %31, %33, %cst {dimension_numbers = #tpu.dot_dimension_numbers<[1], [0], [0], [1], [0, 0, 1, 1], [], []>} : vector<256x512xbf16>, vector<512x128xbf16>, vector<256x128xf32> -> vector<256x128xf32>
      %35 = arith.addf %30, %34 : vector<256x128xf32>
      %c0_18 = arith.constant 0 : index
      %c0_19 = arith.constant 0 : index
      %36 = vector.load %arg14[%c0_18, %c0_19] : memref<256x128xf32, #tpu.memory_space<vmem>>, vector<256x128xf32>
      tpu.vector_store %arg14[%c0_18, %c0_19], %35 {strides = array<i32>} : memref<256x128xf32, #tpu.memory_space<vmem>>, vector<256x128xf32>,
    } else {
    }
    %c0_i32_8 = arith.constant 0 : i32
    %20 = arith.cmpi eq, %arg2, %c0_i32_8 : i32
    %c0_i32_9 = arith.constant 0 : i32
    %21 = arith.cmpi eq, %arg0, %c0_i32_9 : i32
    %22 = arith.andi %20, %21 : i1
    %23 = arith.extui %22 : i1 to i32
    %c0_i32_10 = arith.constant 0 : i32
    %24 = arith.cmpi ne, %23, %c0_i32_10 : i32
    scf.if %24 {
      %c0 = arith.constant 0 : index
      %c0_14 = arith.constant 0 : index
      %30 = vector.load %arg14[%c0, %c0_14] : memref<256x128xf32, #tpu.memory_space<vmem>>, vector<256x128xf32>
      %31 = arith.truncf %30 : vector<256x128xf32> to vector<256x128xbf16>
      %32 = arith.index_cast %13 : i32 to index
      %c0_15 = arith.constant 0 : index
      %33 = vector.load %arg15[%32, %c0_15] : memref<512x128xbf16, #tpu.memory_space<vmem>>, vector<256x128xbf16>
      %c0_16 = arith.constant 0 : index
      %c0_17 = arith.constant 0 : index
      %34 = vector.load %arg5[%c0_16, %c0_17] : memref<128x128xbf16, #tpu.memory_space<vmem>>, vector<128x128xbf16>
      %cst = arith.constant dense<0.000000e+00> : vector<256x128xf32>
      %35 = tpu.matmul %31, %34, %cst {dimension_numbers = #tpu.dot_dimension_numbers<[1], [0], [0], [1], [0, 0, 1, 1], [], []>} : vector<256x128xbf16>, vector<128x128xbf16>, vector<256x128xf32> -> vector<256x128xf32>
      %c0_18 = arith.constant 0 : index
      %c0_19 = arith.constant 0 : index
      %36 = vector.load %arg6[%c0_18, %c0_19] : memref<128x128xbf16, #tpu.memory_space<vmem>>, vector<128x128xbf16>
      %cst_20 = arith.constant dense<0.000000e+00> : vector<256x128xf32>
      %37 = tpu.matmul %33, %36, %cst_20 {dimension_numbers = #tpu.dot_dimension_numbers<[1], [0], [0], [1], [0, 0, 1, 1], [], []>} : vector<256x128xbf16>, vector<128x128xbf16>, vector<256x128xf32> -> vector<256x128xf32>
      %38 = arith.addf %35, %37 : vector<256x128xf32>
      %c0_21 = arith.constant 0 : index
      %c0_22 = arith.constant 0 : index
      %39 = vector.load %arg7[%c0_21, %c0_22] : memref<1x128xf32, #tpu.memory_space<vmem>>, vector<1x128xf32>
      %40 = vector.broadcast %39 : vector<1x128xf32> to vector<256x128xf32>
      %41 = arith.addf %38, %40 : vector<256x128xf32>
      %cst_23 = arith.constant 0.000000e+00 : f32
      %42 = vector.broadcast %cst_23 : f32 to vector<256x128xf32>
      %43 = arith.maximumf %41, %42 : vector<256x128xf32>
      %44 = arith.truncf %43 : vector<256x128xf32> to vector<256x128xbf16>
      %45 = arith.index_cast %13 : i32 to index
      %c0_24 = arith.constant 0 : index
      %46 = vector.load %arg16[%45, %c0_24] : memref<512x128xbf16, #tpu.memory_space<vmem>>, vector<256x128xbf16>
      tpu.vector_store %arg16[%45, %c0_24], %44 {strides = array<i32>} : memref<512x128xbf16, #tpu.memory_space<vmem>>, vector<256x128xbf16>,
    } else {
    }
    %c0_i32_11 = arith.constant 0 : i32
    %25 = arith.cmpi eq, %arg2, %c0_i32_11 : i32
    %c1_i32_12 = arith.constant 1 : i32
    %26 = arith.cmpi eq, %arg0, %c1_i32_12 : i32
    %27 = arith.andi %25, %26 : i1
    %28 = arith.extui %27 : i1 to i32
    %c0_i32_13 = arith.constant 0 : i32
    %29 = arith.cmpi ne, %28, %c0_i32_13 : i32
    scf.if %29 {
      %c0 = arith.constant 0 : index
      %c0_14 = arith.constant 0 : index
      %30 = vector.load %arg14[%c0, %c0_14] : memref<256x128xf32, #tpu.memory_space<vmem>>, vector<256x128xf32>
      %31 = arith.truncf %30 : vector<256x128xf32> to vector<256x128xbf16>
      %32 = arith.index_cast %13 : i32 to index
      %c0_15 = arith.constant 0 : index
      %33 = vector.load %arg16[%32, %c0_15] : memref<512x128xbf16, #tpu.memory_space<vmem>>, vector<256x128xbf16>
      %c0_16 = arith.constant 0 : index
      %c0_17 = arith.constant 0 : index
      %34 = vector.load %arg8[%c0_16, %c0_17] : memref<128x128xbf16, #tpu.memory_space<vmem>>, vector<128x128xbf16>
      %cst = arith.constant dense<0.000000e+00> : vector<256x128xf32>
      %35 = tpu.matmul %31, %34, %cst {dimension_numbers = #tpu.dot_dimension_numbers<[1], [0], [0], [1], [0, 0, 1, 1], [], []>} : vector<256x128xbf16>, vector<128x128xbf16>, vector<256x128xf32> -> vector<256x128xf32>
      %c0_18 = arith.constant 0 : index
      %c0_19 = arith.constant 0 : index
      %36 = vector.load %arg9[%c0_18, %c0_19] : memref<128x128xbf16, #tpu.memory_space<vmem>>, vector<128x128xbf16>
      %cst_20 = arith.constant dense<0.000000e+00> : vector<256x128xf32>
      %37 = tpu.matmul %33, %36, %cst_20 {dimension_numbers = #tpu.dot_dimension_numbers<[1], [0], [0], [1], [0, 0, 1, 1], [], []>} : vector<256x128xbf16>, vector<128x128xbf16>, vector<256x128xf32> -> vector<256x128xf32>
      %38 = arith.addf %35, %37 : vector<256x128xf32>
      %c0_21 = arith.constant 0 : index
      %c0_22 = arith.constant 0 : index
      %39 = vector.load %arg10[%c0_21, %c0_22] : memref<1x128xf32, #tpu.memory_space<vmem>>, vector<1x128xf32>
      %40 = vector.broadcast %39 : vector<1x128xf32> to vector<256x128xf32>
      %41 = arith.addf %38, %40 : vector<256x128xf32>
      %cst_23 = arith.constant 0.000000e+00 : f32
      %42 = vector.broadcast %cst_23 : f32 to vector<256x128xf32>
      %43 = arith.maximumf %41, %42 : vector<256x128xf32>
      %44 = arith.truncf %43 : vector<256x128xf32> to vector<256x128xbf16>
      %c0_24 = arith.constant 0 : index
      %c0_25 = arith.constant 0 : index
      %45 = vector.load %arg11[%c0_24, %c0_25] : memref<128x128xbf16, #tpu.memory_space<vmem>>, vector<128x128xbf16>
      %cst_26 = arith.constant dense<0.000000e+00> : vector<256x128xf32>
      %46 = tpu.matmul %44, %45, %cst_26 {dimension_numbers = #tpu.dot_dimension_numbers<[1], [0], [0], [1], [0, 0, 1, 1], [], []>} : vector<256x128xbf16>, vector<128x128xbf16>, vector<256x128xf32> -> vector<256x128xf32>
      %c0_27 = arith.constant 0 : index
      %c0_28 = arith.constant 0 : index
      %47 = vector.load %arg12[%c0_27, %c0_28] : memref<1x128xf32, #tpu.memory_space<vmem>>, vector<1x128xf32>
      %48 = vector.broadcast %47 : vector<1x128xf32> to vector<256x128xf32>
      %49 = arith.addf %46, %48 : vector<256x128xf32>
      %50 = tpu.iota {dimensions = array<i32: 1>} : vector<256x128xi32>
      %c4_i32 = arith.constant 4 : i32
      %51 = vector.broadcast %c4_i32 : i32 to vector<256x128xi32>
      %52 = arith.cmpi slt, %50, %51 : vector<256x128xi32>
      %cst_29 = arith.constant -1.000000e+30 : f32
      %53 = vector.broadcast %cst_29 : f32 to vector<256x128xf32>
      %54 = arith.select %52, %49, %53 : vector<256x128xi1>, vector<256x128xf32>
      %cst_30 = arith.constant dense<0xFF800000> : vector<256xf32>
      %55 = vector.multi_reduction <maximumf>, %54, %cst_30 [1] : vector<256x128xf32> to vector<256xf32>
      %56 = vector.shape_cast %55 : vector<256xf32> to vector<256x1xf32>
      %57 = vector.broadcast %56 : vector<256x1xf32> to vector<256x128xf32>
      %58 = arith.subf %54, %57 : vector<256x128xf32>
      %59 = math.exp %58 : vector<256x128xf32>
      %cst_31 = arith.constant dense<0.000000e+00> : vector<256xf32>
      %60 = vector.multi_reduction <add>, %59, %cst_31 [1] : vector<256x128xf32> to vector<256xf32>
      %61 = vector.shape_cast %60 : vector<256xf32> to vector<256x1xf32>
      %62 = math.log %61 : vector<256x1xf32>
      %63 = vector.broadcast %62 : vector<256x1xf32> to vector<256x128xf32>
      %64 = arith.subf %58, %63 : vector<256x128xf32>
      %c0_32 = arith.constant 0 : index
      %c0_33 = arith.constant 0 : index
      %65 = vector.load %arg13[%c0_32, %c0_33] : memref<256x128xf32, #tpu.memory_space<vmem>>, vector<256x128xf32>
      tpu.vector_store %arg13[%c0_32, %c0_33], %64 {strides = array<i32>} : memref<256x128xf32, #tpu.memory_space<vmem>>, vector<256x128xf32>,
    } else {
    }
    return
  }
  func.func @transform_0(%arg0: i32, %arg1: i32, %arg2: i32) -> (i32, i32) {
    %c0_i32 = arith.constant 0 : i32
    return %arg1, %arg2 : i32, i32
  }
  func.func @transform_2(%arg0: i32, %arg1: i32, %arg2: i32) -> (i32, i32) {
    %c0_i32 = arith.constant 0 : i32
    %c0_i32_0 = arith.constant 0 : i32
    %c0_i32_1 = arith.constant 0 : i32
    return %c0_i32, %c0_i32_0 : i32, i32
  }
  func.func @transform_3(%arg0: i32, %arg1: i32, %arg2: i32) -> (i32, i32) {
    %c0_i32 = arith.constant 0 : i32
    %c0_i32_0 = arith.constant 0 : i32
    %c0_i32_1 = arith.constant 0 : i32
    return %c0_i32, %c0_i32_0 : i32, i32
  }
  func.func @transform_4(%arg0: i32, %arg1: i32, %arg2: i32) -> (i32, i32) {
    %c0_i32 = arith.constant 0 : i32
    %c0_i32_0 = arith.constant 0 : i32
    %c0_i32_1 = arith.constant 0 : i32
    return %c0_i32, %c0_i32_0 : i32, i32
  }
  func.func @transform_5(%arg0: i32, %arg1: i32, %arg2: i32) -> (i32, i32) {
    %c0_i32 = arith.constant 0 : i32
    %c0_i32_0 = arith.constant 0 : i32
    %c0_i32_1 = arith.constant 0 : i32
    return %c0_i32, %c0_i32_0 : i32, i32
  }
  func.func @transform_6(%arg0: i32, %arg1: i32, %arg2: i32) -> (i32, i32) {
    %c0_i32 = arith.constant 0 : i32
    %c0_i32_0 = arith.constant 0 : i32
    %c0_i32_1 = arith.constant 0 : i32
    return %c0_i32, %c0_i32_0 : i32, i32
  }
  func.func @transform_7(%arg0: i32, %arg1: i32, %arg2: i32) -> (i32, i32) {
    %c0_i32 = arith.constant 0 : i32
    %c0_i32_0 = arith.constant 0 : i32
    %c0_i32_1 = arith.constant 0 : i32
    return %c0_i32, %c0_i32_0 : i32, i32
  }
  func.func @transform_8(%arg0: i32, %arg1: i32, %arg2: i32) -> (i32, i32) {
    %c0_i32 = arith.constant 0 : i32
    %c0_i32_0 = arith.constant 0 : i32
    %c0_i32_1 = arith.constant 0 : i32
    return %c0_i32, %c0_i32_0 : i32, i32
  }
  func.func @transform_9(%arg0: i32, %arg1: i32, %arg2: i32) -> (i32, i32) {
    %c0_i32 = arith.constant 0 : i32
    %c0_i32_0 = arith.constant 0 : i32
    %c0_i32_1 = arith.constant 0 : i32
    return %c0_i32, %c0_i32_0 : i32, i32
  }
  func.func @transform_10(%arg0: i32, %arg1: i32, %arg2: i32) -> (i32, i32) {
    %0 = arith.muli %arg1, %arg0 : i32
    %c0_i32 = arith.constant 0 : i32
    %c0_i32_0 = arith.constant 0 : i32
    return %0, %c0_i32 : i32, i32
  }
}

</mosaic_0001>

<bundles_post_ra>
// kernel: tpu_custom_call.1
= control target key start
LH: loop header
LB: loop body
LE: loop exit
PB: predicated region body
PF: predicated region fallthrough
CT: control target
= control target key end

     0   :  { %s7907_s0 = inlined_call_operand.hbm [shape: bf16[512,512], index: 0, kind: input, shape index: {}]   ;;  %s7908_s1 = inlined_call_operand.hbm [shape: bf16[512,128], index: 1, kind: input, shape index: {}]   ;;  %s7909_s2 = inlined_call_operand.hbm [shape: bf16[128,128], index: 2, kind: input, shape index: {}]   ;;  %s7910_s3 = inlined_call_operand.hbm [shape: bf16[128,128], index: 3, kind: input, shape index: {}]   ;;  %s7911_s4 = inlined_call_operand.vmem [shape: f32[1,128], index: 4, kind: input, shape index: {}]   ;;  %s7912_s5 = inlined_call_operand.hbm [shape: bf16[128,128], index: 5, kind: input, shape index: {}]   ;;  %s7913_s6 = inlined_call_operand.hbm [shape: bf16[128,128], index: 6, kind: input, shape index: {}]   ;;  %s7914_s7 = inlined_call_operand.vmem [shape: f32[1,128], index: 7, kind: input, shape index: {}]   ;;  %s7915_s8 = inlined_call_operand.hbm [shape: bf16[128,128], index: 8, kind: input, shape index: {}]   ;;  %s7916_s9 = inlined_call_operand.vmem [shape: f32[1,128], index: 9, kind: input, shape index: {}]   ;;  %s7917_s10 = inlined_call_operand.hbm [shape: f32[512,128], index: 10, kind: output, shape index: {}]  }
   0x1   :  { %7924 = sst [smem:[#allocation32_spill]] %s7908_s1 }
   0x2   :  { %7925 = sst [smem:[#allocation33_spill]] %s7909_s2 }
   0x3   :  { %7926 = sst [smem:[#allocation34_spill]] %s7910_s3 }
   0x4   :  { %7927 = sst [smem:[#allocation35_spill]] %s7911_s4 }
   0x5   :  { %7928 = sst [smem:[#allocation36_spill]] %s7912_s5 }
   0x6   :  { %7929 = sst [smem:[#allocation37_spill]] %s7913_s6 }
   0x7   :  { %7930 = sst [smem:[#allocation38_spill]] %s7914_s7 }
   0x8   :  { %7931 = sst [smem:[#allocation39_spill]] %s7915_s8 }
   0x9   :  { %7932 = sst [smem:[#allocation40_spill]] %s7916_s9 }
   0xa   :  { %7933 = sst [smem:[#allocation41_spill]] %s7917_s10 }
   0xb   :  { %15 = vsyncpa [#allocation6], 0 }
   0xc   :  { %17 = vsyncpa [#allocation6 + $0x1], 0 }
   0xd   :  { %18 = vsyncpa [#allocation9], 0 }
   0xe   :  { %19 = vsyncpa [#allocation12], 0 }
   0xf   :  { %20 = vsyncpa [#allocation15], 0 }
  0x10   :  { %21 = vsyncpa [#allocation7], 0 }
  0x11   :  { %23 = vsyncpa [#allocation7 + $0x1], 0  ;;  %s6833_s13 = smov 0   ;;  %s6835_s14 = smov 0  }
  0x12   :  { %s6837_s15 = smov 0   ;;  %s6839_s16 = smov 0  }
  0x13   :  { %s6841_s17 = smov 0   ;;  %s6843_s18 = smov 0  }
  0x14   :  { %s6845_s19 = smov 0   ;;  %s6847_s20 = smov 0  }
  0x15   :  { %s6849_s21 = smov 0   ;;  %s6851_s22 = smov 0  }
  0x16   :  { %s6853_s23 = smov 0  }
  0x17 LB: > { %7934 = sst [smem:[#allocation28_spill]] %s6723_s13  ;;  %s4636_s24 = sadd.s32 4294967295, %s6763_s23   ;;  %s6763_s23 = sphi %s6853_s23, %s29_s23   ;;  %s6759_s22 = sphi %s6851_s22, %s7968_s22   ;;  %s6755_s21 = sphi %s6849_s21, %s7967_s21   ;;  %s6751_s20 = sphi %s6847_s20, %s7966_s20   ;;  %s6747_s19 = sphi %s6845_s19, %s7965_s19   ;;  %s6743_s18 = sphi %s6843_s18, %s7964_s18   ;;  %s6739_s17 = sphi %s6841_s17, %s7963_s17   ;;  %s6735_s16 = sphi %s6839_s16, %s7962_s16   ;;  %s6731_s15 = sphi %s6837_s15, %s7961_s15   ;;  %s6727_s14 = sphi %s6835_s14, %s7960_s14   ;;  %s6723_s13 = sphi %s6833_s13, %s7959_s13  }
  0x18   : > { %s4637_s25 = sadd.s32 4294967294, %s6763_s23   ;;  %p6890_p0 = scmp.eq.s32.totalorder %s4636_s24, 0 }
  0x19   : > { %p263_p1 = scmp.ne.s32.totalorder %s6731_s15, %s6727_s14  ;;  %p264_p2 = scmp.eq.s32.totalorder %s4636_s24, 3 }
  0x1a   : > { %p269_p3 = scmp.ne.s32.totalorder %s6727_s14, %s6723_s13  ;;  %p270_p4 = scmp.eq.s32.totalorder %s4637_s25, 3 }
  0x1b   : > { %p4638_p5 = scmp.ge.s32.totalorder %s6763_s23, 1  ;;  %p6899_p6 = por %p264_p2, %p263_p1 }
  0x1c   : > { %p277_p7 = scmp.lt.s32.totalorder %s6763_s23, 5  ;;  %p6904_p8 = por %p270_p4, %p269_p3 }
  0x1d   : > { %s7936_s27 = scalar_select %p6899_p6, 1, 0 }
  0x1e   : > { %s7938_s28 = scalar_select %p6904_p8, 1, 0 }
  0x1f   : > { %7937 = sst [smem:[#allocation29_spill]] %s7936_s27  ;;  %p6908_p9 = pnand %p4638_p5, %p277_p7 }
  0x20   : > { %7939 = sst [smem:[#allocation30_spill]] %s7938_s28  ;;  %s6765_s24 = smov [#allocation8]  }
  0x21   : > { %s7941_s2 = sld [smem:[#allocation33_spill]]  ;;  %p6155_p10 = pneg %p6908_p9 }
  0x22   : > { %s290_s25 = sshll.u32 %s6765_s24, 4  ;;  %s7943_s5 = sld [smem:[#allocation36_spill]]  ;;  %s291_s25 = int_to_ptr.vmem [resolvable:$true] %s290_s25 }
  0x23   : > { %p6919_p11 = pnand %p6155_p10, %p6890_p0  ;;  %s6766_s30 = smov 64  }
  0x24   : > { %s6767_s11 = smov 4   ;;  %s7944_s3 = sld [smem:[#allocation34_spill]] }
  0x25   : > { %s6768_s7 = smov [#allocation11]   ;;  %s6769_s10 = smov [#allocation10]  }
  0x26   : > { %s321_s4 = sshll.u32 %s6768_s7, 4  ;;  %s304_s28 = sshll.u32 %s6769_s10, 4  ;;  %s322_s4 = int_to_ptr.vmem [resolvable:$true] %s321_s4  ;;  %s305_s28 = int_to_ptr.vmem [resolvable:$true] %s304_s28 }
  0x27   : > { %s288_s12 = sshll.u32 %s7941_s2, 4  ;;  %s7945_s6 = sld [smem:[#allocation37_spill]]  ;;  %s289_s12 = int_to_ptr.hbm [resolvable:$true] %s288_s12 }
  0x28   : > { %s319_s27 = sshll.u32 %s7943_s5, 4  ;;  %s7946_s8 = sld [smem:[#allocation39_spill]]  ;;  %s320_s27 = int_to_ptr.hbm [resolvable:$true] %s319_s27 }
  0x29   : > { %6158 = dma.hbm_to_vmem [thread:$0]  (!%p6919_p11), %s289_s12, 1024, %s291_s25, [#allocation9], %s6766_s30, %s6766_s30, %s6767_s11  }
  0x2a   : > { %s302_s9 = sshll.u32 %s7944_s3, 4  ;;  %s6771_s1 = smov [#allocation14]   ;;  %s303_s9 = int_to_ptr.hbm [resolvable:$true] %s302_s9 }
  0x2b   : > { %6164 = dma.hbm_to_vmem [thread:$0]  (!%p6919_p11), %s320_s27, 1024, %s322_s4, [#allocation12], %s6766_s30, %s6766_s30, %s6767_s11  }
  0x2c   : > { %6161 = dma.hbm_to_vmem [thread:$0]  (!%p6919_p11), %s303_s9, 1024, %s305_s28, [#allocation9], %s6766_s30, %s6766_s30, %s6767_s11  }
  0x2d   : > { %s333_s12 = sshll.u32 %s7945_s6, 4  ;;  %s6770_s27 = smov [#allocation13]   ;;  %s334_s12 = int_to_ptr.hbm [resolvable:$true] %s333_s12 }
  0x2e   : > { %s350_s4 = sshll.u32 %s7946_s8, 4  ;;  %s335_s25 = sshll.u32 %s6770_s27, 4  ;;  %s351_s4 = int_to_ptr.hbm [resolvable:$true] %s350_s4  ;;  %s336_s25 = int_to_ptr.vmem [resolvable:$true] %s335_s25 }
  0x2f   : > { %6167 = dma.hbm_to_vmem [thread:$0]  (!%p6919_p11), %s334_s12, 1024, %s336_s25, [#allocation12], %s6766_s30, %s6766_s30, %s6767_s11  }
  0x30   : > { %s352_s5 = sshll.u32 %s6771_s1, 4  ;;  %s44_s9 = sadd.s32 1, %s6755_s21  ;;  %s353_s5 = int_to_ptr.vmem [resolvable:$true] %s352_s5 }
  0x31   : > { %6170 = dma.hbm_to_vmem [thread:$0]  (!%p6919_p11), %s351_s4, 1024, %s353_s5, [#allocation15], %s6766_s30, %s6766_s30, %s6767_s11  }
  0x32   : > { %s48_s24 = sadd.s32 1, %s6759_s22  ;;  %p46_p12 = scmp.ge.s32.totalorder %s44_s9, 2 }
  0x33   : > { %s57_s10 = sadd.s32 1, %s6743_s18  ;;  %p64_p13 = scmp.ne.s32.totalorder %s6743_s18, %s6739_s17 }
  0x34   : > { %p65_p1 = scmp.eq.s32.totalorder %s6763_s23, 0  ;;  %s7970_s9 = smov (%p46_p12, %s44_s9), 0 }
  0x35   : > { %s7972_s24 = smov (!%p46_p12, %s48_s24), %s6759_s22  ;;  %s52_s28 = ssub.s32 %s6755_s21, %s7970_s9 }
  0x36   : > { %p6956_p2 = por %p65_p1, %p64_p13  ;;  %p50_p3 = scmp.ge.s32.totalorder %s7972_s24, 2 }
  0x37   : > { %p55_p4 = scmp.eq.s32.totalorder %s52_s28, 0  ;;  %p70_p5 = scmp.ne.s32.totalorder %s6739_s17, %s6735_s16 }
  0x38   : > { %s248_s30 = smul.u32 %s6755_s21, %s6759_s22  ;;  %s7974_s24 = smov (%p50_p3, %s7972_s24), 0 }
  0x39   : > { %7948 = sst [smem:[#allocation31_spill]] %s7974_s24  ;;  %p6971_p7 = por %p6890_p0, %p70_p5 }
  0x3a   : > { %s6967_s11 = scalar_select %p55_p4, %s6743_s18, %s57_s10  }
  0x3b   : > { %s249_s2 = smul.u32 %s7974_s24, %s7970_s9  ;;  %s253_s7 = sadd.s32 1, %s6731_s15 }
  0x3c   : > { %p6184_p10 = scmp.lt.s32.totalorder %s6763_s23, 4  ;;  %s369_s27 = sand.u32 1, %s6743_s18  }
  0x3d   : > { %s250_s4 = ssub.s32 %s248_s30, %s249_s2  ;;  %s4645_s16 = sshll.u32 %s369_s27, 9 }
  0x3e   : > { %p251_p11 = scmp.eq.s32.totalorder %s250_s4, 0  ;;  %s5728_s25 = sshll.u32 %s6755_s21, 9 }
  0x3f   : > { %s381_s28 = scalar_lea.hbm %s7907_s0, %s5728_s25  ;;  %s373_s6 = scalar_lea.vmem [#allocation5], %s4645_s16 }
  0x40   : > { %s6982_s1 = scalar_select %p251_p11, %s6731_s15, %s253_s7  }
  0x41   : > { %s382_s3 = sshll.u32 %s381_s28, 4  ;;  %s384_s8 = sshll.u32 %s373_s6, 4  ;;  %s383_s3 = int_to_ptr.hbm [resolvable:$true] %s382_s3  ;;  %s385_s8 = int_to_ptr.vmem [resolvable:$true] %s384_s8 }
  0x42   : > { %p6172_p12 = pnand %p6184_p10, %p6956_p2  ;;  %s370_s24 = scalar_lea.sflag [#allocation6], %s369_s27 }
  0x43   : > { %s6772_s30 = smov 256   ;;  %s6773_s2 = smov 16  }
  0x44   : > { %6174 = dma.hbm_to_vmem [thread:$0]  (!%p6172_p12), %s383_s3, 8192, %s385_s8, %s370_s24, %s6772_s30, %s6772_s30, %s6773_s2  }
  0x45   : > { %396 = sbr.rel (%p6908_p9) target bundleno = 2056 (0x808), region = 56  ;;  %s398_s7 = sand.u32 (!%p6908_p9), 1, %s6739_s17  }
  0x46   : > { %s4650_s4 = sshll.u32 (!%p6908_p9), %s398_s7, 9  ;;  %s399_s25 = scalar_lea.sflag (!%p6908_p9), [#allocation6], %s398_s7 }
  0x47   : > { %s6994_s5 = scalar_lea.vmem (!%p6908_p9), [#allocation5], %s4650_s4 }
  0x4a   : > { %6700 = dma.done.wait (%p6971_p7), %s399_s25, 8192  }
  0x4b   : > { %6702 = vsyncadd (%p6971_p7), %s399_s25, 4294959104 }
  0x4c   : > { %6704 = dma.done.wait (%p6890_p0), [#allocation9], 2048  }
  0x4d   : > { %6706 = vsyncadd (%p6890_p0), [#allocation9], 4294965248 }
  0x4e   : > { %6708 = dma.done.wait (%p6890_p0), [#allocation12], 2048  }
  0x4f   : > { %6710 = vsyncadd (%p6890_p0), [#allocation12], 4294965248 }
  0x50   : > { %6712 = dma.done.wait (%p6890_p0), [#allocation15], 1024  }
  0x51   : > { %6714 = vsyncadd (%p6890_p0), [#allocation15], 4294966272  ;;  %s460_s3 = sand.u32 1, %s6727_s14   ;;  %p467_p9 = scmp.eq.s32.totalorder %s6751_s20, 0 }
  0x52   : > { %s4656_s6 = sshll.u32 %s460_s3, 8  ;;  %p468_p13 = scmp.eq.s32.totalorder %s6747_s19, 0 }
  0x53   : > { %s7019_s8 = scalar_lea.vmem [#allocation16], %s4656_s6 }
  0x54   : > { %p469_p1 = pnand %p468_p13, %p467_p9 }
  0x56   : > { %475 = sbr.rel (%p469_p1) target bundleno = 101 (0x65), region = 84 }
  0x5b   : > { %s7950_s13 = sld [smem:[#allocation32_spill]]  ;;  %s6774_s12 = smov [#allocation3]  }
  0x5c   : > { %s485_s27 = sshll.u32 %s6774_s12, 4  ;;  %s486_s27 = int_to_ptr.vmem [resolvable:$true] %s485_s27 }
  0x61   : > { %s483_s26 = sshll.u32 %s7950_s13, 4  ;;  %s484_s26 = int_to_ptr.hbm [resolvable:$true] %s483_s26 }
  0x62   : > { %488 = dma.hbm_to_vmem [thread:$0]  %s484_s26, 4096, %s486_s27, [#allocation17] }
  0x63   : > { %6715 = dma.done.wait [#allocation17], 4096 }
  0x64   : > { %6716 = vsyncadd [#allocation17], 4294963200 }
  0x65 PF: > { %s4658_s16 = sshll.u32 %s6747_s19, 8  ;;  %v6775_v0 = vmov 0.0   ;;  %p4659_p0 = scmp.ne.s32.totalorder %s6751_s20, 0 }
  0x66   : > { %496 = vst [vmem:[#allocation2 + $0xb0] sm:$0xff] %v6775_v0 }
  0x67   : > { %497 = vst [vmem:[#allocation2] sm:$0xff] %v6775_v0 }
  0x68   : > { %498 = vst [vmem:[#allocation2 + $0xd8] sm:$0xff] %v6775_v0 }
  0x69   : > { %499 = vst [vmem:[#allocation2 + $0x18] sm:$0xff] %v6775_v0 }
  0x6a   : > { %500 = vst [vmem:[#allocation2 + $0x50] sm:$0xff] %v6775_v0 }
  0x6b   : > { %501 = vst [vmem:[#allocation2 + $0x68] sm:$0xff] %v6775_v0 }
  0x6c   : > { %502 = vst [vmem:[#allocation2 + $0x30] sm:$0xff] %v6775_v0 }
  0x6d   : > { %503 = vst [vmem:[#allocation2 + $0x48] sm:$0xff] %v6775_v0 }
  0x6e   : > { %504 = vst [vmem:[#allocation2 + $0x80] sm:$0xff] %v6775_v0 }
  0x6f   : > { %505 = vst [vmem:[#allocation2 + $0x88] sm:$0xff] %v6775_v0 }
  0x70   : > { %506 = vst [vmem:[#allocation2 + $0xe8] sm:$0xff] %v6775_v0 }
  0x71   : > { %507 = vst [vmem:[#allocation2 + $0xb8] sm:$0xff] %v6775_v0 }
  0x72   : > { %508 = vst [vmem:[#allocation2 + $0x60] sm:$0xff] %v6775_v0 }
  0x73   : > { %509 = vst [vmem:[#allocation2 + $0xf0] sm:$0xff] %v6775_v0 }
  0x74   : > { %510 = vst [vmem:[#allocation2 + $0x8] sm:$0xff] %v6775_v0 }
  0x75   : > { %511 = vst [vmem:[#allocation2 + $0x78] sm:$0xff] %v6775_v0 }
  0x76   : > { %512 = vst [vmem:[#allocation2 + $0x38] sm:$0xff] %v6775_v0 }
  0x77   : > { %513 = vst [vmem:[#allocation2 + $0x58] sm:$0xff] %v6775_v0 }
  0x78   : > { %514 = vst [vmem:[#allocation2 + $0x40] sm:$0xff] %v6775_v0 }
  0x79   : > { %515 = vst [vmem:[#allocation2 + $0xc8] sm:$0xff] %v6775_v0 }
  0x7a   : > { %516 = vst [vmem:[#allocation2 + $0xe0] sm:$0xff] %v6775_v0 }
  0x7b   : > { %517 = vst [vmem:[#allocation2 + $0x90] sm:$0xff] %v6775_v0 }
  0x7c   : > { %518 = vst [vmem:[#allocation2 + $0x70] sm:$0xff] %v6775_v0 }
  0x7d   : > { %519 = vst [vmem:[#allocation2 + $0xc0] sm:$0xff] %v6775_v0 }
  0x7e   : > { %520 = vst [vmem:[#allocation2 + $0xa8] sm:$0xff] %v6775_v0 }
  0x7f   : > { %521 = vst [vmem:[#allocation2 + $0xd0] sm:$0xff] %v6775_v0 }
  0x80   : > { %522 = vst [vmem:[#allocation2 + $0x10] sm:$0xff] %v6775_v0 }
  0x81   : > { %523 = vst [vmem:[#allocation2 + $0x28] sm:$0xff] %v6775_v0  ;;  %532 = sbr.rel (%p4659_p0) target bundleno = 555 (0x22b), region = 97 }
  0x82   : > { %524 = vst [vmem:[#allocation2 + $0xa0] sm:$0xff] %v6775_v0 }
  0x83   : > { %525 = vst [vmem:[#allocation2 + $0xf8] sm:$0xff] %v6775_v0 }
  0x84   : > { %526 = vst [vmem:[#allocation2 + $0x20] sm:$0xff] %v6775_v0 }
  0x85   : > { %527 = vst [vmem:[#allocation2 + $0x98] sm:$0xff] %v6775_v0 }
  0x86   : > { %v5800_v1 = vld [vmem:[#allocation3 + $0x38] sm:$0xff]  ;;  %v5799_v5 = vld [vmem:[#allocation3 + $0x30] sm:$0xff]  ;;  %v5798_v9 = vld [vmem:[#allocation3 + $0x28] sm:$0xff] }
  0x87   : > { %v5808_v2 = vld [vmem:[#allocation3 + $0x78] sm:$0xff]  ;;  %1209 = vmatpush.bf16.msra.mxu0 %v5800_v1  ;;  %v5807_v6 = vld [vmem:[#allocation3 + $0x70] sm:$0xff]  ;;  %v5806_v10 = vld [vmem:[#allocation3 + $0x68] sm:$0xff] }
  0x88   : > { %v5816_v3 = vld [vmem:[#allocation3 + $0xb8] sm:$0xff]  ;;  %1298 = vmatpush.bf16.msra.mxu1 %v5808_v2  ;;  %v5815_v7 = vld [vmem:[#allocation3 + $0xb0] sm:$0xff]  ;;  %v5814_v11 = vld [vmem:[#allocation3 + $0xa8] sm:$0xff] }
  0x89   : > { %v5824_v4 = vld [vmem:[#allocation3 + $0xf8] sm:$0xff]  ;;  %1387 = vmatpush.bf16.msra.mxu2 %v5816_v3  ;;  %v5823_v8 = vld [vmem:[#allocation3 + $0xf0] sm:$0xff]  ;;  %v5822_v12 = vld [vmem:[#allocation3 + $0xe8] sm:$0xff] }
  0x8a   : > { %1476 = vmatpush.bf16.msra.mxu3 %v5824_v4  ;;  %v5797_v13 = vld [vmem:[#allocation3 + $0x20] sm:$0xff]  ;;  %v5796_v17 = vld [vmem:[#allocation3 + $0x18] sm:$0xff]  ;;  %v5795_v21 = vld [vmem:[#allocation3 + $0x10] sm:$0xff] }
  0x8b   : > { %1210 = vmatpush.bf16.msra.mxu0 %v5799_v5  ;;  %v5805_v14 = vld [vmem:[#allocation3 + $0x60] sm:$0xff]  ;;  %v5804_v18 = vld [vmem:[#allocation3 + $0x58] sm:$0xff]  ;;  %v5803_v22 = vld [vmem:[#allocation3 + $0x50] sm:$0xff] }
  0x8c   : > { %1299 = vmatpush.bf16.msra.mxu1 %v5807_v6  ;;  %v5813_v15 = vld [vmem:[#allocation3 + $0xa0] sm:$0xff]  ;;  %v5812_v19 = vld [vmem:[#allocation3 + $0x98] sm:$0xff]  ;;  %v5811_v23 = vld [vmem:[#allocation3 + $0x90] sm:$0xff] }
  0x8d   : > { %1388 = vmatpush.bf16.msra.mxu2 %v5815_v7  ;;  %v5821_v16 = vld [vmem:[#allocation3 + $0xe0] sm:$0xff]  ;;  %v5820_v20 = vld [vmem:[#allocation3 + $0xd8] sm:$0xff]  ;;  %v5819_v24 = vld [vmem:[#allocation3 + $0xd0] sm:$0xff] }
  0x8e   : > { %1477 = vmatpush.bf16.msra.mxu3 %v5823_v8  ;;  %v5794_v25 = vld [vmem:[#allocation3 + $0x8] sm:$0xff]  ;;  %v5793_v29 = vld [vmem:[#allocation3] sm:$0xff]  ;;  %v5731_v34 = vld [vmem:[%s6994_s5 + $0xc] sm:$0xf0] }
  0x8f   : > { %1211 = vmatpush.bf16.msra.mxu0 %v5798_v9  ;;  %v5802_v26 = vld [vmem:[#allocation3 + $0x48] sm:$0xff]  ;;  %v5801_v30 = vld [vmem:[#allocation3 + $0x40] sm:$0xff]  ;;  %v4664_v36 = vld [vmem:[%s6994_s5 + $0x10] sm:$0xf0] }
  0x90   : > { %1300 = vmatpush.bf16.msra.mxu1 %v5806_v10  ;;  %v5810_v27 = vld [vmem:[#allocation3 + $0x88] sm:$0xff]  ;;  %v5809_v31 = vld [vmem:[#allocation3 + $0x80] sm:$0xff]  ;;  %v5732_v38 = vld [vmem:[%s6994_s5 + $0x14] sm:$0xf0] }
  0x91   : > { %1389 = vmatpush.bf16.msra.mxu2 %v5814_v11  ;;  %v5818_v28 = vld [vmem:[#allocation3 + $0xc8] sm:$0xff]  ;;  %v5817_v32 = vld [vmem:[#allocation3 + $0xc0] sm:$0xff]  ;;  %v4672_v40 = vld [vmem:[%s6994_s5 + $0x18] sm:$0xf0] }
  0x92   : > { %1478 = vmatpush.bf16.msra.mxu3 %v5822_v12  ;;  %v4662_v33 = vld [vmem:[%s6994_s5] sm:$0xf]  ;;  %v5729_v35 = vld [vmem:[%s6994_s5 + $0x4] sm:$0xf]  ;;  %v4670_v37 = vld [vmem:[%s6994_s5 + $0x8] sm:$0xf] }
  0x93   : > { %1212 = vmatpush.bf16.msra.mxu0 %v5797_v13  ;;  %v5730_v39 = vld [vmem:[%s6994_s5 + $0xc] sm:$0xf]  ;;  %v4663_v41 = vor.u32 %v5731_v34, %v4662_v33  ;;  %v4667_v42 = vor.u32 %v5729_v35, %v4664_v36  ;;  %v4671_v43 = vor.u32 %v5732_v38, %v4670_v37  ;;  %v4678_v45 = vld [vmem:[%s6994_s5 + $0x20] sm:$0xf]  ;;  %v5735_v46 = vld [vmem:[%s6994_s5 + $0x2c] sm:$0xf0] }
  0x94   : > { %1301 = vmatpush.bf16.msra.mxu1 %v5805_v14  ;;  %v4675_v44 = vor.u32 %v5730_v39, %v4672_v40  ;;  %v5733_v47 = vld [vmem:[%s6994_s5 + $0x24] sm:$0xf]  ;;  %v4680_v48 = vld [vmem:[%s6994_s5 + $0x30] sm:$0xf0]  ;;  %v4686_v49 = vld [vmem:[%s6994_s5 + $0x28] sm:$0xf]  ;;  %v4679_v53 = vor.u32 %v5735_v46, %v4678_v45 }
  0x95   : > { %1390 = vmatpush.bf16.msra.mxu2 %v5813_v15  ;;  %v5736_v50 = vld [vmem:[%s6994_s5 + $0x34] sm:$0xf0]  ;;  %v5734_v51 = vld [vmem:[%s6994_s5 + $0x2c] sm:$0xf]  ;;  %v4688_v52 = vld [vmem:[%s6994_s5 + $0x38] sm:$0xf0]  ;;  %v4683_v54 = vor.u32 %v5733_v47, %v4680_v48 }
  0x96   : > { %1479 = vmatpush.bf16.msra.mxu3 %v5821_v16  ;;  %v4687_v55 = vor.u32 %v5736_v50, %v4686_v49  ;;  %v4691_v56 = vor.u32 %v5734_v51, %v4688_v52  ;;  %v4694_v57 = vld [vmem:[%s6994_s5 + $0x40] sm:$0xf]  ;;  %v5739_v58 = vld [vmem:[%s6994_s5 + $0x4c] sm:$0xf0]  ;;  %v5737_v59 = vld [vmem:[%s6994_s5 + $0x44] sm:$0xf] }
  0x97   : > { %1213 = vmatpush.bf16.msra.mxu0 %v5796_v17  ;;  %v4696_v60 = vld [vmem:[%s6994_s5 + $0x50] sm:$0xf0]  ;;  %v4702_v61 = vld [vmem:[%s6994_s5 + $0x48] sm:$0xf]  ;;  %v5740_v62 = vld [vmem:[%s6994_s5 + $0x54] sm:$0xf0]  ;;  %v4695_v1 = vor.u32 %v5739_v58, %v4694_v57 }
  0x98   : > { %1302 = vmatpush.bf16.msra.mxu1 %v5804_v18  ;;  %v5738_v63 = vld [vmem:[%s6994_s5 + $0x4c] sm:$0xf]  ;;  %v4704_v0 = vld [vmem:[%s6994_s5 + $0x58] sm:$0xf0]  ;;  %v4699_v2 = vor.u32 %v5737_v59, %v4696_v60  ;;  %v4703_v3 = vor.u32 %v5740_v62, %v4702_v61  ;;  %v4710_v5 = vld [vmem:[%s6994_s5 + $0x60] sm:$0xf] }
  0x99   : > { %1391 = vmatpush.bf16.msra.mxu2 %v5812_v19  ;;  %v4707_v4 = vor.u32 %v5738_v63, %v4704_v0  ;;  %v5743_v6 = vld [vmem:[%s6994_s5 + $0x6c] sm:$0xf0]  ;;  %v5741_v7 = vld [vmem:[%s6994_s5 + $0x64] sm:$0xf]  ;;  %v4712_v8 = vld [vmem:[%s6994_s5 + $0x70] sm:$0xf0] }
  0x9a   : > { %1480 = vmatpush.bf16.msra.mxu3 %v5820_v20  ;;  %v4718_v9 = vld [vmem:[%s6994_s5 + $0x68] sm:$0xf]  ;;  %v5744_v10 = vld [vmem:[%s6994_s5 + $0x74] sm:$0xf0]  ;;  %v5742_v11 = vld [vmem:[%s6994_s5 + $0x6c] sm:$0xf]  ;;  %v4711_v13 = vor.u32 %v5743_v6, %v4710_v5  ;;  %v4715_v14 = vor.u32 %v5741_v7, %v4712_v8 }
  0x9b   : > { %1214 = vmatpush.bf16.msra.mxu0 %v5795_v21  ;;  %v4720_v12 = vld [vmem:[%s6994_s5 + $0x78] sm:$0xf0]  ;;  %v4719_v15 = vor.u32 %v5744_v10, %v4718_v9  ;;  %v4726_v17 = vld [vmem:[%s6994_s5 + $0x80] sm:$0xf]  ;;  %v5747_v18 = vld [vmem:[%s6994_s5 + $0x8c] sm:$0xf0] }
  0x9c   : > { %1303 = vmatpush.bf16.msra.mxu1 %v5803_v22  ;;  %v4723_v16 = vor.u32 %v5742_v11, %v4720_v12  ;;  %v5745_v19 = vld [vmem:[%s6994_s5 + $0x84] sm:$0xf]  ;;  %v4728_v20 = vld [vmem:[%s6994_s5 + $0x90] sm:$0xf0]  ;;  %v4734_v21 = vld [vmem:[%s6994_s5 + $0x88] sm:$0xf] }
  0x9d   : > { %1392 = vmatpush.bf16.msra.mxu2 %v5811_v23  ;;  %v5748_v22 = vld [vmem:[%s6994_s5 + $0x94] sm:$0xf0]  ;;  %v5746_v23 = vld [vmem:[%s6994_s5 + $0x8c] sm:$0xf]  ;;  %v4750_v33 = vld [vmem:[%s6994_s5 + $0xa8] sm:$0xf] }
  0x9e   : > { %1481 = vmatpush.bf16.msra.mxu3 %v5819_v24  ;;  %v4736_v24 = vld [vmem:[%s6994_s5 + $0x98] sm:$0xf0]  ;;  %v5752_v34 = vld [vmem:[%s6994_s5 + $0xb4] sm:$0xf0]  ;;  %v5750_v35 = vld [vmem:[%s6994_s5 + $0xac] sm:$0xf] }
  0x9f   : > { %1215 = vmatpush.bf16.msra.mxu0 %v5794_v25  ;;  %v4727_v25 = vor.u32 %v5747_v18, %v4726_v17  ;;  %v4752_v36 = vld [vmem:[%s6994_s5 + $0xb8] sm:$0xf0]  ;;  %v4751_v39 = vor.u32 %v5752_v34, %v4750_v33  ;;  %v4766_v45 = vld [vmem:[%s6994_s5 + $0xc8] sm:$0xf]  ;;  %v5756_v46 = vld [vmem:[%s6994_s5 + $0xd4] sm:$0xf0] }
  0xa0   : > { %1304 = vmatpush.bf16.msra.mxu1 %v5802_v26  ;;  %v4731_v26 = vor.u32 %v5745_v19, %v4728_v20  ;;  %v4755_v40 = vor.u32 %v5750_v35, %v4752_v36  ;;  %v5754_v47 = vld [vmem:[%s6994_s5 + $0xcc] sm:$0xf]  ;;  %v4768_v48 = vld [vmem:[%s6994_s5 + $0xd8] sm:$0xf0]  ;;  %v4767_v51 = vor.u32 %v5756_v46, %v4766_v45  ;;  %v4782_v57 = vld [vmem:[%s6994_s5 + $0xe8] sm:$0xf] }
  0xa1   : > { %1393 = vmatpush.bf16.msra.mxu2 %v5810_v27  ;;  %v4735_v27 = vor.u32 %v5748_v22, %v4734_v21  ;;  %v4771_v52 = vor.u32 %v5754_v47, %v4768_v48  ;;  %v5760_v58 = vld [vmem:[%s6994_s5 + $0xf4] sm:$0xf0]  ;;  %v5758_v59 = vld [vmem:[%s6994_s5 + $0xec] sm:$0xf]  ;;  %v4784_v60 = vld [vmem:[%s6994_s5 + $0xf8] sm:$0xf0] }
  0xa2   : > { %1482 = vmatpush.bf16.msra.mxu3 %v5818_v28  ;;  %v4739_v28 = vor.u32 %v5746_v23, %v4736_v24  ;;  %v4783_v63 = vor.u32 %v5760_v58, %v4782_v57  ;;  %v4787_v0 = vor.u32 %v5758_v59, %v4784_v60  ;;  %v4798_v5 = vld [vmem:[%s6994_s5 + $0x108] sm:$0xf]  ;;  %v5764_v6 = vld [vmem:[%s6994_s5 + $0x114] sm:$0xf0]  ;;  %v5762_v7 = vld [vmem:[%s6994_s5 + $0x10c] sm:$0xf] }
  0xa3   : > { %1216 = vmatpush.bf16.msra.mxu0 %v5793_v29  ;;  %v4742_v29 = vld [vmem:[%s6994_s5 + $0xa0] sm:$0xf]  ;;  %v4800_v8 = vld [vmem:[%s6994_s5 + $0x118] sm:$0xf0]  ;;  %v533_v21 = vld [vmem:[#allocation2 + $0xb0] sm:$0xff] }
  0xa4   : > { %1305 = vmatpush.bf16.msra.mxu1 %v5801_v30  ;;  %v5751_v30 = vld [vmem:[%s6994_s5 + $0xac] sm:$0xf0]  ;;  %v4806_v23 = vld [vmem:[%s6994_s5 + $0x120] sm:$0xf]  ;;  %v4824_v57 = vld [vmem:[%s6994_s5 + $0x150] sm:$0xf0] }
  0xa5   : > { %1394 = vmatpush.bf16.msra.mxu2 %v5809_v31  ;;  %v5749_v31 = vld [vmem:[%s6994_s5 + $0xa4] sm:$0xf]  ;;  %v4743_v37 = vor.u32 %v5751_v30, %v4742_v29  ;;  %v5767_v24 = vld [vmem:[%s6994_s5 + $0x12c] sm:$0xf0]  ;;  %v5768_v29 = vld [vmem:[%s6994_s5 + $0x134] sm:$0xf0] }
  0xa6   : > { %1483 = vmatpush.bf16.msra.mxu3 %v5817_v32  ;;  %1217 = vmatmul.bf16.vlgmr.msra.gmra.mxu0 %v4663_v41  ;;  %v4744_v32 = vld [vmem:[%s6994_s5 + $0xb0] sm:$0xf0]  ;;  %v4758_v41 = vld [vmem:[%s6994_s5 + $0xc0] sm:$0xf]  ;;  %v5766_v30 = vld [vmem:[%s6994_s5 + $0x12c] sm:$0xf]  ;;  %v4807_v35 = vor.u32 %v5767_v24, %v4806_v23 }
  0xa7   : > { %1306 = vmatmul.bf16.vlgmr.msra.gmra.mxu1 %v4667_v42  ;;  %v4747_v38 = vor.u32 %v5749_v31, %v4744_v32  ;;  %v5755_v42 = vld [vmem:[%s6994_s5 + $0xcc] sm:$0xf0]  ;;  %v4816_v31 = vld [vmem:[%s6994_s5 + $0x138] sm:$0xf0]  ;;  %v4830_v58 = vld [vmem:[%s6994_s5 + $0x148] sm:$0xf] }
  0xa8   : > { %1395 = vmatmul.bf16.vlgmr.msra.gmra.mxu2 %v4671_v43  ;;  %v5753_v43 = vld [vmem:[%s6994_s5 + $0xc4] sm:$0xf]  ;;  %v4759_v49 = vor.u32 %v5755_v42, %v4758_v41  ;;  %v4819_v41 = vor.u32 %v5766_v30, %v4816_v31  ;;  %v5772_v59 = vld [vmem:[%s6994_s5 + $0x154] sm:$0xf0]  ;;  %v5770_v60 = vld [vmem:[%s6994_s5 + $0x14c] sm:$0xf] }
  0xa9   : > { %1484 = vmatmul.bf16.vlgmr.msra.gmra.mxu3 %v4675_v44  ;;  %v4760_v44 = vld [vmem:[%s6994_s5 + $0xd0] sm:$0xf0]  ;;  %v534_v42 = vld [vmem:[#allocation2] sm:$0xff]  ;;  %v4846_v24 = vld [vmem:[%s6994_s5 + $0x168] sm:$0xf] }
  0xaa   : > { %v4763_v50 = vor.u32 %v5753_v43, %v4760_v44  ;;  %v4840_v23 = vld [vmem:[%s6994_s5 + $0x170] sm:$0xf0] }
  0xb6   : > { %1222 = vmatmul.bf16.gmra.mxu0 %v4679_v53  ;;  %v4774_v53 = vld [vmem:[%s6994_s5 + $0xe0] sm:$0xf] }
  0xb7   : > { %1311 = vmatmul.bf16.gmra.mxu1 %v4683_v54  ;;  %v5759_v54 = vld [vmem:[%s6994_s5 + $0xec] sm:$0xf0] }
  0xb8   : > { %1400 = vmatmul.bf16.gmra.mxu2 %v4687_v55  ;;  %v5757_v55 = vld [vmem:[%s6994_s5 + $0xe4] sm:$0xf]  ;;  %v4775_v61 = vor.u32 %v5759_v54, %v4774_v53  ;;  %v4822_v53 = vld [vmem:[%s6994_s5 + $0x140] sm:$0xf]  ;;  %v5771_v54 = vld [vmem:[%s6994_s5 + $0x14c] sm:$0xf0] }
  0xb9   : > { %1489 = vmatmul.bf16.gmra.mxu3 %v4691_v56  ;;  %v4776_v56 = vld [vmem:[%s6994_s5 + $0xf0] sm:$0xf0] }
  0xba   : > { %v4779_v62 = vor.u32 %v5757_v55, %v4776_v56  ;;  %v5769_v56 = vld [vmem:[%s6994_s5 + $0x144] sm:$0xf] }
  0xc6   : > { %1227 = vmatmul.bf16.gmra.mxu0 %v4695_v1  ;;  %v4790_v1 = vld [vmem:[%s6994_s5 + $0x100] sm:$0xf] }
  0xc7   : > { %1316 = vmatmul.bf16.gmra.mxu1 %v4699_v2  ;;  %v5763_v2 = vld [vmem:[%s6994_s5 + $0x10c] sm:$0xf0] }
  0xc8   : > { %1405 = vmatmul.bf16.gmra.mxu2 %v4703_v3  ;;  %v5761_v3 = vld [vmem:[%s6994_s5 + $0x104] sm:$0xf]  ;;  %v4791_v9 = vor.u32 %v5763_v2, %v4790_v1  ;;  %v4823_v1 = vor.u32 %v5771_v54, %v4822_v53  ;;  %v4827_v2 = vor.u32 %v5769_v56, %v4824_v57  ;;  %v4856_v53 = vld [vmem:[%s6994_s5 + $0x190] sm:$0xf0]  ;;  %v4862_v54 = vld [vmem:[%s6994_s5 + $0x188] sm:$0xf] }
  0xc9   : > { %1494 = vmatmul.bf16.gmra.mxu3 %v4707_v4  ;;  %v4792_v4 = vld [vmem:[%s6994_s5 + $0x110] sm:$0xf0]  ;;  %v5778_v56 = vld [vmem:[%s6994_s5 + $0x18c] sm:$0xf]  ;;  %v4864_v57 = vld [vmem:[%s6994_s5 + $0x198] sm:$0xf0] }
  0xca   : > { %v4795_v10 = vor.u32 %v5761_v3, %v4792_v4 }
  0xd6   : > { %1232 = vmatmul.bf16.gmra.mxu0 %v4711_v13  ;;  %v4799_v13 = vor.u32 %v5764_v6, %v4798_v5  ;;  %v4831_v6 = vor.u32 %v5772_v59, %v4830_v58 }
  0xd7   : > { %1321 = vmatmul.bf16.gmra.mxu1 %v4715_v14  ;;  %v4803_v14 = vor.u32 %v5762_v7, %v4800_v8  ;;  %v536_v8 = vld [vmem:[#allocation2 + $0x18] sm:$0xff] }
  0xd8   : > { %1410 = vmatmul.bf16.gmra.mxu2 %v4719_v15 }
  0xd9   : > { %1499 = vmatmul.bf16.gmra.mxu3 %v4723_v16 }
  0xe6   : > { %1237 = vmatmul.bf16.gmra.mxu0 %v4727_v25 }
  0xe7   : > { %1326 = vmatmul.bf16.gmra.mxu1 %v4731_v26  ;;  %v5765_v26 = vld [vmem:[%s6994_s5 + $0x124] sm:$0xf] }
  0xe8   : > { %1415 = vmatmul.bf16.gmra.mxu2 %v4735_v27  ;;  %v4808_v27 = vld [vmem:[%s6994_s5 + $0x130] sm:$0xf0] }
  0xe9   : > { %1504 = vmatmul.bf16.gmra.mxu3 %v4739_v28  ;;  %v4814_v28 = vld [vmem:[%s6994_s5 + $0x128] sm:$0xf]  ;;  %v4811_v36 = vor.u32 %v5765_v26, %v4808_v27  ;;  %v5774_v26 = vld [vmem:[%s6994_s5 + $0x16c] sm:$0xf]  ;;  %v4848_v27 = vld [vmem:[%s6994_s5 + $0x178] sm:$0xf0] }
  0xf6   : > { %1242 = vmatmul.bf16.gmra.mxu0 %v4743_v37 }
  0xf7   : > { %1331 = vmatmul.bf16.gmra.mxu1 %v4747_v38 }
  0xf8   : > { %1420 = vmatmul.bf16.gmra.mxu2 %v4751_v39 }
  0xf9   : > { %1509 = vmatmul.bf16.gmra.mxu3 %v4755_v40  ;;  %v4815_v40 = vor.u32 %v5768_v29, %v4814_v28 }
 0x106   : > { %1247 = vmatmul.bf16.gmra.mxu0 %v4759_v49 }
 0x107   : > { %1336 = vmatmul.bf16.gmra.mxu1 %v4763_v50 }
 0x108   : > { %1425 = vmatmul.bf16.gmra.mxu2 %v4767_v51  ;;  %v535_v51 = vld [vmem:[#allocation2 + $0xd8] sm:$0xff] }
 0x109   : > { %1514 = vmatmul.bf16.gmra.mxu3 %v4771_v52 }
 0x116   : > { %1252 = vmatmul.bf16.gmra.mxu0 %v4775_v61  ;;  %v4832_v61 = vld [vmem:[%s6994_s5 + $0x158] sm:$0xf0] }
 0x117   : > { %1341 = vmatmul.bf16.gmra.mxu1 %v4779_v62  ;;  %v4835_v7 = vor.u32 %v5770_v60, %v4832_v61 }
 0x118   : > { %1430 = vmatmul.bf16.gmra.mxu2 %v4783_v63 }
 0x119   : > { %1519 = vmatmul.bf16.gmra.mxu3 %v4787_v0 }
 0x123   : > { %v1218_v11 = vpop.f32.mrf.mxu0 }
 0x124   : > { %v1307_v12 = vpop.f32.mrf.mxu1 }
 0x125   : > { %v1308_v15 = vadd.f32 %v1307_v12, %v1218_v11 }
 0x126   : > { %1257 = vmatmul.bf16.gmra.mxu0 %v4791_v9 }
 0x127   : > { %1346 = vmatmul.bf16.gmra.mxu1 %v4795_v10 }
 0x128   : > { %1435 = vmatmul.bf16.gmra.mxu2 %v4799_v13 }
 0x129   : > { %1524 = vmatmul.bf16.gmra.mxu3 %v4803_v14 }
 0x12b   : > { %v1396_v16 = vpop.f32.mrf.mxu2  ;;  %v1220_v19 = vpop.f32.mrf.mxu0 }
 0x12c   : > { %v1485_v17 = vpop.f32.mrf.mxu3  ;;  %v1397_v18 = vadd.f32 %v1396_v16, %v1308_v15  ;;  %v1309_v20 = vpop.f32.mrf.mxu1 }
 0x12d   : > { %v1310_v32 = vadd.f32 %v1309_v20, %v1220_v19  ;;  %v4838_v19 = vld [vmem:[%s6994_s5 + $0x160] sm:$0xf]  ;;  %v5775_v20 = vld [vmem:[%s6994_s5 + $0x16c] sm:$0xf0] }
 0x12e   : > { %v1486_v22 = vadd.f32 %v1485_v17, %v1397_v18  ;;  %v537_v17 = vld [vmem:[#allocation2 + $0x50] sm:$0xff]  ;;  %v4839_v31 = vor.u32 %v5775_v20, %v4838_v19  ;;  %v4878_v20 = vld [vmem:[%s6994_s5 + $0x1a8] sm:$0xf] }
 0x12f   : > { %v4872_v19 = vld [vmem:[%s6994_s5 + $0x1b0] sm:$0xf0] }
 0x130   : > { %v1565_v25 = vadd.f32 %v1486_v22, %v533_v21  ;;  %v5773_v22 = vld [vmem:[%s6994_s5 + $0x164] sm:$0xf] }
 0x132   : > { %1597 = vst [vmem:[#allocation2 + $0xb0] sm:$0xff] %v1565_v25  ;;  %v5776_v25 = vld [vmem:[%s6994_s5 + $0x174] sm:$0xf0] }
 0x133   : > { %v1398_v33 = vpop.f32.mrf.mxu2  ;;  %v1223_v38 = vpop.f32.mrf.mxu0 }
 0x134   : > { %v1487_v34 = vpop.f32.mrf.mxu3  ;;  %v1399_v37 = vadd.f32 %v1398_v33, %v1310_v32  ;;  %v1312_v39 = vpop.f32.mrf.mxu1  ;;  %v4843_v32 = vor.u32 %v5773_v22, %v4840_v23  ;;  %v5782_v22 = vld [vmem:[%s6994_s5 + $0x1ac] sm:$0xf]  ;;  %v4880_v23 = vld [vmem:[%s6994_s5 + $0x1b8] sm:$0xf0] }
 0x135   : > { %v1313_v45 = vadd.f32 %v1312_v39, %v1223_v38  ;;  %v538_v38 = vld [vmem:[#allocation2 + $0x68] sm:$0xff] }
 0x136   : > { %v1488_v43 = vadd.f32 %v1487_v34, %v1399_v37  ;;  %1262 = vmatmul.bf16.gmra.mxu0 %v4807_v35  ;;  %v4851_v37 = vor.u32 %v5774_v26, %v4848_v27 }
 0x137   : > { %1351 = vmatmul.bf16.gmra.mxu1 %v4811_v36  ;;  %v4847_v36 = vor.u32 %v5776_v25, %v4846_v24 }
 0x138   : > { %v1566_v44 = vadd.f32 %v1488_v43, %v534_v42  ;;  %1440 = vmatmul.bf16.gmra.mxu2 %v4815_v40 }
 0x139   : > { %1529 = vmatmul.bf16.gmra.mxu3 %v4819_v41 }
 0x13a   : > { %1598 = vst [vmem:[#allocation2] sm:$0xff] %v1566_v44 }
 0x13b   : > { %v1401_v46 = vpop.f32.mrf.mxu2  ;;  %v1225_v49 = vpop.f32.mrf.mxu0 }
 0x13c   : > { %v1490_v47 = vpop.f32.mrf.mxu3  ;;  %v1402_v48 = vadd.f32 %v1401_v46, %v1313_v45  ;;  %v1314_v50 = vpop.f32.mrf.mxu1 }
 0x13d   : > { %v1315_v62 = vadd.f32 %v1314_v50, %v1225_v49  ;;  %v4854_v49 = vld [vmem:[%s6994_s5 + $0x180] sm:$0xf]  ;;  %v5779_v50 = vld [vmem:[%s6994_s5 + $0x18c] sm:$0xf0] }
 0x13e   : > { %v1491_v52 = vadd.f32 %v1490_v47, %v1402_v48  ;;  %v539_v47 = vld [vmem:[#allocation2 + $0x30] sm:$0xff]  ;;  %v4855_v61 = vor.u32 %v5779_v50, %v4854_v49  ;;  %v4894_v50 = vld [vmem:[%s6994_s5 + $0x1c8] sm:$0xf] }
 0x13f   : > { %v4888_v49 = vld [vmem:[%s6994_s5 + $0x1d0] sm:$0xf0] }
 0x140   : > { %v1567_v55 = vadd.f32 %v1491_v52, %v535_v51  ;;  %v5777_v52 = vld [vmem:[%s6994_s5 + $0x184] sm:$0xf] }
 0x142   : > { %1599 = vst [vmem:[#allocation2 + $0xd8] sm:$0xff] %v1567_v55  ;;  %v5780_v55 = vld [vmem:[%s6994_s5 + $0x194] sm:$0xf0] }
 0x143   : > { %v1403_v63 = vpop.f32.mrf.mxu2  ;;  %v1228_v4 = vpop.f32.mrf.mxu0 }
 0x144   : > { %v1492_v0 = vpop.f32.mrf.mxu3  ;;  %v1404_v3 = vadd.f32 %v1403_v63, %v1315_v62  ;;  %v1317_v5 = vpop.f32.mrf.mxu1  ;;  %v4859_v62 = vor.u32 %v5777_v52, %v4856_v53  ;;  %v5786_v52 = vld [vmem:[%s6994_s5 + $0x1cc] sm:$0xf]  ;;  %v4896_v53 = vld [vmem:[%s6994_s5 + $0x1d8] sm:$0xf0] }
 0x145   : > { %v1318_v11 = vadd.f32 %v1317_v5, %v1228_v4  ;;  %v540_v4 = vld [vmem:[#allocation2 + $0x48] sm:$0xff] }
 0x146   : > { %v1493_v9 = vadd.f32 %v1492_v0, %v1404_v3  ;;  %1267 = vmatmul.bf16.gmra.mxu0 %v4823_v1  ;;  %v4867_v3 = vor.u32 %v5778_v56, %v4864_v57 }
 0x147   : > { %1356 = vmatmul.bf16.gmra.mxu1 %v4827_v2  ;;  %v4863_v2 = vor.u32 %v5780_v55, %v4862_v54 }
 0x148   : > { %v1568_v10 = vadd.f32 %v1493_v9, %v536_v8  ;;  %1445 = vmatmul.bf16.gmra.mxu2 %v4831_v6 }
 0x149   : > { %1534 = vmatmul.bf16.gmra.mxu3 %v4835_v7 }
 0x14a   : > { %1600 = vst [vmem:[#allocation2 + $0x18] sm:$0xff] %v1568_v10 }
 0x14b   : > { %v1406_v12 = vpop.f32.mrf.mxu2  ;;  %v1230_v15 = vpop.f32.mrf.mxu0 }
 0x14c   : > { %v1495_v13 = vpop.f32.mrf.mxu3  ;;  %v1407_v14 = vadd.f32 %v1406_v12, %v1318_v11  ;;  %v1319_v16 = vpop.f32.mrf.mxu1 }
 0x14d   : > { %v1320_v28 = vadd.f32 %v1319_v16, %v1230_v15  ;;  %v4870_v15 = vld [vmem:[%s6994_s5 + $0x1a0] sm:$0xf]  ;;  %v5783_v16 = vld [vmem:[%s6994_s5 + $0x1ac] sm:$0xf0] }
 0x14e   : > { %v1496_v18 = vadd.f32 %v1495_v13, %v1407_v14  ;;  %v541_v13 = vld [vmem:[#allocation2 + $0x80] sm:$0xff]  ;;  %v4871_v27 = vor.u32 %v5783_v16, %v4870_v15  ;;  %v4904_v15 = vld [vmem:[%s6994_s5 + $0x1f0] sm:$0xf0]  ;;  %v4910_v16 = vld [vmem:[%s6994_s5 + $0x1e8] sm:$0xf] }
 0x150   : > { %v1569_v21 = vadd.f32 %v1496_v18, %v537_v17  ;;  %v5781_v18 = vld [vmem:[%s6994_s5 + $0x1a4] sm:$0xf] }
 0x152   : > { %1601 = vst [vmem:[#allocation2 + $0x50] sm:$0xff] %v1569_v21  ;;  %v5784_v21 = vld [vmem:[%s6994_s5 + $0x1b4] sm:$0xf0] }
 0x153   : > { %v1408_v29 = vpop.f32.mrf.mxu2  ;;  %v1233_v34 = vpop.f32.mrf.mxu0 }
 0x154   : > { %v1497_v30 = vpop.f32.mrf.mxu3  ;;  %v1409_v33 = vadd.f32 %v1408_v29, %v1320_v28  ;;  %v1322_v35 = vpop.f32.mrf.mxu1  ;;  %v4875_v28 = vor.u32 %v5781_v18, %v4872_v19  ;;  %v5790_v18 = vld [vmem:[%s6994_s5 + $0x1ec] sm:$0xf]  ;;  %v4912_v19 = vld [vmem:[%s6994_s5 + $0x1f8] sm:$0xf0] }
 0x155   : > { %v1323_v41 = vadd.f32 %v1322_v35, %v1233_v34  ;;  %v542_v34 = vld [vmem:[#allocation2 + $0x88] sm:$0xff] }
 0x156   : > { %v1498_v39 = vadd.f32 %v1497_v30, %v1409_v33  ;;  %1272 = vmatmul.bf16.gmra.mxu0 %v4839_v31  ;;  %v4883_v33 = vor.u32 %v5782_v22, %v4880_v23 }
 0x157   : > { %1361 = vmatmul.bf16.gmra.mxu1 %v4843_v32  ;;  %v4879_v32 = vor.u32 %v5784_v21, %v4878_v20 }
 0x158   : > { %v1570_v40 = vadd.f32 %v1498_v39, %v538_v38  ;;  %1450 = vmatmul.bf16.gmra.mxu2 %v4847_v36 }
 0x159   : > { %1539 = vmatmul.bf16.gmra.mxu3 %v4851_v37 }
 0x15a   : > { %1602 = vst [vmem:[#allocation2 + $0x68] sm:$0xff] %v1570_v40 }
 0x15b   : > { %v1411_v42 = vpop.f32.mrf.mxu2  ;;  %v1235_v45 = vpop.f32.mrf.mxu0 }
 0x15c   : > { %v1500_v43 = vpop.f32.mrf.mxu3  ;;  %v1412_v44 = vadd.f32 %v1411_v42, %v1323_v41  ;;  %v1324_v46 = vpop.f32.mrf.mxu1 }
 0x15d   : > { %v1325_v58 = vadd.f32 %v1324_v46, %v1235_v45  ;;  %v4886_v45 = vld [vmem:[%s6994_s5 + $0x1c0] sm:$0xf]  ;;  %v5787_v46 = vld [vmem:[%s6994_s5 + $0x1cc] sm:$0xf0] }
 0x15e   : > { %v1501_v48 = vadd.f32 %v1500_v43, %v1412_v44  ;;  %v543_v43 = vld [vmem:[#allocation2 + $0xe8] sm:$0xff]  ;;  %v4887_v57 = vor.u32 %v5787_v46, %v4886_v45 }
 0x160   : > { %v1571_v51 = vadd.f32 %v1501_v48, %v539_v47  ;;  %v5785_v48 = vld [vmem:[%s6994_s5 + $0x1c4] sm:$0xf] }
 0x162   : > { %1603 = vst [vmem:[#allocation2 + $0x30] sm:$0xff] %v1571_v51  ;;  %v5788_v51 = vld [vmem:[%s6994_s5 + $0x1d4] sm:$0xf0] }
 0x163   : > { %v1413_v59 = vpop.f32.mrf.mxu2  ;;  %v1238_v0 = vpop.f32.mrf.mxu0 }
 0x164   : > { %v1502_v60 = vpop.f32.mrf.mxu3  ;;  %v1414_v63 = vadd.f32 %v1413_v59, %v1325_v58  ;;  %v1327_v1 = vpop.f32.mrf.mxu1  ;;  %v4891_v58 = vor.u32 %v5785_v48, %v4888_v49  ;;  %v548_v48 = vld [vmem:[#allocation2 + $0x78] sm:$0xff] }
 0x165   : > { %v1328_v7 = vadd.f32 %v1327_v1, %v1238_v0  ;;  %v544_v0 = vld [vmem:[#allocation2 + $0xb8] sm:$0xff] }
 0x166   : > { %v1503_v5 = vadd.f32 %v1502_v60, %v1414_v63  ;;  %1277 = vmatmul.bf16.gmra.mxu0 %v4855_v61  ;;  %v4899_v63 = vor.u32 %v5786_v52, %v4896_v53 }
 0x167   : > { %1366 = vmatmul.bf16.gmra.mxu1 %v4859_v62  ;;  %v4895_v62 = vor.u32 %v5788_v51, %v4894_v50 }
 0x168   : > { %v1572_v6 = vadd.f32 %v1503_v5, %v540_v4  ;;  %1455 = vmatmul.bf16.gmra.mxu2 %v4863_v2 }
 0x169   : > { %1544 = vmatmul.bf16.gmra.mxu3 %v4867_v3 }
 0x16a   : > { %1604 = vst [vmem:[#allocation2 + $0x48] sm:$0xff] %v1572_v6 }
 0x16b   : > { %v1416_v8 = vpop.f32.mrf.mxu2  ;;  %v1240_v11 = vpop.f32.mrf.mxu0 }
 0x16c   : > { %v1505_v9 = vpop.f32.mrf.mxu3  ;;  %v1417_v10 = vadd.f32 %v1416_v8, %v1328_v7  ;;  %v1329_v12 = vpop.f32.mrf.mxu1 }
 0x16d   : > { %v1330_v24 = vadd.f32 %v1329_v12, %v1240_v11  ;;  %v4902_v11 = vld [vmem:[%s6994_s5 + $0x1e0] sm:$0xf]  ;;  %v5791_v12 = vld [vmem:[%s6994_s5 + $0x1ec] sm:$0xf0] }
 0x16e   : > { %v1506_v14 = vadd.f32 %v1505_v9, %v1417_v10  ;;  %v545_v9 = vld [vmem:[#allocation2 + $0x60] sm:$0xff]  ;;  %v4903_v23 = vor.u32 %v5791_v12, %v4902_v11 }
 0x16f   : > { %v551_v11 = vld [vmem:[#allocation2 + $0x40] sm:$0xff] }
 0x170   : > { %v1573_v17 = vadd.f32 %v1506_v14, %v541_v13  ;;  %v5789_v14 = vld [vmem:[%s6994_s5 + $0x1e4] sm:$0xf] }
 0x172   : > { %1605 = vst [vmem:[#allocation2 + $0x80] sm:$0xff] %v1573_v17  ;;  %v5792_v17 = vld [vmem:[%s6994_s5 + $0x1f4] sm:$0xf0] }
 0x173   : > { %v1418_v25 = vpop.f32.mrf.mxu2  ;;  %v1243_v30 = vpop.f32.mrf.mxu0 }
 0x174   : > { %v1507_v26 = vpop.f32.mrf.mxu3  ;;  %v1419_v29 = vadd.f32 %v1418_v25, %v1330_v24  ;;  %v1332_v31 = vpop.f32.mrf.mxu1  ;;  %v4907_v24 = vor.u32 %v5789_v14, %v4904_v15 }
 0x175   : > { %v1333_v37 = vadd.f32 %v1332_v31, %v1243_v30  ;;  %v546_v30 = vld [vmem:[#allocation2 + $0xf0] sm:$0xff] }
 0x176   : > { %v1508_v35 = vadd.f32 %v1507_v26, %v1419_v29  ;;  %1282 = vmatmul.bf16.gmra.mxu0 %v4871_v27  ;;  %v4915_v29 = vor.u32 %v5790_v18, %v4912_v19 }
 0x177   : > { %1371 = vmatmul.bf16.gmra.mxu1 %v4875_v28  ;;  %v4911_v28 = vor.u32 %v5792_v17, %v4910_v16 }
 0x178   : > { %v1574_v36 = vadd.f32 %v1508_v35, %v542_v34  ;;  %1460 = vmatmul.bf16.gmra.mxu2 %v4879_v32 }
 0x179   : > { %1549 = vmatmul.bf16.gmra.mxu3 %v4883_v33 }
 0x17a   : > { %1606 = vst [vmem:[#allocation2 + $0x88] sm:$0xff] %v1574_v36 }
 0x17b   : > { %v1421_v38 = vpop.f32.mrf.mxu2  ;;  %v1245_v41 = vpop.f32.mrf.mxu0 }
 0x17c   : > { %v1510_v39 = vpop.f32.mrf.mxu3  ;;  %v1422_v40 = vadd.f32 %v1421_v38, %v1333_v37  ;;  %v1334_v42 = vpop.f32.mrf.mxu1 }
 0x17d   : > { %v1335_v54 = vadd.f32 %v1334_v42, %v1245_v41 }
 0x17e   : > { %v1511_v44 = vadd.f32 %v1510_v39, %v1422_v40  ;;  %v547_v39 = vld [vmem:[#allocation2 + $0x8] sm:$0xff] }
 0x180   : > { %v1575_v47 = vadd.f32 %v1511_v44, %v543_v43 }
 0x182   : > { %1607 = vst [vmem:[#allocation2 + $0xe8] sm:$0xff] %v1575_v47 }
 0x183   : > { %v1423_v55 = vpop.f32.mrf.mxu2  ;;  %v1248_v60 = vpop.f32.mrf.mxu0 }
 0x184   : > { %v1512_v56 = vpop.f32.mrf.mxu3  ;;  %v1424_v59 = vadd.f32 %v1423_v55, %v1335_v54  ;;  %v1337_v61 = vpop.f32.mrf.mxu1 }
 0x185   : > { %v1338_v3 = vadd.f32 %v1337_v61, %v1248_v60 }
 0x186   : > { %v1513_v1 = vadd.f32 %v1512_v56, %v1424_v59  ;;  %1287 = vmatmul.bf16.gmra.mxu0 %v4887_v57  ;;  %v549_v57 = vld [vmem:[#allocation2 + $0x38] sm:$0xff] }
 0x187   : > { %1376 = vmatmul.bf16.gmra.mxu1 %v4891_v58 }
 0x188   : > { %v1576_v2 = vadd.f32 %v1513_v1, %v544_v0  ;;  %1465 = vmatmul.bf16.gmra.mxu2 %v4895_v62 }
 0x189   : > { %1554 = vmatmul.bf16.gmra.mxu3 %v4899_v63 }
 0x18a   : > { %1608 = vst [vmem:[#allocation2 + $0xb8] sm:$0xff] %v1576_v2  ;;  %v550_v2 = vld [vmem:[#allocation2 + $0x58] sm:$0xff] }
 0x18b   : > { %v1426_v4 = vpop.f32.mrf.mxu2  ;;  %v1250_v7 = vpop.f32.mrf.mxu0 }
 0x18c   : > { %v1515_v5 = vpop.f32.mrf.mxu3  ;;  %v1427_v6 = vadd.f32 %v1426_v4, %v1338_v3  ;;  %v1339_v8 = vpop.f32.mrf.mxu1 }
 0x18d   : > { %v1340_v20 = vadd.f32 %v1339_v8, %v1250_v7 }
 0x18e   : > { %v1516_v10 = vadd.f32 %v1515_v5, %v1427_v6 }
 0x190   : > { %v1577_v13 = vadd.f32 %v1516_v10, %v545_v9 }
 0x192   : > { %1609 = vst [vmem:[#allocation2 + $0x60] sm:$0xff] %v1577_v13 }
 0x193   : > { %v1428_v21 = vpop.f32.mrf.mxu2  ;;  %v1253_v26 = vpop.f32.mrf.mxu0 }
 0x194   : > { %v1517_v22 = vpop.f32.mrf.mxu3  ;;  %v1429_v25 = vadd.f32 %v1428_v21, %v1340_v20  ;;  %v1342_v27 = vpop.f32.mrf.mxu1  ;;  %v552_v20 = vld [vmem:[#allocation2 + $0xc8] sm:$0xff] }
 0x195   : > { %v1343_v33 = vadd.f32 %v1342_v27, %v1253_v26 }
 0x196   : > { %v1518_v31 = vadd.f32 %v1517_v22, %v1429_v25  ;;  %1292 = vmatmul.bf16.gmra.mxu0 %v4903_v23 }
 0x197   : > { %1381 = vmatmul.bf16.gmra.mxu1 %v4907_v24 }
 0x198   : > { %v1578_v32 = vadd.f32 %v1518_v31, %v546_v30  ;;  %1470 = vmatmul.bf16.gmra.mxu2 %v4911_v28 }
 0x199   : > { %1559 = vmatmul.bf16.gmra.mxu3 %v4915_v29  ;;  %v553_v29 = vld [vmem:[#allocation2 + $0xe0] sm:$0xff] }
 0x19a   : > { %1610 = vst [vmem:[#allocation2 + $0xf0] sm:$0xff] %v1578_v32 }
 0x19b   : > { %v1431_v34 = vpop.f32.mrf.mxu2  ;;  %v1255_v37 = vpop.f32.mrf.mxu0 }
 0x19c   : > { %v1520_v35 = vpop.f32.mrf.mxu3  ;;  %v1432_v36 = vadd.f32 %v1431_v34, %v1343_v33  ;;  %v1344_v38 = vpop.f32.mrf.mxu1 }
 0x19d   : > { %v1345_v42 = vadd.f32 %v1344_v38, %v1255_v37  ;;  %v554_v38 = vld [vmem:[#allocation2 + $0x90] sm:$0xff] }
 0x19e   : > { %v1521_v40 = vadd.f32 %v1520_v35, %v1432_v36 }
 0x1a0   : > { %v1579_v41 = vadd.f32 %v1521_v40, %v547_v39 }
 0x1a2   : > { %1611 = vst [vmem:[#allocation2 + $0x8] sm:$0xff] %v1579_v41 }
 0x1a3   : > { %v1433_v43 = vpop.f32.mrf.mxu2  ;;  %v1258_v46 = vpop.f32.mrf.mxu0 }
 0x1a4   : > { %v1522_v44 = vpop.f32.mrf.mxu3  ;;  %v1434_v45 = vadd.f32 %v1433_v43, %v1345_v42  ;;  %v1347_v47 = vpop.f32.mrf.mxu1 }
 0x1a5   : > { %v1348_v51 = vadd.f32 %v1347_v47, %v1258_v46  ;;  %v555_v47 = vld [vmem:[#allocation2 + $0x70] sm:$0xff] }
 0x1a6   : > { %v1523_v49 = vadd.f32 %v1522_v44, %v1434_v45 }
 0x1a8   : > { %v1580_v50 = vadd.f32 %v1523_v49, %v548_v48 }
 0x1aa   : > { %1612 = vst [vmem:[#allocation2 + $0x78] sm:$0xff] %v1580_v50 }
 0x1ab   : > { %v1436_v52 = vpop.f32.mrf.mxu2  ;;  %v1260_v55 = vpop.f32.mrf.mxu0 }
 0x1ac   : > { %v1525_v53 = vpop.f32.mrf.mxu3  ;;  %v1437_v54 = vadd.f32 %v1436_v52, %v1348_v51  ;;  %v1349_v56 = vpop.f32.mrf.mxu1 }
 0x1ad   : > { %v1350_v60 = vadd.f32 %v1349_v56, %v1260_v55  ;;  %v556_v56 = vld [vmem:[#allocation2 + $0xc0] sm:$0xff] }
 0x1ae   : > { %v1526_v58 = vadd.f32 %v1525_v53, %v1437_v54 }
 0x1b0   : > { %v1581_v59 = vadd.f32 %v1526_v58, %v549_v57 }
 0x1b2   : > { %1613 = vst [vmem:[#allocation2 + $0x38] sm:$0xff] %v1581_v59 }
 0x1b3   : > { %v1438_v61 = vpop.f32.mrf.mxu2  ;;  %v1263_v0 = vpop.f32.mrf.mxu0 }
 0x1b4   : > { %v1527_v62 = vpop.f32.mrf.mxu3  ;;  %v1439_v63 = vadd.f32 %v1438_v61, %v1350_v60  ;;  %v1352_v1 = vpop.f32.mrf.mxu1 }
 0x1b5   : > { %v1353_v5 = vadd.f32 %v1352_v1, %v1263_v0  ;;  %v557_v1 = vld [vmem:[#allocation2 + $0xa8] sm:$0xff] }
 0x1b6   : > { %v1528_v3 = vadd.f32 %v1527_v62, %v1439_v63 }
 0x1b8   : > { %v1582_v4 = vadd.f32 %v1528_v3, %v550_v2 }
 0x1ba   : > { %1614 = vst [vmem:[#allocation2 + $0x58] sm:$0xff] %v1582_v4 }
 0x1bb   : > { %v1441_v6 = vpop.f32.mrf.mxu2  ;;  %v1265_v9 = vpop.f32.mrf.mxu0 }
 0x1bc   : > { %v1530_v7 = vpop.f32.mrf.mxu3  ;;  %v1442_v8 = vadd.f32 %v1441_v6, %v1353_v5  ;;  %v1354_v10 = vpop.f32.mrf.mxu1 }
 0x1bd   : > { %v1355_v14 = vadd.f32 %v1354_v10, %v1265_v9  ;;  %v558_v10 = vld [vmem:[#allocation2 + $0xd0] sm:$0xff] }
 0x1be   : > { %v1531_v12 = vadd.f32 %v1530_v7, %v1442_v8 }
 0x1c0   : > { %v1583_v13 = vadd.f32 %v1531_v12, %v551_v11 }
 0x1c2   : > { %1615 = vst [vmem:[#allocation2 + $0x40] sm:$0xff] %v1583_v13 }
 0x1c3   : > { %v1443_v15 = vpop.f32.mrf.mxu2  ;;  %v1268_v18 = vpop.f32.mrf.mxu0 }
 0x1c4   : > { %v1532_v16 = vpop.f32.mrf.mxu3  ;;  %v1444_v17 = vadd.f32 %v1443_v15, %v1355_v14  ;;  %v1357_v19 = vpop.f32.mrf.mxu1 }
 0x1c5   : > { %v1358_v23 = vadd.f32 %v1357_v19, %v1268_v18  ;;  %v559_v19 = vld [vmem:[#allocation2 + $0x10] sm:$0xff] }
 0x1c6   : > { %v1533_v21 = vadd.f32 %v1532_v16, %v1444_v17 }
 0x1c8   : > { %v1584_v22 = vadd.f32 %v1533_v21, %v552_v20 }
 0x1ca   : > { %1616 = vst [vmem:[#allocation2 + $0xc8] sm:$0xff] %v1584_v22 }
 0x1cb   : > { %v1446_v24 = vpop.f32.mrf.mxu2  ;;  %v1270_v27 = vpop.f32.mrf.mxu0 }
 0x1cc   : > { %v1535_v25 = vpop.f32.mrf.mxu3  ;;  %v1447_v26 = vadd.f32 %v1446_v24, %v1358_v23  ;;  %v1359_v28 = vpop.f32.mrf.mxu1 }
 0x1cd   : > { %v1360_v32 = vadd.f32 %v1359_v28, %v1270_v27  ;;  %v560_v28 = vld [vmem:[#allocation2 + $0x28] sm:$0xff] }
 0x1ce   : > { %v1536_v30 = vadd.f32 %v1535_v25, %v1447_v26 }
 0x1d0   : > { %v1585_v31 = vadd.f32 %v1536_v30, %v553_v29 }
 0x1d2   : > { %1617 = vst [vmem:[#allocation2 + $0xe0] sm:$0xff] %v1585_v31 }
 0x1d3   : > { %v1448_v33 = vpop.f32.mrf.mxu2  ;;  %v1273_v36 = vpop.f32.mrf.mxu0 }
 0x1d4   : > { %v1537_v34 = vpop.f32.mrf.mxu3  ;;  %v1449_v35 = vadd.f32 %v1448_v33, %v1360_v32  ;;  %v1362_v37 = vpop.f32.mrf.mxu1 }
 0x1d5   : > { %v1363_v41 = vadd.f32 %v1362_v37, %v1273_v36  ;;  %v561_v37 = vld [vmem:[#allocation2 + $0xa0] sm:$0xff] }
 0x1d6   : > { %v1538_v39 = vadd.f32 %v1537_v34, %v1449_v35 }
 0x1d8   : > { %v1586_v40 = vadd.f32 %v1538_v39, %v554_v38 }
 0x1da   : > { %1618 = vst [vmem:[#allocation2 + $0x90] sm:$0xff] %v1586_v40 }
 0x1db   : > { %v1451_v42 = vpop.f32.mrf.mxu2  ;;  %v1275_v45 = vpop.f32.mrf.mxu0 }
 0x1dc   : > { %v1540_v43 = vpop.f32.mrf.mxu3  ;;  %v1452_v44 = vadd.f32 %v1451_v42, %v1363_v41  ;;  %v1364_v46 = vpop.f32.mrf.mxu1 }
 0x1dd   : > { %v1365_v50 = vadd.f32 %v1364_v46, %v1275_v45 }
 0x1de   : > { %v1541_v48 = vadd.f32 %v1540_v43, %v1452_v44  ;;  %v562_v44 = vld [vmem:[#allocation2 + $0xf8] sm:$0xff] }
 0x1e0   : > { %v1587_v49 = vadd.f32 %v1541_v48, %v555_v47 }
 0x1e2   : > { %1619 = vst [vmem:[#allocation2 + $0x70] sm:$0xff] %v1587_v49 }
 0x1e3   : > { %v1453_v51 = vpop.f32.mrf.mxu2  ;;  %v1278_v54 = vpop.f32.mrf.mxu0 }
 0x1e4   : > { %v1542_v52 = vpop.f32.mrf.mxu3  ;;  %v1454_v53 = vadd.f32 %v1453_v51, %v1365_v50  ;;  %v1367_v55 = vpop.f32.mrf.mxu1 }
 0x1e5   : > { %v1368_v59 = vadd.f32 %v1367_v55, %v1278_v54 }
 0x1e6   : > { %v1543_v57 = vadd.f32 %v1542_v52, %v1454_v53  ;;  %v563_v53 = vld [vmem:[#allocation2 + $0x20] sm:$0xff] }
 0x1e8   : > { %v1588_v58 = vadd.f32 %v1543_v57, %v556_v56 }
 0x1ea   : > { %1620 = vst [vmem:[#allocation2 + $0xc0] sm:$0xff] %v1588_v58 }
 0x1eb   : > { %v1456_v60 = vpop.f32.mrf.mxu2  ;;  %v1280_v63 = vpop.f32.mrf.mxu0 }
 0x1ec   : > { %v1545_v61 = vpop.f32.mrf.mxu3  ;;  %v1457_v62 = vadd.f32 %v1456_v60, %v1368_v59  ;;  %v1369_v0 = vpop.f32.mrf.mxu1 }
 0x1ed   : > { %v1370_v4 = vadd.f32 %v1369_v0, %v1280_v63 }
 0x1ee   : > { %v1546_v2 = vadd.f32 %v1545_v61, %v1457_v62  ;;  %v564_v61 = vld [vmem:[#allocation2 + $0x98] sm:$0xff] }
 0x1f0   : > { %v1589_v3 = vadd.f32 %v1546_v2, %v557_v1 }
 0x1f2   : > { %1621 = vst [vmem:[#allocation2 + $0xa8] sm:$0xff] %v1589_v3 }
 0x1f3   : > { %v1458_v5 = vpop.f32.mrf.mxu2  ;;  %v1283_v8 = vpop.f32.mrf.mxu0 }
 0x1f4   : > { %v1547_v6 = vpop.f32.mrf.mxu3  ;;  %v1459_v7 = vadd.f32 %v1458_v5, %v1370_v4  ;;  %v1372_v9 = vpop.f32.mrf.mxu1 }
 0x1f5   : > { %v1373_v13 = vadd.f32 %v1372_v9, %v1283_v8 }
 0x1f6   : > { %v1548_v11 = vadd.f32 %v1547_v6, %v1459_v7 }
 0x1f8   : > { %v1590_v12 = vadd.f32 %v1548_v11, %v558_v10 }
 0x1fa   : > { %1622 = vst [vmem:[#allocation2 + $0xd0] sm:$0xff] %v1590_v12 }
 0x1fb   : > { %v1461_v14 = vpop.f32.mrf.mxu2  ;;  %v1285_v17 = vpop.f32.mrf.mxu0 }
 0x1fc   : > { %v1550_v15 = vpop.f32.mrf.mxu3  ;;  %v1462_v16 = vadd.f32 %v1461_v14, %v1373_v13  ;;  %v1374_v18 = vpop.f32.mrf.mxu1 }
 0x1fd   : > { %v1375_v22 = vadd.f32 %v1374_v18, %v1285_v17 }
 0x1fe   : > { %v1551_v20 = vadd.f32 %v1550_v15, %v1462_v16 }
 0x200   : > { %v1591_v21 = vadd.f32 %v1551_v20, %v559_v19 }
 0x202   : > { %1623 = vst [vmem:[#allocation2 + $0x10] sm:$0xff] %v1591_v21 }
 0x203   : > { %v1463_v23 = vpop.f32.mrf.mxu2  ;;  %v1288_v26 = vpop.f32.mrf.mxu0 }
 0x204   : > { %v1552_v24 = vpop.f32.mrf.mxu3  ;;  %v1464_v25 = vadd.f32 %v1463_v23, %v1375_v22  ;;  %v1377_v27 = vpop.f32.mrf.mxu1 }
 0x205   : > { %v1378_v31 = vadd.f32 %v1377_v27, %v1288_v26 }
 0x206   : > { %v1553_v29 = vadd.f32 %v1552_v24, %v1464_v25 }
 0x208   : > { %v1592_v30 = vadd.f32 %v1553_v29, %v560_v28 }
 0x20a   : > { %1624 = vst [vmem:[#allocation2 + $0x28] sm:$0xff] %v1592_v30 }
 0x20b   : > { %v1466_v32 = vpop.f32.mrf.mxu2  ;;  %v1290_v35 = vpop.f32.mrf.mxu0 }
 0x20c   : > { %v1555_v33 = vpop.f32.mrf.mxu3  ;;  %v1467_v34 = vadd.f32 %v1466_v32, %v1378_v31  ;;  %v1379_v36 = vpop.f32.mrf.mxu1 }
 0x20d   : > { %v1380_v40 = vadd.f32 %v1379_v36, %v1290_v35 }
 0x20e   : > { %v1556_v38 = vadd.f32 %v1555_v33, %v1467_v34 }
 0x210   : > { %v1593_v39 = vadd.f32 %v1556_v38, %v561_v37 }
 0x212   : > { %1625 = vst [vmem:[#allocation2 + $0xa0] sm:$0xff] %v1593_v39 }
 0x213   : > { %v1468_v41 = vpop.f32.mrf.mxu2  ;;  %v1293_v45 = vpop.f32.mrf.mxu0 }
 0x214   : > { %v1557_v42 = vpop.f32.mrf.mxu3  ;;  %v1469_v43 = vadd.f32 %v1468_v41, %v1380_v40  ;;  %v1382_v46 = vpop.f32.mrf.mxu1 }
 0x215   : > { %v1383_v49 = vadd.f32 %v1382_v46, %v1293_v45 }
 0x216   : > { %v1558_v47 = vadd.f32 %v1557_v42, %v1469_v43 }
 0x218   : > { %v1594_v48 = vadd.f32 %v1558_v47, %v562_v44 }
 0x21a   : > { %1626 = vst [vmem:[#allocation2 + $0xf8] sm:$0xff] %v1594_v48 }
 0x21b   : > { %v1471_v50 = vpop.f32.mrf.mxu2  ;;  %v1295_v55 = vpop.f32.mrf.mxu0 }
 0x21c   : > { %v1560_v51 = vpop.f32.mrf.mxu3  ;;  %v1472_v52 = vadd.f32 %v1471_v50, %v1383_v49  ;;  %v1384_v56 = vpop.f32.mrf.mxu1 }
 0x21d   : > { %v1385_v58 = vadd.f32 %v1384_v56, %v1295_v55 }
 0x21e   : > { %v1561_v54 = vadd.f32 %v1560_v51, %v1472_v52 }
 0x220   : > { %v1595_v57 = vadd.f32 %v1561_v54, %v563_v53 }
 0x222   : > { %1627 = vst [vmem:[#allocation2 + $0x20] sm:$0xff] %v1595_v57 }
 0x223   : > { %v1473_v59 = vpop.f32.mrf.mxu2 }
 0x224   : > { %v1474_v60 = vadd.f32 %v1473_v59, %v1385_v58  ;;  %v1562_v62 = vpop.f32.mrf.mxu3 }
 0x226   : > { %v1563_v63 = vadd.f32 %v1562_v62, %v1474_v60 }
 0x228   : > { %v1596_v0 = vadd.f32 %v1563_v63, %v564_v61 }
 0x22a   : > { %1628 = vst [vmem:[#allocation2 + $0x98] sm:$0xff] %v1596_v0 }
 0x22b PF: > { %p1629_p2 = scmp.eq.s32.totalorder %s6751_s20, 1  ;;  %p5044_p3 = scmp.ne.s32.totalorder %s6751_s20, 1 }
 0x22d   : > { %1632 = sbr.rel (%p5044_p3) target bundleno = 983 (0x3d7), region = 101 }
 0x232   : > { %v5896_v1 = vld [vmem:[#allocation4 + $0x38] sm:$0xff]  ;;  %v5895_v5 = vld [vmem:[#allocation4 + $0x30] sm:$0xff]  ;;  %v5894_v9 = vld [vmem:[#allocation4 + $0x28] sm:$0xff] }
 0x233   : > { %v5904_v2 = vld [vmem:[#allocation4 + $0x78] sm:$0xff]  ;;  %2309 = vmatpush.bf16.msra.mxu0 %v5896_v1  ;;  %v5903_v6 = vld [vmem:[#allocation4 + $0x70] sm:$0xff]  ;;  %v5902_v10 = vld [vmem:[#allocation4 + $0x68] sm:$0xff] }
 0x234   : > { %v5912_v3 = vld [vmem:[#allocation4 + $0xb8] sm:$0xff]  ;;  %2398 = vmatpush.bf16.msra.mxu1 %v5904_v2  ;;  %v5911_v7 = vld [vmem:[#allocation4 + $0xb0] sm:$0xff]  ;;  %v5910_v11 = vld [vmem:[#allocation4 + $0xa8] sm:$0xff] }
 0x235   : > { %v5920_v4 = vld [vmem:[#allocation4 + $0xf8] sm:$0xff]  ;;  %2487 = vmatpush.bf16.msra.mxu2 %v5912_v3  ;;  %v5919_v8 = vld [vmem:[#allocation4 + $0xf0] sm:$0xff]  ;;  %v5918_v12 = vld [vmem:[#allocation4 + $0xe8] sm:$0xff] }
 0x236   : > { %2576 = vmatpush.bf16.msra.mxu3 %v5920_v4  ;;  %v5893_v13 = vld [vmem:[#allocation4 + $0x20] sm:$0xff]  ;;  %v5892_v17 = vld [vmem:[#allocation4 + $0x18] sm:$0xff]  ;;  %v5891_v21 = vld [vmem:[#allocation4 + $0x10] sm:$0xff] }
 0x237   : > { %2310 = vmatpush.bf16.msra.mxu0 %v5895_v5  ;;  %v5901_v14 = vld [vmem:[#allocation4 + $0x60] sm:$0xff]  ;;  %v5900_v18 = vld [vmem:[#allocation4 + $0x58] sm:$0xff]  ;;  %v5899_v22 = vld [vmem:[#allocation4 + $0x50] sm:$0xff] }
 0x238   : > { %2399 = vmatpush.bf16.msra.mxu1 %v5903_v6  ;;  %v5909_v15 = vld [vmem:[#allocation4 + $0xa0] sm:$0xff]  ;;  %v5908_v19 = vld [vmem:[#allocation4 + $0x98] sm:$0xff]  ;;  %v5907_v23 = vld [vmem:[#allocation4 + $0x90] sm:$0xff] }
 0x239   : > { %2488 = vmatpush.bf16.msra.mxu2 %v5911_v7  ;;  %v5917_v16 = vld [vmem:[#allocation4 + $0xe0] sm:$0xff]  ;;  %v5916_v20 = vld [vmem:[#allocation4 + $0xd8] sm:$0xff]  ;;  %v5915_v24 = vld [vmem:[#allocation4 + $0xd0] sm:$0xff] }
 0x23a   : > { %2577 = vmatpush.bf16.msra.mxu3 %v5919_v8  ;;  %v5890_v25 = vld [vmem:[#allocation4 + $0x8] sm:$0xff]  ;;  %v5889_v29 = vld [vmem:[#allocation4] sm:$0xff]  ;;  %v5827_v34 = vld [vmem:[%s6994_s5 + $0xc] sm:$0xf0] }
 0x23b   : > { %2311 = vmatpush.bf16.msra.mxu0 %v5894_v9  ;;  %v5898_v26 = vld [vmem:[#allocation4 + $0x48] sm:$0xff]  ;;  %v5897_v30 = vld [vmem:[#allocation4 + $0x40] sm:$0xff]  ;;  %v5049_v36 = vld [vmem:[%s6994_s5 + $0x10] sm:$0xf0] }
 0x23c   : > { %2400 = vmatpush.bf16.msra.mxu1 %v5902_v10  ;;  %v5906_v27 = vld [vmem:[#allocation4 + $0x88] sm:$0xff]  ;;  %v5905_v31 = vld [vmem:[#allocation4 + $0x80] sm:$0xff]  ;;  %v5828_v38 = vld [vmem:[%s6994_s5 + $0x14] sm:$0xf0] }
 0x23d   : > { %2489 = vmatpush.bf16.msra.mxu2 %v5910_v11  ;;  %v5914_v28 = vld [vmem:[#allocation4 + $0xc8] sm:$0xff]  ;;  %v5913_v32 = vld [vmem:[#allocation4 + $0xc0] sm:$0xff]  ;;  %v5057_v40 = vld [vmem:[%s6994_s5 + $0x18] sm:$0xf0] }
 0x23e   : > { %2578 = vmatpush.bf16.msra.mxu3 %v5918_v12  ;;  %v5047_v33 = vld [vmem:[%s6994_s5] sm:$0xf]  ;;  %v5825_v35 = vld [vmem:[%s6994_s5 + $0x4] sm:$0xf]  ;;  %v5055_v37 = vld [vmem:[%s6994_s5 + $0x8] sm:$0xf] }
 0x23f   : > { %2312 = vmatpush.bf16.msra.mxu0 %v5893_v13  ;;  %v5826_v39 = vld [vmem:[%s6994_s5 + $0xc] sm:$0xf]  ;;  %v5048_v41 = vor.u32 %v5827_v34, %v5047_v33  ;;  %v5052_v42 = vor.u32 %v5825_v35, %v5049_v36  ;;  %v5056_v43 = vor.u32 %v5828_v38, %v5055_v37  ;;  %v5063_v45 = vld [vmem:[%s6994_s5 + $0x20] sm:$0xf]  ;;  %v5831_v46 = vld [vmem:[%s6994_s5 + $0x2c] sm:$0xf0] }
 0x240   : > { %2401 = vmatpush.bf16.msra.mxu1 %v5901_v14  ;;  %v5060_v44 = vor.u32 %v5826_v39, %v5057_v40  ;;  %v5829_v47 = vld [vmem:[%s6994_s5 + $0x24] sm:$0xf]  ;;  %v5065_v48 = vld [vmem:[%s6994_s5 + $0x30] sm:$0xf0]  ;;  %v5071_v49 = vld [vmem:[%s6994_s5 + $0x28] sm:$0xf]  ;;  %v5064_v53 = vor.u32 %v5831_v46, %v5063_v45 }
 0x241   : > { %2490 = vmatpush.bf16.msra.mxu2 %v5909_v15  ;;  %v5832_v50 = vld [vmem:[%s6994_s5 + $0x34] sm:$0xf0]  ;;  %v5830_v51 = vld [vmem:[%s6994_s5 + $0x2c] sm:$0xf]  ;;  %v5073_v52 = vld [vmem:[%s6994_s5 + $0x38] sm:$0xf0]  ;;  %v5068_v54 = vor.u32 %v5829_v47, %v5065_v48 }
 0x242   : > { %2579 = vmatpush.bf16.msra.mxu3 %v5917_v16  ;;  %v5072_v55 = vor.u32 %v5832_v50, %v5071_v49  ;;  %v5076_v56 = vor.u32 %v5830_v51, %v5073_v52  ;;  %v5079_v57 = vld [vmem:[%s6994_s5 + $0x40] sm:$0xf]  ;;  %v5835_v58 = vld [vmem:[%s6994_s5 + $0x4c] sm:$0xf0]  ;;  %v5833_v59 = vld [vmem:[%s6994_s5 + $0x44] sm:$0xf] }
 0x243   : > { %2313 = vmatpush.bf16.msra.mxu0 %v5892_v17  ;;  %v5081_v60 = vld [vmem:[%s6994_s5 + $0x50] sm:$0xf0]  ;;  %v5087_v61 = vld [vmem:[%s6994_s5 + $0x48] sm:$0xf]  ;;  %v5836_v62 = vld [vmem:[%s6994_s5 + $0x54] sm:$0xf0]  ;;  %v5080_v1 = vor.u32 %v5835_v58, %v5079_v57 }
 0x244   : > { %2402 = vmatpush.bf16.msra.mxu1 %v5900_v18  ;;  %v5834_v63 = vld [vmem:[%s6994_s5 + $0x4c] sm:$0xf]  ;;  %v5089_v0 = vld [vmem:[%s6994_s5 + $0x58] sm:$0xf0]  ;;  %v5084_v2 = vor.u32 %v5833_v59, %v5081_v60  ;;  %v5088_v3 = vor.u32 %v5836_v62, %v5087_v61  ;;  %v5095_v5 = vld [vmem:[%s6994_s5 + $0x60] sm:$0xf] }
 0x245   : > { %2491 = vmatpush.bf16.msra.mxu2 %v5908_v19  ;;  %v5092_v4 = vor.u32 %v5834_v63, %v5089_v0  ;;  %v5839_v6 = vld [vmem:[%s6994_s5 + $0x6c] sm:$0xf0]  ;;  %v5837_v7 = vld [vmem:[%s6994_s5 + $0x64] sm:$0xf]  ;;  %v5097_v8 = vld [vmem:[%s6994_s5 + $0x70] sm:$0xf0] }
 0x246   : > { %2580 = vmatpush.bf16.msra.mxu3 %v5916_v20  ;;  %v5103_v9 = vld [vmem:[%s6994_s5 + $0x68] sm:$0xf]  ;;  %v5840_v10 = vld [vmem:[%s6994_s5 + $0x74] sm:$0xf0]  ;;  %v5838_v11 = vld [vmem:[%s6994_s5 + $0x6c] sm:$0xf]  ;;  %v5096_v13 = vor.u32 %v5839_v6, %v5095_v5  ;;  %v5100_v14 = vor.u32 %v5837_v7, %v5097_v8 }
 0x247   : > { %2314 = vmatpush.bf16.msra.mxu0 %v5891_v21  ;;  %v5105_v12 = vld [vmem:[%s6994_s5 + $0x78] sm:$0xf0]  ;;  %v5104_v15 = vor.u32 %v5840_v10, %v5103_v9  ;;  %v5111_v17 = vld [vmem:[%s6994_s5 + $0x80] sm:$0xf]  ;;  %v5843_v18 = vld [vmem:[%s6994_s5 + $0x8c] sm:$0xf0] }
 0x248   : > { %2403 = vmatpush.bf16.msra.mxu1 %v5899_v22  ;;  %v5108_v16 = vor.u32 %v5838_v11, %v5105_v12  ;;  %v5841_v19 = vld [vmem:[%s6994_s5 + $0x84] sm:$0xf]  ;;  %v5113_v20 = vld [vmem:[%s6994_s5 + $0x90] sm:$0xf0]  ;;  %v5119_v21 = vld [vmem:[%s6994_s5 + $0x88] sm:$0xf] }
 0x249   : > { %2492 = vmatpush.bf16.msra.mxu2 %v5907_v23  ;;  %v5844_v22 = vld [vmem:[%s6994_s5 + $0x94] sm:$0xf0]  ;;  %v5842_v23 = vld [vmem:[%s6994_s5 + $0x8c] sm:$0xf]  ;;  %v5135_v33 = vld [vmem:[%s6994_s5 + $0xa8] sm:$0xf] }
 0x24a   : > { %2581 = vmatpush.bf16.msra.mxu3 %v5915_v24  ;;  %v5121_v24 = vld [vmem:[%s6994_s5 + $0x98] sm:$0xf0]  ;;  %v5848_v34 = vld [vmem:[%s6994_s5 + $0xb4] sm:$0xf0]  ;;  %v5846_v35 = vld [vmem:[%s6994_s5 + $0xac] sm:$0xf] }
 0x24b   : > { %2315 = vmatpush.bf16.msra.mxu0 %v5890_v25  ;;  %v5112_v25 = vor.u32 %v5843_v18, %v5111_v17  ;;  %v5137_v36 = vld [vmem:[%s6994_s5 + $0xb8] sm:$0xf0]  ;;  %v5136_v39 = vor.u32 %v5848_v34, %v5135_v33  ;;  %v5151_v45 = vld [vmem:[%s6994_s5 + $0xc8] sm:$0xf]  ;;  %v5852_v46 = vld [vmem:[%s6994_s5 + $0xd4] sm:$0xf0] }
 0x24c   : > { %2404 = vmatpush.bf16.msra.mxu1 %v5898_v26  ;;  %v5116_v26 = vor.u32 %v5841_v19, %v5113_v20  ;;  %v5140_v40 = vor.u32 %v5846_v35, %v5137_v36  ;;  %v5850_v47 = vld [vmem:[%s6994_s5 + $0xcc] sm:$0xf]  ;;  %v5153_v48 = vld [vmem:[%s6994_s5 + $0xd8] sm:$0xf0]  ;;  %v5152_v51 = vor.u32 %v5852_v46, %v5151_v45  ;;  %v5167_v57 = vld [vmem:[%s6994_s5 + $0xe8] sm:$0xf] }
 0x24d   : > { %2493 = vmatpush.bf16.msra.mxu2 %v5906_v27  ;;  %v5120_v27 = vor.u32 %v5844_v22, %v5119_v21  ;;  %v5156_v52 = vor.u32 %v5850_v47, %v5153_v48  ;;  %v5856_v58 = vld [vmem:[%s6994_s5 + $0xf4] sm:$0xf0]  ;;  %v5854_v59 = vld [vmem:[%s6994_s5 + $0xec] sm:$0xf]  ;;  %v5169_v60 = vld [vmem:[%s6994_s5 + $0xf8] sm:$0xf0] }
 0x24e   : > { %2582 = vmatpush.bf16.msra.mxu3 %v5914_v28  ;;  %v5124_v28 = vor.u32 %v5842_v23, %v5121_v24  ;;  %v5168_v63 = vor.u32 %v5856_v58, %v5167_v57  ;;  %v5172_v0 = vor.u32 %v5854_v59, %v5169_v60  ;;  %v5183_v5 = vld [vmem:[%s6994_s5 + $0x108] sm:$0xf]  ;;  %v5860_v6 = vld [vmem:[%s6994_s5 + $0x114] sm:$0xf0]  ;;  %v5858_v7 = vld [vmem:[%s6994_s5 + $0x10c] sm:$0xf] }
 0x24f   : > { %2316 = vmatpush.bf16.msra.mxu0 %v5889_v29  ;;  %v5127_v29 = vld [vmem:[%s6994_s5 + $0xa0] sm:$0xf]  ;;  %v5185_v8 = vld [vmem:[%s6994_s5 + $0x118] sm:$0xf0]  ;;  %v1633_v21 = vld [vmem:[#allocation2 + $0xb0] sm:$0xff] }
 0x250   : > { %2405 = vmatpush.bf16.msra.mxu1 %v5897_v30  ;;  %v5847_v30 = vld [vmem:[%s6994_s5 + $0xac] sm:$0xf0]  ;;  %v5191_v23 = vld [vmem:[%s6994_s5 + $0x120] sm:$0xf]  ;;  %v5209_v57 = vld [vmem:[%s6994_s5 + $0x150] sm:$0xf0] }
 0x251   : > { %2494 = vmatpush.bf16.msra.mxu2 %v5905_v31  ;;  %v5845_v31 = vld [vmem:[%s6994_s5 + $0xa4] sm:$0xf]  ;;  %v5128_v37 = vor.u32 %v5847_v30, %v5127_v29  ;;  %v5863_v24 = vld [vmem:[%s6994_s5 + $0x12c] sm:$0xf0]  ;;  %v5864_v29 = vld [vmem:[%s6994_s5 + $0x134] sm:$0xf0] }
 0x252   : > { %2583 = vmatpush.bf16.msra.mxu3 %v5913_v32  ;;  %2317 = vmatmul.bf16.vlgmr.msra.gmra.mxu0 %v5048_v41  ;;  %v5129_v32 = vld [vmem:[%s6994_s5 + $0xb0] sm:$0xf0]  ;;  %v5143_v41 = vld [vmem:[%s6994_s5 + $0xc0] sm:$0xf]  ;;  %v5862_v30 = vld [vmem:[%s6994_s5 + $0x12c] sm:$0xf]  ;;  %v5192_v35 = vor.u32 %v5863_v24, %v5191_v23 }
 0x253   : > { %2406 = vmatmul.bf16.vlgmr.msra.gmra.mxu1 %v5052_v42  ;;  %v5132_v38 = vor.u32 %v5845_v31, %v5129_v32  ;;  %v5851_v42 = vld [vmem:[%s6994_s5 + $0xcc] sm:$0xf0]  ;;  %v5201_v31 = vld [vmem:[%s6994_s5 + $0x138] sm:$0xf0]  ;;  %v5215_v58 = vld [vmem:[%s6994_s5 + $0x148] sm:$0xf] }
 0x254   : > { %2495 = vmatmul.bf16.vlgmr.msra.gmra.mxu2 %v5056_v43  ;;  %v5849_v43 = vld [vmem:[%s6994_s5 + $0xc4] sm:$0xf]  ;;  %v5144_v49 = vor.u32 %v5851_v42, %v5143_v41  ;;  %v5204_v41 = vor.u32 %v5862_v30, %v5201_v31  ;;  %v5868_v59 = vld [vmem:[%s6994_s5 + $0x154] sm:$0xf0]  ;;  %v5866_v60 = vld [vmem:[%s6994_s5 + $0x14c] sm:$0xf] }
 0x255   : > { %2584 = vmatmul.bf16.vlgmr.msra.gmra.mxu3 %v5060_v44  ;;  %v5145_v44 = vld [vmem:[%s6994_s5 + $0xd0] sm:$0xf0]  ;;  %v1634_v42 = vld [vmem:[#allocation2] sm:$0xff]  ;;  %v5231_v24 = vld [vmem:[%s6994_s5 + $0x168] sm:$0xf] }
 0x256   : > { %v5148_v50 = vor.u32 %v5849_v43, %v5145_v44  ;;  %v5225_v23 = vld [vmem:[%s6994_s5 + $0x170] sm:$0xf0] }
 0x262   : > { %2322 = vmatmul.bf16.gmra.mxu0 %v5064_v53  ;;  %v5159_v53 = vld [vmem:[%s6994_s5 + $0xe0] sm:$0xf] }
 0x263   : > { %2411 = vmatmul.bf16.gmra.mxu1 %v5068_v54  ;;  %v5855_v54 = vld [vmem:[%s6994_s5 + $0xec] sm:$0xf0] }
 0x264   : > { %2500 = vmatmul.bf16.gmra.mxu2 %v5072_v55  ;;  %v5853_v55 = vld [vmem:[%s6994_s5 + $0xe4] sm:$0xf]  ;;  %v5160_v61 = vor.u32 %v5855_v54, %v5159_v53  ;;  %v5207_v53 = vld [vmem:[%s6994_s5 + $0x140] sm:$0xf]  ;;  %v5867_v54 = vld [vmem:[%s6994_s5 + $0x14c] sm:$0xf0] }
 0x265   : > { %2589 = vmatmul.bf16.gmra.mxu3 %v5076_v56  ;;  %v5161_v56 = vld [vmem:[%s6994_s5 + $0xf0] sm:$0xf0] }
 0x266   : > { %v5164_v62 = vor.u32 %v5853_v55, %v5161_v56  ;;  %v5865_v56 = vld [vmem:[%s6994_s5 + $0x144] sm:$0xf] }
 0x272   : > { %2327 = vmatmul.bf16.gmra.mxu0 %v5080_v1  ;;  %v5175_v1 = vld [vmem:[%s6994_s5 + $0x100] sm:$0xf] }
 0x273   : > { %2416 = vmatmul.bf16.gmra.mxu1 %v5084_v2  ;;  %v5859_v2 = vld [vmem:[%s6994_s5 + $0x10c] sm:$0xf0] }
 0x274   : > { %2505 = vmatmul.bf16.gmra.mxu2 %v5088_v3  ;;  %v5857_v3 = vld [vmem:[%s6994_s5 + $0x104] sm:$0xf]  ;;  %v5176_v9 = vor.u32 %v5859_v2, %v5175_v1  ;;  %v5208_v1 = vor.u32 %v5867_v54, %v5207_v53  ;;  %v5212_v2 = vor.u32 %v5865_v56, %v5209_v57  ;;  %v5241_v53 = vld [vmem:[%s6994_s5 + $0x190] sm:$0xf0]  ;;  %v5247_v54 = vld [vmem:[%s6994_s5 + $0x188] sm:$0xf] }
 0x275   : > { %2594 = vmatmul.bf16.gmra.mxu3 %v5092_v4  ;;  %v5177_v4 = vld [vmem:[%s6994_s5 + $0x110] sm:$0xf0]  ;;  %v5874_v56 = vld [vmem:[%s6994_s5 + $0x18c] sm:$0xf]  ;;  %v5249_v57 = vld [vmem:[%s6994_s5 + $0x198] sm:$0xf0] }
 0x276   : > { %v5180_v10 = vor.u32 %v5857_v3, %v5177_v4 }
 0x282   : > { %2332 = vmatmul.bf16.gmra.mxu0 %v5096_v13  ;;  %v5184_v13 = vor.u32 %v5860_v6, %v5183_v5  ;;  %v5216_v6 = vor.u32 %v5868_v59, %v5215_v58 }
 0x283   : > { %2421 = vmatmul.bf16.gmra.mxu1 %v5100_v14  ;;  %v5188_v14 = vor.u32 %v5858_v7, %v5185_v8  ;;  %v1636_v8 = vld [vmem:[#allocation2 + $0x18] sm:$0xff] }
 0x284   : > { %2510 = vmatmul.bf16.gmra.mxu2 %v5104_v15 }
 0x285   : > { %2599 = vmatmul.bf16.gmra.mxu3 %v5108_v16 }
 0x292   : > { %2337 = vmatmul.bf16.gmra.mxu0 %v5112_v25 }
 0x293   : > { %2426 = vmatmul.bf16.gmra.mxu1 %v5116_v26  ;;  %v5861_v26 = vld [vmem:[%s6994_s5 + $0x124] sm:$0xf] }
 0x294   : > { %2515 = vmatmul.bf16.gmra.mxu2 %v5120_v27  ;;  %v5193_v27 = vld [vmem:[%s6994_s5 + $0x130] sm:$0xf0] }
 0x295   : > { %2604 = vmatmul.bf16.gmra.mxu3 %v5124_v28  ;;  %v5199_v28 = vld [vmem:[%s6994_s5 + $0x128] sm:$0xf]  ;;  %v5196_v36 = vor.u32 %v5861_v26, %v5193_v27  ;;  %v5870_v26 = vld [vmem:[%s6994_s5 + $0x16c] sm:$0xf]  ;;  %v5233_v27 = vld [vmem:[%s6994_s5 + $0x178] sm:$0xf0] }
 0x2a2   : > { %2342 = vmatmul.bf16.gmra.mxu0 %v5128_v37 }
 0x2a3   : > { %2431 = vmatmul.bf16.gmra.mxu1 %v5132_v38 }
 0x2a4   : > { %2520 = vmatmul.bf16.gmra.mxu2 %v5136_v39 }
 0x2a5   : > { %2609 = vmatmul.bf16.gmra.mxu3 %v5140_v40  ;;  %v5200_v40 = vor.u32 %v5864_v29, %v5199_v28 }
 0x2b2   : > { %2347 = vmatmul.bf16.gmra.mxu0 %v5144_v49 }
 0x2b3   : > { %2436 = vmatmul.bf16.gmra.mxu1 %v5148_v50 }
 0x2b4   : > { %2525 = vmatmul.bf16.gmra.mxu2 %v5152_v51  ;;  %v1635_v51 = vld [vmem:[#allocation2 + $0xd8] sm:$0xff] }
 0x2b5   : > { %2614 = vmatmul.bf16.gmra.mxu3 %v5156_v52 }
 0x2c2   : > { %2352 = vmatmul.bf16.gmra.mxu0 %v5160_v61  ;;  %v5217_v61 = vld [vmem:[%s6994_s5 + $0x158] sm:$0xf0] }
 0x2c3   : > { %2441 = vmatmul.bf16.gmra.mxu1 %v5164_v62  ;;  %v5220_v7 = vor.u32 %v5866_v60, %v5217_v61 }
 0x2c4   : > { %2530 = vmatmul.bf16.gmra.mxu2 %v5168_v63 }
 0x2c5   : > { %2619 = vmatmul.bf16.gmra.mxu3 %v5172_v0 }
 0x2cf   : > { %v2318_v11 = vpop.f32.mrf.mxu0 }
 0x2d0   : > { %v2407_v12 = vpop.f32.mrf.mxu1 }
 0x2d1   : > { %v2408_v15 = vadd.f32 %v2407_v12, %v2318_v11 }
 0x2d2   : > { %2357 = vmatmul.bf16.gmra.mxu0 %v5176_v9 }
 0x2d3   : > { %2446 = vmatmul.bf16.gmra.mxu1 %v5180_v10 }
 0x2d4   : > { %2535 = vmatmul.bf16.gmra.mxu2 %v5184_v13 }
 0x2d5   : > { %2624 = vmatmul.bf16.gmra.mxu3 %v5188_v14 }
 0x2d7   : > { %v2496_v16 = vpop.f32.mrf.mxu2  ;;  %v2320_v19 = vpop.f32.mrf.mxu0 }
 0x2d8   : > { %v2585_v17 = vpop.f32.mrf.mxu3  ;;  %v2497_v18 = vadd.f32 %v2496_v16, %v2408_v15  ;;  %v2409_v20 = vpop.f32.mrf.mxu1 }
 0x2d9   : > { %v2410_v32 = vadd.f32 %v2409_v20, %v2320_v19  ;;  %v5223_v19 = vld [vmem:[%s6994_s5 + $0x160] sm:$0xf]  ;;  %v5871_v20 = vld [vmem:[%s6994_s5 + $0x16c] sm:$0xf0] }
 0x2da   : > { %v2586_v22 = vadd.f32 %v2585_v17, %v2497_v18  ;;  %v1637_v17 = vld [vmem:[#allocation2 + $0x50] sm:$0xff]  ;;  %v5224_v31 = vor.u32 %v5871_v20, %v5223_v19  ;;  %v5263_v20 = vld [vmem:[%s6994_s5 + $0x1a8] sm:$0xf] }
 0x2db   : > { %v5257_v19 = vld [vmem:[%s6994_s5 + $0x1b0] sm:$0xf0] }
 0x2dc   : > { %v2665_v25 = vadd.f32 %v2586_v22, %v1633_v21  ;;  %v5869_v22 = vld [vmem:[%s6994_s5 + $0x164] sm:$0xf] }
 0x2de   : > { %2697 = vst [vmem:[#allocation2 + $0xb0] sm:$0xff] %v2665_v25  ;;  %v5872_v25 = vld [vmem:[%s6994_s5 + $0x174] sm:$0xf0] }
 0x2df   : > { %v2498_v33 = vpop.f32.mrf.mxu2  ;;  %v2323_v38 = vpop.f32.mrf.mxu0 }
 0x2e0   : > { %v2587_v34 = vpop.f32.mrf.mxu3  ;;  %v2499_v37 = vadd.f32 %v2498_v33, %v2410_v32  ;;  %v2412_v39 = vpop.f32.mrf.mxu1  ;;  %v5228_v32 = vor.u32 %v5869_v22, %v5225_v23  ;;  %v5878_v22 = vld [vmem:[%s6994_s5 + $0x1ac] sm:$0xf]  ;;  %v5265_v23 = vld [vmem:[%s6994_s5 + $0x1b8] sm:$0xf0] }
 0x2e1   : > { %v2413_v45 = vadd.f32 %v2412_v39, %v2323_v38  ;;  %v1638_v38 = vld [vmem:[#allocation2 + $0x68] sm:$0xff] }
 0x2e2   : > { %v2588_v43 = vadd.f32 %v2587_v34, %v2499_v37  ;;  %2362 = vmatmul.bf16.gmra.mxu0 %v5192_v35  ;;  %v5236_v37 = vor.u32 %v5870_v26, %v5233_v27 }
 0x2e3   : > { %2451 = vmatmul.bf16.gmra.mxu1 %v5196_v36  ;;  %v5232_v36 = vor.u32 %v5872_v25, %v5231_v24 }
 0x2e4   : > { %v2666_v44 = vadd.f32 %v2588_v43, %v1634_v42  ;;  %2540 = vmatmul.bf16.gmra.mxu2 %v5200_v40 }
 0x2e5   : > { %2629 = vmatmul.bf16.gmra.mxu3 %v5204_v41 }
 0x2e6   : > { %2698 = vst [vmem:[#allocation2] sm:$0xff] %v2666_v44 }
 0x2e7   : > { %v2501_v46 = vpop.f32.mrf.mxu2  ;;  %v2325_v49 = vpop.f32.mrf.mxu0 }
 0x2e8   : > { %v2590_v47 = vpop.f32.mrf.mxu3  ;;  %v2502_v48 = vadd.f32 %v2501_v46, %v2413_v45  ;;  %v2414_v50 = vpop.f32.mrf.mxu1 }
 0x2e9   : > { %v2415_v62 = vadd.f32 %v2414_v50, %v2325_v49  ;;  %v5239_v49 = vld [vmem:[%s6994_s5 + $0x180] sm:$0xf]  ;;  %v5875_v50 = vld [vmem:[%s6994_s5 + $0x18c] sm:$0xf0] }
 0x2ea   : > { %v2591_v52 = vadd.f32 %v2590_v47, %v2502_v48  ;;  %v1639_v47 = vld [vmem:[#allocation2 + $0x30] sm:$0xff]  ;;  %v5240_v61 = vor.u32 %v5875_v50, %v5239_v49  ;;  %v5279_v50 = vld [vmem:[%s6994_s5 + $0x1c8] sm:$0xf] }
 0x2eb   : > { %v5273_v49 = vld [vmem:[%s6994_s5 + $0x1d0] sm:$0xf0] }
 0x2ec   : > { %v2667_v55 = vadd.f32 %v2591_v52, %v1635_v51  ;;  %v5873_v52 = vld [vmem:[%s6994_s5 + $0x184] sm:$0xf] }
 0x2ee   : > { %2699 = vst [vmem:[#allocation2 + $0xd8] sm:$0xff] %v2667_v55  ;;  %v5876_v55 = vld [vmem:[%s6994_s5 + $0x194] sm:$0xf0] }
 0x2ef   : > { %v2503_v63 = vpop.f32.mrf.mxu2  ;;  %v2328_v4 = vpop.f32.mrf.mxu0 }
 0x2f0   : > { %v2592_v0 = vpop.f32.mrf.mxu3  ;;  %v2504_v3 = vadd.f32 %v2503_v63, %v2415_v62  ;;  %v2417_v5 = vpop.f32.mrf.mxu1  ;;  %v5244_v62 = vor.u32 %v5873_v52, %v5241_v53  ;;  %v5882_v52 = vld [vmem:[%s6994_s5 + $0x1cc] sm:$0xf]  ;;  %v5281_v53 = vld [vmem:[%s6994_s5 + $0x1d8] sm:$0xf0] }
 0x2f1   : > { %v2418_v11 = vadd.f32 %v2417_v5, %v2328_v4  ;;  %v1640_v4 = vld [vmem:[#allocation2 + $0x48] sm:$0xff] }
 0x2f2   : > { %v2593_v9 = vadd.f32 %v2592_v0, %v2504_v3  ;;  %2367 = vmatmul.bf16.gmra.mxu0 %v5208_v1  ;;  %v5252_v3 = vor.u32 %v5874_v56, %v5249_v57 }
 0x2f3   : > { %2456 = vmatmul.bf16.gmra.mxu1 %v5212_v2  ;;  %v5248_v2 = vor.u32 %v5876_v55, %v5247_v54 }
 0x2f4   : > { %v2668_v10 = vadd.f32 %v2593_v9, %v1636_v8  ;;  %2545 = vmatmul.bf16.gmra.mxu2 %v5216_v6 }
 0x2f5   : > { %2634 = vmatmul.bf16.gmra.mxu3 %v5220_v7 }
 0x2f6   : > { %2700 = vst [vmem:[#allocation2 + $0x18] sm:$0xff] %v2668_v10 }
 0x2f7   : > { %v2506_v12 = vpop.f32.mrf.mxu2  ;;  %v2330_v15 = vpop.f32.mrf.mxu0 }
 0x2f8   : > { %v2595_v13 = vpop.f32.mrf.mxu3  ;;  %v2507_v14 = vadd.f32 %v2506_v12, %v2418_v11  ;;  %v2419_v16 = vpop.f32.mrf.mxu1 }
 0x2f9   : > { %v2420_v28 = vadd.f32 %v2419_v16, %v2330_v15  ;;  %v5255_v15 = vld [vmem:[%s6994_s5 + $0x1a0] sm:$0xf]  ;;  %v5879_v16 = vld [vmem:[%s6994_s5 + $0x1ac] sm:$0xf0] }
 0x2fa   : > { %v2596_v18 = vadd.f32 %v2595_v13, %v2507_v14  ;;  %v1641_v13 = vld [vmem:[#allocation2 + $0x80] sm:$0xff]  ;;  %v5256_v27 = vor.u32 %v5879_v16, %v5255_v15  ;;  %v5289_v15 = vld [vmem:[%s6994_s5 + $0x1f0] sm:$0xf0]  ;;  %v5295_v16 = vld [vmem:[%s6994_s5 + $0x1e8] sm:$0xf] }
 0x2fc   : > { %v2669_v21 = vadd.f32 %v2596_v18, %v1637_v17  ;;  %v5877_v18 = vld [vmem:[%s6994_s5 + $0x1a4] sm:$0xf] }
 0x2fe   : > { %2701 = vst [vmem:[#allocation2 + $0x50] sm:$0xff] %v2669_v21  ;;  %v5880_v21 = vld [vmem:[%s6994_s5 + $0x1b4] sm:$0xf0] }
 0x2ff   : > { %v2508_v29 = vpop.f32.mrf.mxu2  ;;  %v2333_v34 = vpop.f32.mrf.mxu0 }
 0x300   : > { %v2597_v30 = vpop.f32.mrf.mxu3  ;;  %v2509_v33 = vadd.f32 %v2508_v29, %v2420_v28  ;;  %v2422_v35 = vpop.f32.mrf.mxu1  ;;  %v5260_v28 = vor.u32 %v5877_v18, %v5257_v19  ;;  %v5886_v18 = vld [vmem:[%s6994_s5 + $0x1ec] sm:$0xf]  ;;  %v5297_v19 = vld [vmem:[%s6994_s5 + $0x1f8] sm:$0xf0] }
 0x301   : > { %v2423_v41 = vadd.f32 %v2422_v35, %v2333_v34  ;;  %v1642_v34 = vld [vmem:[#allocation2 + $0x88] sm:$0xff] }
 0x302   : > { %v2598_v39 = vadd.f32 %v2597_v30, %v2509_v33  ;;  %2372 = vmatmul.bf16.gmra.mxu0 %v5224_v31  ;;  %v5268_v33 = vor.u32 %v5878_v22, %v5265_v23 }
 0x303   : > { %2461 = vmatmul.bf16.gmra.mxu1 %v5228_v32  ;;  %v5264_v32 = vor.u32 %v5880_v21, %v5263_v20 }
 0x304   : > { %v2670_v40 = vadd.f32 %v2598_v39, %v1638_v38  ;;  %2550 = vmatmul.bf16.gmra.mxu2 %v5232_v36 }
 0x305   : > { %2639 = vmatmul.bf16.gmra.mxu3 %v5236_v37 }
 0x306   : > { %2702 = vst [vmem:[#allocation2 + $0x68] sm:$0xff] %v2670_v40 }
 0x307   : > { %v2511_v42 = vpop.f32.mrf.mxu2  ;;  %v2335_v45 = vpop.f32.mrf.mxu0 }
 0x308   : > { %v2600_v43 = vpop.f32.mrf.mxu3  ;;  %v2512_v44 = vadd.f32 %v2511_v42, %v2423_v41  ;;  %v2424_v46 = vpop.f32.mrf.mxu1 }
 0x309   : > { %v2425_v58 = vadd.f32 %v2424_v46, %v2335_v45  ;;  %v5271_v45 = vld [vmem:[%s6994_s5 + $0x1c0] sm:$0xf]  ;;  %v5883_v46 = vld [vmem:[%s6994_s5 + $0x1cc] sm:$0xf0] }
 0x30a   : > { %v2601_v48 = vadd.f32 %v2600_v43, %v2512_v44  ;;  %v1643_v43 = vld [vmem:[#allocation2 + $0xe8] sm:$0xff]  ;;  %v5272_v57 = vor.u32 %v5883_v46, %v5271_v45 }
 0x30c   : > { %v2671_v51 = vadd.f32 %v2601_v48, %v1639_v47  ;;  %v5881_v48 = vld [vmem:[%s6994_s5 + $0x1c4] sm:$0xf] }
 0x30e   : > { %2703 = vst [vmem:[#allocation2 + $0x30] sm:$0xff] %v2671_v51  ;;  %v5884_v51 = vld [vmem:[%s6994_s5 + $0x1d4] sm:$0xf0] }
 0x30f   : > { %v2513_v59 = vpop.f32.mrf.mxu2  ;;  %v2338_v0 = vpop.f32.mrf.mxu0 }
 0x310   : > { %v2602_v60 = vpop.f32.mrf.mxu3  ;;  %v2514_v63 = vadd.f32 %v2513_v59, %v2425_v58  ;;  %v2427_v1 = vpop.f32.mrf.mxu1  ;;  %v5276_v58 = vor.u32 %v5881_v48, %v5273_v49  ;;  %v1648_v48 = vld [vmem:[#allocation2 + $0x78] sm:$0xff] }
 0x311   : > { %v2428_v7 = vadd.f32 %v2427_v1, %v2338_v0  ;;  %v1644_v0 = vld [vmem:[#allocation2 + $0xb8] sm:$0xff] }
 0x312   : > { %v2603_v5 = vadd.f32 %v2602_v60, %v2514_v63  ;;  %2377 = vmatmul.bf16.gmra.mxu0 %v5240_v61  ;;  %v5284_v63 = vor.u32 %v5882_v52, %v5281_v53 }
 0x313   : > { %2466 = vmatmul.bf16.gmra.mxu1 %v5244_v62  ;;  %v5280_v62 = vor.u32 %v5884_v51, %v5279_v50 }
 0x314   : > { %v2672_v6 = vadd.f32 %v2603_v5, %v1640_v4  ;;  %2555 = vmatmul.bf16.gmra.mxu2 %v5248_v2 }
 0x315   : > { %2644 = vmatmul.bf16.gmra.mxu3 %v5252_v3 }
 0x316   : > { %2704 = vst [vmem:[#allocation2 + $0x48] sm:$0xff] %v2672_v6 }
 0x317   : > { %v2516_v8 = vpop.f32.mrf.mxu2  ;;  %v2340_v11 = vpop.f32.mrf.mxu0 }
 0x318   : > { %v2605_v9 = vpop.f32.mrf.mxu3  ;;  %v2517_v10 = vadd.f32 %v2516_v8, %v2428_v7  ;;  %v2429_v12 = vpop.f32.mrf.mxu1 }
 0x319   : > { %v2430_v24 = vadd.f32 %v2429_v12, %v2340_v11  ;;  %v5287_v11 = vld [vmem:[%s6994_s5 + $0x1e0] sm:$0xf]  ;;  %v5887_v12 = vld [vmem:[%s6994_s5 + $0x1ec] sm:$0xf0] }
 0x31a   : > { %v2606_v14 = vadd.f32 %v2605_v9, %v2517_v10  ;;  %v1645_v9 = vld [vmem:[#allocation2 + $0x60] sm:$0xff]  ;;  %v5288_v23 = vor.u32 %v5887_v12, %v5287_v11 }
 0x31b   : > { %v1651_v11 = vld [vmem:[#allocation2 + $0x40] sm:$0xff] }
 0x31c   : > { %v2673_v17 = vadd.f32 %v2606_v14, %v1641_v13  ;;  %v5885_v14 = vld [vmem:[%s6994_s5 + $0x1e4] sm:$0xf] }
 0x31e   : > { %2705 = vst [vmem:[#allocation2 + $0x80] sm:$0xff] %v2673_v17  ;;  %v5888_v17 = vld [vmem:[%s6994_s5 + $0x1f4] sm:$0xf0] }
 0x31f   : > { %v2518_v25 = vpop.f32.mrf.mxu2  ;;  %v2343_v30 = vpop.f32.mrf.mxu0 }
 0x320   : > { %v2607_v26 = vpop.f32.mrf.mxu3  ;;  %v2519_v29 = vadd.f32 %v2518_v25, %v2430_v24  ;;  %v2432_v31 = vpop.f32.mrf.mxu1  ;;  %v5292_v24 = vor.u32 %v5885_v14, %v5289_v15 }
 0x321   : > { %v2433_v37 = vadd.f32 %v2432_v31, %v2343_v30  ;;  %v1646_v30 = vld [vmem:[#allocation2 + $0xf0] sm:$0xff] }
 0x322   : > { %v2608_v35 = vadd.f32 %v2607_v26, %v2519_v29  ;;  %2382 = vmatmul.bf16.gmra.mxu0 %v5256_v27  ;;  %v5300_v29 = vor.u32 %v5886_v18, %v5297_v19 }
 0x323   : > { %2471 = vmatmul.bf16.gmra.mxu1 %v5260_v28  ;;  %v5296_v28 = vor.u32 %v5888_v17, %v5295_v16 }
 0x324   : > { %v2674_v36 = vadd.f32 %v2608_v35, %v1642_v34  ;;  %2560 = vmatmul.bf16.gmra.mxu2 %v5264_v32 }
 0x325   : > { %2649 = vmatmul.bf16.gmra.mxu3 %v5268_v33 }
 0x326   : > { %2706 = vst [vmem:[#allocation2 + $0x88] sm:$0xff] %v2674_v36 }
 0x327   : > { %v2521_v38 = vpop.f32.mrf.mxu2  ;;  %v2345_v41 = vpop.f32.mrf.mxu0 }
 0x328   : > { %v2610_v39 = vpop.f32.mrf.mxu3  ;;  %v2522_v40 = vadd.f32 %v2521_v38, %v2433_v37  ;;  %v2434_v42 = vpop.f32.mrf.mxu1 }
 0x329   : > { %v2435_v54 = vadd.f32 %v2434_v42, %v2345_v41 }
 0x32a   : > { %v2611_v44 = vadd.f32 %v2610_v39, %v2522_v40  ;;  %v1647_v39 = vld [vmem:[#allocation2 + $0x8] sm:$0xff] }
 0x32c   : > { %v2675_v47 = vadd.f32 %v2611_v44, %v1643_v43 }
 0x32e   : > { %2707 = vst [vmem:[#allocation2 + $0xe8] sm:$0xff] %v2675_v47 }
 0x32f   : > { %v2523_v55 = vpop.f32.mrf.mxu2  ;;  %v2348_v60 = vpop.f32.mrf.mxu0 }
 0x330   : > { %v2612_v56 = vpop.f32.mrf.mxu3  ;;  %v2524_v59 = vadd.f32 %v2523_v55, %v2435_v54  ;;  %v2437_v61 = vpop.f32.mrf.mxu1 }
 0x331   : > { %v2438_v3 = vadd.f32 %v2437_v61, %v2348_v60 }
 0x332   : > { %v2613_v1 = vadd.f32 %v2612_v56, %v2524_v59  ;;  %2387 = vmatmul.bf16.gmra.mxu0 %v5272_v57  ;;  %v1649_v57 = vld [vmem:[#allocation2 + $0x38] sm:$0xff] }
 0x333   : > { %2476 = vmatmul.bf16.gmra.mxu1 %v5276_v58 }
 0x334   : > { %v2676_v2 = vadd.f32 %v2613_v1, %v1644_v0  ;;  %2565 = vmatmul.bf16.gmra.mxu2 %v5280_v62 }
 0x335   : > { %2654 = vmatmul.bf16.gmra.mxu3 %v5284_v63 }
 0x336   : > { %2708 = vst [vmem:[#allocation2 + $0xb8] sm:$0xff] %v2676_v2  ;;  %v1650_v2 = vld [vmem:[#allocation2 + $0x58] sm:$0xff] }
 0x337   : > { %v2526_v4 = vpop.f32.mrf.mxu2  ;;  %v2350_v7 = vpop.f32.mrf.mxu0 }
 0x338   : > { %v2615_v5 = vpop.f32.mrf.mxu3  ;;  %v2527_v6 = vadd.f32 %v2526_v4, %v2438_v3  ;;  %v2439_v8 = vpop.f32.mrf.mxu1 }
 0x339   : > { %v2440_v20 = vadd.f32 %v2439_v8, %v2350_v7 }
 0x33a   : > { %v2616_v10 = vadd.f32 %v2615_v5, %v2527_v6 }
 0x33c   : > { %v2677_v13 = vadd.f32 %v2616_v10, %v1645_v9 }
 0x33e   : > { %2709 = vst [vmem:[#allocation2 + $0x60] sm:$0xff] %v2677_v13 }
 0x33f   : > { %v2528_v21 = vpop.f32.mrf.mxu2  ;;  %v2353_v26 = vpop.f32.mrf.mxu0 }
 0x340   : > { %v2617_v22 = vpop.f32.mrf.mxu3  ;;  %v2529_v25 = vadd.f32 %v2528_v21, %v2440_v20  ;;  %v2442_v27 = vpop.f32.mrf.mxu1  ;;  %v1652_v20 = vld [vmem:[#allocation2 + $0xc8] sm:$0xff] }
 0x341   : > { %v2443_v33 = vadd.f32 %v2442_v27, %v2353_v26 }
 0x342   : > { %v2618_v31 = vadd.f32 %v2617_v22, %v2529_v25  ;;  %2392 = vmatmul.bf16.gmra.mxu0 %v5288_v23 }
 0x343   : > { %2481 = vmatmul.bf16.gmra.mxu1 %v5292_v24 }
 0x344   : > { %v2678_v32 = vadd.f32 %v2618_v31, %v1646_v30  ;;  %2570 = vmatmul.bf16.gmra.mxu2 %v5296_v28 }
 0x345   : > { %2659 = vmatmul.bf16.gmra.mxu3 %v5300_v29  ;;  %v1653_v29 = vld [vmem:[#allocation2 + $0xe0] sm:$0xff] }
 0x346   : > { %2710 = vst [vmem:[#allocation2 + $0xf0] sm:$0xff] %v2678_v32 }
 0x347   : > { %v2531_v34 = vpop.f32.mrf.mxu2  ;;  %v2355_v37 = vpop.f32.mrf.mxu0 }
 0x348   : > { %v2620_v35 = vpop.f32.mrf.mxu3  ;;  %v2532_v36 = vadd.f32 %v2531_v34, %v2443_v33  ;;  %v2444_v38 = vpop.f32.mrf.mxu1 }
 0x349   : > { %v2445_v42 = vadd.f32 %v2444_v38, %v2355_v37  ;;  %v1654_v38 = vld [vmem:[#allocation2 + $0x90] sm:$0xff] }
 0x34a   : > { %v2621_v40 = vadd.f32 %v2620_v35, %v2532_v36 }
 0x34c   : > { %v2679_v41 = vadd.f32 %v2621_v40, %v1647_v39 }
 0x34e   : > { %2711 = vst [vmem:[#allocation2 + $0x8] sm:$0xff] %v2679_v41 }
 0x34f   : > { %v2533_v43 = vpop.f32.mrf.mxu2  ;;  %v2358_v46 = vpop.f32.mrf.mxu0 }
 0x350   : > { %v2622_v44 = vpop.f32.mrf.mxu3  ;;  %v2534_v45 = vadd.f32 %v2533_v43, %v2445_v42  ;;  %v2447_v47 = vpop.f32.mrf.mxu1 }
 0x351   : > { %v2448_v51 = vadd.f32 %v2447_v47, %v2358_v46  ;;  %v1655_v47 = vld [vmem:[#allocation2 + $0x70] sm:$0xff] }
 0x352   : > { %v2623_v49 = vadd.f32 %v2622_v44, %v2534_v45 }
 0x354   : > { %v2680_v50 = vadd.f32 %v2623_v49, %v1648_v48 }
 0x356   : > { %2712 = vst [vmem:[#allocation2 + $0x78] sm:$0xff] %v2680_v50 }
 0x357   : > { %v2536_v52 = vpop.f32.mrf.mxu2  ;;  %v2360_v55 = vpop.f32.mrf.mxu0 }
 0x358   : > { %v2625_v53 = vpop.f32.mrf.mxu3  ;;  %v2537_v54 = vadd.f32 %v2536_v52, %v2448_v51  ;;  %v2449_v56 = vpop.f32.mrf.mxu1 }
 0x359   : > { %v2450_v60 = vadd.f32 %v2449_v56, %v2360_v55  ;;  %v1656_v56 = vld [vmem:[#allocation2 + $0xc0] sm:$0xff] }
 0x35a   : > { %v2626_v58 = vadd.f32 %v2625_v53, %v2537_v54 }
 0x35c   : > { %v2681_v59 = vadd.f32 %v2626_v58, %v1649_v57 }
 0x35e   : > { %2713 = vst [vmem:[#allocation2 + $0x38] sm:$0xff] %v2681_v59 }
 0x35f   : > { %v2538_v61 = vpop.f32.mrf.mxu2  ;;  %v2363_v0 = vpop.f32.mrf.mxu0 }
 0x360   : > { %v2627_v62 = vpop.f32.mrf.mxu3  ;;  %v2539_v63 = vadd.f32 %v2538_v61, %v2450_v60  ;;  %v2452_v1 = vpop.f32.mrf.mxu1 }
 0x361   : > { %v2453_v5 = vadd.f32 %v2452_v1, %v2363_v0  ;;  %v1657_v1 = vld [vmem:[#allocation2 + $0xa8] sm:$0xff] }
 0x362   : > { %v2628_v3 = vadd.f32 %v2627_v62, %v2539_v63 }
 0x364   : > { %v2682_v4 = vadd.f32 %v2628_v3, %v1650_v2 }
 0x366   : > { %2714 = vst [vmem:[#allocation2 + $0x58] sm:$0xff] %v2682_v4 }
 0x367   : > { %v2541_v6 = vpop.f32.mrf.mxu2  ;;  %v2365_v9 = vpop.f32.mrf.mxu0 }
 0x368   : > { %v2630_v7 = vpop.f32.mrf.mxu3  ;;  %v2542_v8 = vadd.f32 %v2541_v6, %v2453_v5  ;;  %v2454_v10 = vpop.f32.mrf.mxu1 }
 0x369   : > { %v2455_v14 = vadd.f32 %v2454_v10, %v2365_v9  ;;  %v1658_v10 = vld [vmem:[#allocation2 + $0xd0] sm:$0xff] }
 0x36a   : > { %v2631_v12 = vadd.f32 %v2630_v7, %v2542_v8 }
 0x36c   : > { %v2683_v13 = vadd.f32 %v2631_v12, %v1651_v11 }
 0x36e   : > { %2715 = vst [vmem:[#allocation2 + $0x40] sm:$0xff] %v2683_v13 }
 0x36f   : > { %v2543_v15 = vpop.f32.mrf.mxu2  ;;  %v2368_v18 = vpop.f32.mrf.mxu0 }
 0x370   : > { %v2632_v16 = vpop.f32.mrf.mxu3  ;;  %v2544_v17 = vadd.f32 %v2543_v15, %v2455_v14  ;;  %v2457_v19 = vpop.f32.mrf.mxu1 }
 0x371   : > { %v2458_v23 = vadd.f32 %v2457_v19, %v2368_v18  ;;  %v1659_v19 = vld [vmem:[#allocation2 + $0x10] sm:$0xff] }
 0x372   : > { %v2633_v21 = vadd.f32 %v2632_v16, %v2544_v17 }
 0x374   : > { %v2684_v22 = vadd.f32 %v2633_v21, %v1652_v20 }
 0x376   : > { %2716 = vst [vmem:[#allocation2 + $0xc8] sm:$0xff] %v2684_v22 }
 0x377   : > { %v2546_v24 = vpop.f32.mrf.mxu2  ;;  %v2370_v27 = vpop.f32.mrf.mxu0 }
 0x378   : > { %v2635_v25 = vpop.f32.mrf.mxu3  ;;  %v2547_v26 = vadd.f32 %v2546_v24, %v2458_v23  ;;  %v2459_v28 = vpop.f32.mrf.mxu1 }
 0x379   : > { %v2460_v32 = vadd.f32 %v2459_v28, %v2370_v27  ;;  %v1660_v28 = vld [vmem:[#allocation2 + $0x28] sm:$0xff] }
 0x37a   : > { %v2636_v30 = vadd.f32 %v2635_v25, %v2547_v26 }
 0x37c   : > { %v2685_v31 = vadd.f32 %v2636_v30, %v1653_v29 }
 0x37e   : > { %2717 = vst [vmem:[#allocation2 + $0xe0] sm:$0xff] %v2685_v31 }
 0x37f   : > { %v2548_v33 = vpop.f32.mrf.mxu2  ;;  %v2373_v36 = vpop.f32.mrf.mxu0 }
 0x380   : > { %v2637_v34 = vpop.f32.mrf.mxu3  ;;  %v2549_v35 = vadd.f32 %v2548_v33, %v2460_v32  ;;  %v2462_v37 = vpop.f32.mrf.mxu1 }
 0x381   : > { %v2463_v41 = vadd.f32 %v2462_v37, %v2373_v36  ;;  %v1661_v37 = vld [vmem:[#allocation2 + $0xa0] sm:$0xff] }
 0x382   : > { %v2638_v39 = vadd.f32 %v2637_v34, %v2549_v35 }
 0x384   : > { %v2686_v40 = vadd.f32 %v2638_v39, %v1654_v38 }
 0x386   : > { %2718 = vst [vmem:[#allocation2 + $0x90] sm:$0xff] %v2686_v40 }
 0x387   : > { %v2551_v42 = vpop.f32.mrf.mxu2  ;;  %v2375_v45 = vpop.f32.mrf.mxu0 }
 0x388   : > { %v2640_v43 = vpop.f32.mrf.mxu3  ;;  %v2552_v44 = vadd.f32 %v2551_v42, %v2463_v41  ;;  %v2464_v46 = vpop.f32.mrf.mxu1 }
 0x389   : > { %v2465_v50 = vadd.f32 %v2464_v46, %v2375_v45 }
 0x38a   : > { %v2641_v48 = vadd.f32 %v2640_v43, %v2552_v44  ;;  %v1662_v44 = vld [vmem:[#allocation2 + $0xf8] sm:$0xff] }
 0x38c   : > { %v2687_v49 = vadd.f32 %v2641_v48, %v1655_v47 }
 0x38e   : > { %2719 = vst [vmem:[#allocation2 + $0x70] sm:$0xff] %v2687_v49 }
 0x38f   : > { %v2553_v51 = vpop.f32.mrf.mxu2  ;;  %v2378_v54 = vpop.f32.mrf.mxu0 }
 0x390   : > { %v2642_v52 = vpop.f32.mrf.mxu3  ;;  %v2554_v53 = vadd.f32 %v2553_v51, %v2465_v50  ;;  %v2467_v55 = vpop.f32.mrf.mxu1 }
 0x391   : > { %v2468_v59 = vadd.f32 %v2467_v55, %v2378_v54 }
 0x392   : > { %v2643_v57 = vadd.f32 %v2642_v52, %v2554_v53  ;;  %v1663_v53 = vld [vmem:[#allocation2 + $0x20] sm:$0xff] }
 0x394   : > { %v2688_v58 = vadd.f32 %v2643_v57, %v1656_v56 }
 0x396   : > { %2720 = vst [vmem:[#allocation2 + $0xc0] sm:$0xff] %v2688_v58 }
 0x397   : > { %v2556_v60 = vpop.f32.mrf.mxu2  ;;  %v2380_v63 = vpop.f32.mrf.mxu0 }
 0x398   : > { %v2645_v61 = vpop.f32.mrf.mxu3  ;;  %v2557_v62 = vadd.f32 %v2556_v60, %v2468_v59  ;;  %v2469_v0 = vpop.f32.mrf.mxu1 }
 0x399   : > { %v2470_v4 = vadd.f32 %v2469_v0, %v2380_v63 }
 0x39a   : > { %v2646_v2 = vadd.f32 %v2645_v61, %v2557_v62  ;;  %v1664_v61 = vld [vmem:[#allocation2 + $0x98] sm:$0xff] }
 0x39c   : > { %v2689_v3 = vadd.f32 %v2646_v2, %v1657_v1 }
 0x39e   : > { %2721 = vst [vmem:[#allocation2 + $0xa8] sm:$0xff] %v2689_v3 }
 0x39f   : > { %v2558_v5 = vpop.f32.mrf.mxu2  ;;  %v2383_v8 = vpop.f32.mrf.mxu0 }
 0x3a0   : > { %v2647_v6 = vpop.f32.mrf.mxu3  ;;  %v2559_v7 = vadd.f32 %v2558_v5, %v2470_v4  ;;  %v2472_v9 = vpop.f32.mrf.mxu1 }
 0x3a1   : > { %v2473_v13 = vadd.f32 %v2472_v9, %v2383_v8 }
 0x3a2   : > { %v2648_v11 = vadd.f32 %v2647_v6, %v2559_v7 }
 0x3a4   : > { %v2690_v12 = vadd.f32 %v2648_v11, %v1658_v10 }
 0x3a6   : > { %2722 = vst [vmem:[#allocation2 + $0xd0] sm:$0xff] %v2690_v12 }
 0x3a7   : > { %v2561_v14 = vpop.f32.mrf.mxu2  ;;  %v2385_v17 = vpop.f32.mrf.mxu0 }
 0x3a8   : > { %v2650_v15 = vpop.f32.mrf.mxu3  ;;  %v2562_v16 = vadd.f32 %v2561_v14, %v2473_v13  ;;  %v2474_v18 = vpop.f32.mrf.mxu1 }
 0x3a9   : > { %v2475_v22 = vadd.f32 %v2474_v18, %v2385_v17 }
 0x3aa   : > { %v2651_v20 = vadd.f32 %v2650_v15, %v2562_v16 }
 0x3ac   : > { %v2691_v21 = vadd.f32 %v2651_v20, %v1659_v19 }
 0x3ae   : > { %2723 = vst [vmem:[#allocation2 + $0x10] sm:$0xff] %v2691_v21 }
 0x3af   : > { %v2563_v23 = vpop.f32.mrf.mxu2  ;;  %v2388_v26 = vpop.f32.mrf.mxu0 }
 0x3b0   : > { %v2652_v24 = vpop.f32.mrf.mxu3  ;;  %v2564_v25 = vadd.f32 %v2563_v23, %v2475_v22  ;;  %v2477_v27 = vpop.f32.mrf.mxu1 }
 0x3b1   : > { %v2478_v31 = vadd.f32 %v2477_v27, %v2388_v26 }
 0x3b2   : > { %v2653_v29 = vadd.f32 %v2652_v24, %v2564_v25 }
 0x3b4   : > { %v2692_v30 = vadd.f32 %v2653_v29, %v1660_v28 }
 0x3b6   : > { %2724 = vst [vmem:[#allocation2 + $0x28] sm:$0xff] %v2692_v30 }
 0x3b7   : > { %v2566_v32 = vpop.f32.mrf.mxu2  ;;  %v2390_v35 = vpop.f32.mrf.mxu0 }
 0x3b8   : > { %v2655_v33 = vpop.f32.mrf.mxu3  ;;  %v2567_v34 = vadd.f32 %v2566_v32, %v2478_v31  ;;  %v2479_v36 = vpop.f32.mrf.mxu1 }
 0x3b9   : > { %v2480_v40 = vadd.f32 %v2479_v36, %v2390_v35 }
 0x3ba   : > { %v2656_v38 = vadd.f32 %v2655_v33, %v2567_v34 }
 0x3bc   : > { %v2693_v39 = vadd.f32 %v2656_v38, %v1661_v37 }
 0x3be   : > { %2725 = vst [vmem:[#allocation2 + $0xa0] sm:$0xff] %v2693_v39 }
 0x3bf   : > { %v2568_v41 = vpop.f32.mrf.mxu2  ;;  %v2393_v45 = vpop.f32.mrf.mxu0 }
 0x3c0   : > { %v2657_v42 = vpop.f32.mrf.mxu3  ;;  %v2569_v43 = vadd.f32 %v2568_v41, %v2480_v40  ;;  %v2482_v46 = vpop.f32.mrf.mxu1 }
 0x3c1   : > { %v2483_v49 = vadd.f32 %v2482_v46, %v2393_v45 }
 0x3c2   : > { %v2658_v47 = vadd.f32 %v2657_v42, %v2569_v43 }
 0x3c4   : > { %v2694_v48 = vadd.f32 %v2658_v47, %v1662_v44 }
 0x3c6   : > { %2726 = vst [vmem:[#allocation2 + $0xf8] sm:$0xff] %v2694_v48 }
 0x3c7   : > { %v2571_v50 = vpop.f32.mrf.mxu2  ;;  %v2395_v55 = vpop.f32.mrf.mxu0 }
 0x3c8   : > { %v2660_v51 = vpop.f32.mrf.mxu3  ;;  %v2572_v52 = vadd.f32 %v2571_v50, %v2483_v49  ;;  %v2484_v56 = vpop.f32.mrf.mxu1 }
 0x3c9   : > { %v2485_v58 = vadd.f32 %v2484_v56, %v2395_v55 }
 0x3ca   : > { %v2661_v54 = vadd.f32 %v2660_v51, %v2572_v52 }
 0x3cc   : > { %v2695_v57 = vadd.f32 %v2661_v54, %v1663_v53 }
 0x3ce   : > { %2727 = vst [vmem:[#allocation2 + $0x20] sm:$0xff] %v2695_v57 }
 0x3cf   : > { %v2573_v59 = vpop.f32.mrf.mxu2 }
 0x3d0   : > { %v2574_v60 = vadd.f32 %v2573_v59, %v2485_v58  ;;  %v2662_v62 = vpop.f32.mrf.mxu3 }
 0x3d2   : > { %v2663_v63 = vadd.f32 %v2662_v62, %v2574_v60 }
 0x3d4   : > { %v2696_v0 = vadd.f32 %v2663_v63, %v1664_v61 }
 0x3d6   : > { %2728 = vst [vmem:[#allocation2 + $0x98] sm:$0xff] %v2696_v0 }
 0x3d7 PF: > { %2732 = sbr.rel (!%p467_p9) target bundleno = 1277 (0x4fd), region = 105  ;;  %v5953_v1 = vld [vmem:[#allocation10 + $0x38] sm:$0xff] (%p467_p9)  ;;  %v5952_v3 = vld [vmem:[#allocation10 + $0x30] sm:$0xff] (%p467_p9)  ;;  %v5951_v5 = vld [vmem:[#allocation10 + $0x28] sm:$0xff] (%p467_p9)  ;;  %s7288_s10 = sshra.s32 (%p467_p9), %s4658_s16, 3 }
 0x3d8   : > { %v5945_v2 = vld [vmem:[#allocation8 + $0x38] sm:$0xff] (%p467_p9)  ;;  %2993 = vmatpush.bf16.msra.mxu0 (%p467_p9), %v5953_v1  ;;  %6091 = vmatpush.bf16.msra.mxu2 (%p467_p9), %v5953_v1  ;;  %v5944_v4 = vld [vmem:[#allocation8 + $0x30] sm:$0xff] (%p467_p9)  ;;  %v5943_v6 = vld [vmem:[#allocation8 + $0x28] sm:$0xff] (%p467_p9)  ;;  %s5430_s28 = sshll.u32 (%p467_p9), %s7288_s10, 2  ;;  %s7951_s4 = sld [smem:[#allocation35_spill]] (%p467_p9) }
 0x3d9   : > { %3130 = vmatpush.bf16.msra.mxu1 (%p467_p9), %v5945_v2  ;;  %6099 = vmatpush.bf16.msra.mxu3 (%p467_p9), %v5945_v2  ;;  %v5950_v7 = vld [vmem:[#allocation10 + $0x20] sm:$0xff] (%p467_p9)  ;;  %v5949_v9 = vld [vmem:[#allocation10 + $0x18] sm:$0xff] (%p467_p9)  ;;  %v5948_v11 = vld [vmem:[#allocation10 + $0x10] sm:$0xff] (%p467_p9)  ;;  %s7293_s30 = scalar_lea.vmem (%p467_p9), [#allocation3], %s5430_s28  ;;  %s7321_s25 = scalar_lea.vmem (%p467_p9), [#allocation4], %s5430_s28 }
 0x3da   : > { %v5942_v8 = vld [vmem:[#allocation8 + $0x20] sm:$0xff] (%p467_p9)  ;;  %v5941_v10 = vld [vmem:[#allocation8 + $0x18] sm:$0xff] (%p467_p9)  ;;  %v5940_v12 = vld [vmem:[#allocation8 + $0x10] sm:$0xff] (%p467_p9) }
 0x3db   : > { %v5947_v13 = vld [vmem:[#allocation10 + $0x8] sm:$0xff] (%p467_p9)  ;;  %v5946_v15 = vld [vmem:[#allocation10] sm:$0xff] (%p467_p9)  ;;  %v2733_v17 = vld [vmem:[#allocation2 + $0xb0] sm:$0xff] (%p467_p9) }
 0x3dc   : > { %2994 = vmatpush.bf16.msra.mxu0 %v5952_v3  ;;  %6092 = vmatpush.bf16.msra.mxu2 %v5952_v3  ;;  %v5939_v14 = vld [vmem:[#allocation8 + $0x8] sm:$0xff]  ;;  %v5938_v16 = vld [vmem:[#allocation8] sm:$0xff]  ;;  %v2749_v19 = vld [vmem:[#allocation2 + $0x38] sm:$0xff] }
 0x3dd   : > { %3131 = vmatpush.bf16.msra.mxu1 %v5944_v4  ;;  %6100 = vmatpush.bf16.msra.mxu3 %v5944_v4  ;;  %v2734_v18 = vld [vmem:[#allocation2] sm:$0xff]  ;;  %v2750_v20 = vld [vmem:[#allocation2 + $0x58] sm:$0xff]  ;;  %v2752_v28 = vld [vmem:[#allocation2 + $0xc8] sm:$0xff] }
 0x3de   : > { %v5922_v21 = vld [vmem:[%s7293_s30] sm:$0xff]  ;;  %v2765_v23 = vpack.c.bf16 %v2734_v18, %v2733_v17  ;;  %v2773_v24 = vpack.c.bf16 %v2750_v20, %v2749_v19  ;;  %v2735_v25 = vld [vmem:[#allocation2 + $0xd8] sm:$0xff]  ;;  %v5923_v29 = vld [vmem:[%s7293_s30 + $0x8] sm:$0xff] }
 0x3df   : > { %v5930_v22 = vld [vmem:[%s7293_s30 + $0x40] sm:$0xff]  ;;  %v2736_v26 = vld [vmem:[#allocation2 + $0x18] sm:$0xff]  ;;  %v5931_v30 = vld [vmem:[%s7293_s30 + $0x48] sm:$0xff] }
 0x3e0   : > { %2995 = vmatpush.bf16.msra.mxu0 %v5951_v5  ;;  %6093 = vmatpush.bf16.msra.mxu2 %v5951_v5  ;;  %v2751_v27 = vld [vmem:[#allocation2 + $0x40] sm:$0xff]  ;;  %v2766_v31 = vpack.c.bf16 %v2736_v26, %v2735_v25  ;;  %v2737_v33 = vld [vmem:[#allocation2 + $0x50] sm:$0xff]  ;;  %v2738_v34 = vld [vmem:[#allocation2 + $0x68] sm:$0xff] }
 0x3e1   : > { %3132 = vmatpush.bf16.msra.mxu1 %v5943_v6  ;;  %6101 = vmatpush.bf16.msra.mxu3 %v5943_v6  ;;  %v2774_v32 = vpack.c.bf16 %v2752_v28, %v2751_v27  ;;  %v2753_v35 = vld [vmem:[#allocation2 + $0xe0] sm:$0xff]  ;;  %v2754_v36 = vld [vmem:[#allocation2 + $0x90] sm:$0xff]  ;;  %v2767_v39 = vpack.c.bf16 %v2738_v34, %v2737_v33  ;;  %v2740_v42 = vld [vmem:[#allocation2 + $0x48] sm:$0xff] }
 0x3e2   : > { %v5924_v37 = vld [vmem:[%s7293_s30 + $0x10] sm:$0xff]  ;;  %v2775_v40 = vpack.c.bf16 %v2754_v36, %v2753_v35  ;;  %v2756_v44 = vld [vmem:[#allocation2 + $0xc0] sm:$0xff]  ;;  %v5925_v45 = vld [vmem:[%s7293_s30 + $0x18] sm:$0xff] }
 0x3e3   : > { %v5932_v38 = vld [vmem:[%s7293_s30 + $0x50] sm:$0xff]  ;;  %v5933_v46 = vld [vmem:[%s7293_s30 + $0x58] sm:$0xff]  ;;  %v2741_v49 = vld [vmem:[#allocation2 + $0x80] sm:$0xff] }
 0x3e4   : > { %2996 = vmatpush.bf16.msra.mxu0 %v5950_v7  ;;  %6094 = vmatpush.bf16.msra.mxu2 %v5950_v7  ;;  %v2739_v41 = vld [vmem:[#allocation2 + $0x30] sm:$0xff]  ;;  %v2742_v50 = vld [vmem:[#allocation2 + $0x88] sm:$0xff]  ;;  %v5926_v53 = vld [vmem:[%s7293_s30 + $0x20] sm:$0xff] }
 0x3e5   : > { %3133 = vmatpush.bf16.msra.mxu1 %v5942_v8  ;;  %6102 = vmatpush.bf16.msra.mxu3 %v5942_v8  ;;  %v2755_v43 = vld [vmem:[#allocation2 + $0x70] sm:$0xff]  ;;  %v2768_v47 = vpack.c.bf16 %v2740_v42, %v2739_v41  ;;  %v2757_v51 = vld [vmem:[#allocation2 + $0xa8] sm:$0xff]  ;;  %v5934_v54 = vld [vmem:[%s7293_s30 + $0x60] sm:$0xff]  ;;  %v2769_v55 = vpack.c.bf16 %v2742_v50, %v2741_v49 }
 0x3e6   : > { %v2776_v48 = vpack.c.bf16 %v2756_v44, %v2755_v43  ;;  %v2758_v52 = vld [vmem:[#allocation2 + $0xd0] sm:$0xff]  ;;  %v2743_v57 = vld [vmem:[#allocation2 + $0xe8] sm:$0xff]  ;;  %v2744_v58 = vld [vmem:[#allocation2 + $0xb8] sm:$0xff] }
 0x3e7   : > { %v2777_v56 = vpack.c.bf16 %v2758_v52, %v2757_v51  ;;  %v2759_v59 = vld [vmem:[#allocation2 + $0x10] sm:$0xff]  ;;  %v2760_v60 = vld [vmem:[#allocation2 + $0x28] sm:$0xff]  ;;  %v2770_v63 = vpack.c.bf16 %v2744_v58, %v2743_v57  ;;  %v2745_v1 = vld [vmem:[#allocation2 + $0x60] sm:$0xff] }
 0x3e8   : > { %2997 = vmatpush.bf16.msra.mxu0 %v5949_v9  ;;  %6095 = vmatpush.bf16.msra.mxu2 %v5949_v9  ;;  %v5927_v61 = vld [vmem:[%s7293_s30 + $0x28] sm:$0xff]  ;;  %v2778_v0 = vpack.c.bf16 %v2760_v60, %v2759_v59  ;;  %v2746_v2 = vld [vmem:[#allocation2 + $0xf0] sm:$0xff]  ;;  %v2761_v3 = vld [vmem:[#allocation2 + $0xa0] sm:$0xff] }
 0x3e9   : > { %3134 = vmatpush.bf16.msra.mxu1 %v5941_v10  ;;  %6103 = vmatpush.bf16.msra.mxu3 %v5941_v10  ;;  %v5935_v62 = vld [vmem:[%s7293_s30 + $0x68] sm:$0xff]  ;;  %v2762_v4 = vld [vmem:[#allocation2 + $0xf8] sm:$0xff]  ;;  %v5928_v5 = vld [vmem:[%s7293_s30 + $0x30] sm:$0xff]  ;;  %v2771_v7 = vpack.c.bf16 %v2746_v2, %v2745_v1 }
 0x3ea   : > { %v5936_v6 = vld [vmem:[%s7293_s30 + $0x70] sm:$0xff]  ;;  %v2779_v8 = vpack.c.bf16 %v2762_v4, %v2761_v3  ;;  %v2747_v9 = vld [vmem:[#allocation2 + $0x8] sm:$0xff]  ;;  %v2748_v10 = vld [vmem:[#allocation2 + $0x78] sm:$0xff] }
 0x3eb   : > { %v7314_v20 = vld [vmem:[%s7951_s4] ss:$0 sm:$0xff] }
 0x3ec   : > { %2998 = vmatpush.bf16.msra.mxu0 %v5948_v11  ;;  %6096 = vmatpush.bf16.msra.mxu2 %v5948_v11  ;;  %v2763_v11 = vld [vmem:[#allocation2 + $0x20] sm:$0xff] }
 0x3ed   : > { %3135 = vmatpush.bf16.msra.mxu1 %v5940_v12  ;;  %6104 = vmatpush.bf16.msra.mxu3 %v5940_v12  ;;  %v2764_v12 = vld [vmem:[#allocation2 + $0x98] sm:$0xff] }
 0x3f0   : > { %2999 = vmatpush.bf16.msra.mxu0 %v5947_v13  ;;  %6097 = vmatpush.bf16.msra.mxu2 %v5947_v13  ;;  %v5929_v13 = vld [vmem:[%s7293_s30 + $0x38] sm:$0xff] }
 0x3f1   : > { %3136 = vmatpush.bf16.msra.mxu1 %v5939_v14  ;;  %6105 = vmatpush.bf16.msra.mxu3 %v5939_v14  ;;  %v5937_v14 = vld [vmem:[%s7293_s30 + $0x78] sm:$0xff] }
 0x3f4   : > { %3000 = vmatpush.bf16.msra.mxu0 %v5946_v15  ;;  %6098 = vmatpush.bf16.msra.mxu2 %v5946_v15  ;;  %v2772_v15 = vpack.c.bf16 %v2748_v10, %v2747_v9 }
 0x3f5   : > { %3137 = vmatpush.bf16.msra.mxu1 %v5938_v16  ;;  %6106 = vmatpush.bf16.msra.mxu3 %v5938_v16  ;;  %v2780_v16 = vpack.c.bf16 %v2764_v12, %v2763_v11 }
 0x3f7   : > { %3001 = vmatmul.bf16.vlgmr.msra.gmra.mxu0 %v5922_v21  ;;  %3041 = vmatmul.bf16.vlgmr.msra.gmra.mxu2 %v5930_v22 }
 0x3f8   : > { %3138 = vmatmul.bf16.vlgmr.msra.gmra.mxu1 %v2765_v23  ;;  %3178 = vmatmul.bf16.vlgmr.msra.gmra.mxu3 %v2773_v24 }
 0x407   : > { %3006 = vmatmul.bf16.gmra.mxu0 %v5923_v29  ;;  %3046 = vmatmul.bf16.gmra.mxu2 %v5931_v30 }
 0x408   : > { %3143 = vmatmul.bf16.gmra.mxu1 %v2766_v31  ;;  %3183 = vmatmul.bf16.gmra.mxu3 %v2774_v32 }
 0x417   : > { %3011 = vmatmul.bf16.gmra.mxu0 %v5924_v37  ;;  %3051 = vmatmul.bf16.gmra.mxu2 %v5932_v38 }
 0x418   : > { %3148 = vmatmul.bf16.gmra.mxu1 %v2767_v39  ;;  %3188 = vmatmul.bf16.gmra.mxu3 %v2775_v40 }
 0x427   : > { %3016 = vmatmul.bf16.gmra.mxu0 %v5925_v45  ;;  %3056 = vmatmul.bf16.gmra.mxu2 %v5933_v46 }
 0x428   : > { %3153 = vmatmul.bf16.gmra.mxu1 %v2768_v47  ;;  %3193 = vmatmul.bf16.gmra.mxu3 %v2776_v48 }
 0x437   : > { %3021 = vmatmul.bf16.gmra.mxu0 %v5926_v53  ;;  %3061 = vmatmul.bf16.gmra.mxu2 %v5934_v54 }
 0x438   : > { %3158 = vmatmul.bf16.gmra.mxu1 %v2769_v55  ;;  %3198 = vmatmul.bf16.gmra.mxu3 %v2777_v56 }
 0x447   : > { %3026 = vmatmul.bf16.gmra.mxu0 %v5927_v61  ;;  %3066 = vmatmul.bf16.gmra.mxu2 %v5935_v62 }
 0x448   : > { %3163 = vmatmul.bf16.gmra.mxu1 %v2770_v63  ;;  %3203 = vmatmul.bf16.gmra.mxu3 %v2778_v0 }
 0x457   : > { %3031 = vmatmul.bf16.gmra.mxu0 %v5928_v5  ;;  %3071 = vmatmul.bf16.gmra.mxu2 %v5936_v6 }
 0x458   : > { %3168 = vmatmul.bf16.gmra.mxu1 %v2771_v7  ;;  %3208 = vmatmul.bf16.gmra.mxu3 %v2779_v8 }
 0x467   : > { %3036 = vmatmul.bf16.gmra.mxu0 %v5929_v13  ;;  %3076 = vmatmul.bf16.gmra.mxu2 %v5937_v14 }
 0x468   : > { %3173 = vmatmul.bf16.gmra.mxu1 %v2772_v15  ;;  %3213 = vmatmul.bf16.gmra.mxu3 %v2780_v16 }
 0x474   : > { %v3002_v17 = vpop.f32.mrf.mxu0 }
 0x475   : > { %v3139_v18 = vpop.f32.mrf.mxu1 }
 0x476   : > { %v3140_v19 = vadd.f32 %v3139_v18, %v3002_v17 }
 0x478   : > { %v3223_v25 = vadd.f32 %v7314_v20, %v3140_v19 }
 0x47a   : > { %v3042_v21 = vpop.f32.mrf.mxu2  ;;  %v3255_v29 = vmax.f32 %v3223_v25, 0.0 }
 0x47b   : > { %v3179_v22 = vpop.f32.mrf.mxu3 }
 0x47c   : > { %v3004_v23 = vpop.f32.mrf.mxu0  ;;  %v3180_v27 = vadd.f32 %v3179_v22, %v3042_v21 }
 0x47d   : > { %v3141_v24 = vpop.f32.mrf.mxu1 }
 0x47e   : > { %v3142_v26 = vadd.f32 %v3141_v24, %v3004_v23  ;;  %v3239_v33 = vadd.f32 %v7314_v20, %v3180_v27 }
 0x480   : > { %v3224_v28 = vadd.f32 %v7314_v20, %v3142_v26  ;;  %v3271_v39 = vmax.f32 %v3239_v33, 0.0 }
 0x482   : > { %v3256_v30 = vmax.f32 %v3224_v28, 0.0  ;;  %v3044_v31 = vpop.f32.mrf.mxu2 }
 0x483   : > { %v3181_v32 = vpop.f32.mrf.mxu3 }
 0x484   : > { %v5999_v34 = vpack.c.bf16 %v3256_v30, %v3255_v29  ;;  %v3182_v35 = vadd.f32 %v3181_v32, %v3044_v31  ;;  %v3007_v36 = vpop.f32.mrf.mxu0 }
 0x485   : > { %v3144_v37 = vpop.f32.mrf.mxu1 }
 0x486   : > { %6000 = vst [vmem:[%s7321_s25] sm:$0xff] %v5999_v34   ;;  %v3240_v38 = vadd.f32 %v7314_v20, %v3182_v35  ;;  %v3145_v42 = vadd.f32 %v3144_v37, %v3007_v36 }
 0x488   : > { %v3272_v40 = vmax.f32 %v3240_v38, 0.0  ;;  %v3225_v47 = vadd.f32 %v7314_v20, %v3145_v42 }
 0x48a   : > { %v6039_v41 = vpack.c.bf16 %v3272_v40, %v3271_v39  ;;  %v3047_v43 = vpop.f32.mrf.mxu2  ;;  %v3257_v51 = vmax.f32 %v3225_v47, 0.0 }
 0x48b   : > { %v3184_v44 = vpop.f32.mrf.mxu3 }
 0x48c   : > { %6083 = vst [vmem:[%s7321_s25 + $0x40] sm:$0xff] %v6039_v41   ;;  %v3009_v45 = vpop.f32.mrf.mxu0  ;;  %v3185_v49 = vadd.f32 %v3184_v44, %v3047_v43 }
 0x48d   : > { %v3146_v46 = vpop.f32.mrf.mxu1 }
 0x48e   : > { %v3147_v48 = vadd.f32 %v3146_v46, %v3009_v45  ;;  %v3241_v55 = vadd.f32 %v7314_v20, %v3185_v49 }
 0x490   : > { %v3226_v50 = vadd.f32 %v7314_v20, %v3147_v48  ;;  %v3273_v61 = vmax.f32 %v3241_v55, 0.0 }
 0x492   : > { %v3258_v52 = vmax.f32 %v3226_v50, 0.0  ;;  %v3049_v53 = vpop.f32.mrf.mxu2 }
 0x493   : > { %v3186_v54 = vpop.f32.mrf.mxu3 }
 0x494   : > { %v6004_v56 = vpack.c.bf16 %v3258_v52, %v3257_v51  ;;  %v3187_v57 = vadd.f32 %v3186_v54, %v3049_v53  ;;  %v3012_v58 = vpop.f32.mrf.mxu0 }
 0x495   : > { %v3149_v59 = vpop.f32.mrf.mxu1 }
 0x496   : > { %6076 = vst [vmem:[%s7321_s25 + $0x8] sm:$0xff] %v6004_v56   ;;  %v3242_v60 = vadd.f32 %v7314_v20, %v3187_v57  ;;  %v3150_v0 = vadd.f32 %v3149_v59, %v3012_v58 }
 0x498   : > { %v3274_v62 = vmax.f32 %v3242_v60, 0.0  ;;  %v3227_v5 = vadd.f32 %v7314_v20, %v3150_v0 }
 0x49a   : > { %v6044_v63 = vpack.c.bf16 %v3274_v62, %v3273_v61  ;;  %v3052_v1 = vpop.f32.mrf.mxu2  ;;  %v3259_v9 = vmax.f32 %v3227_v5, 0.0 }
 0x49b   : > { %v3189_v2 = vpop.f32.mrf.mxu3 }
 0x49c   : > { %6084 = vst [vmem:[%s7321_s25 + $0x48] sm:$0xff] %v6044_v63   ;;  %v3014_v3 = vpop.f32.mrf.mxu0  ;;  %v3190_v7 = vadd.f32 %v3189_v2, %v3052_v1 }
 0x49d   : > { %v3151_v4 = vpop.f32.mrf.mxu1 }
 0x49e   : > { %v3152_v6 = vadd.f32 %v3151_v4, %v3014_v3  ;;  %v3243_v13 = vadd.f32 %v7314_v20, %v3190_v7 }
 0x4a0   : > { %v3228_v8 = vadd.f32 %v7314_v20, %v3152_v6  ;;  %v3275_v19 = vmax.f32 %v3243_v13, 0.0 }
 0x4a2   : > { %v3260_v10 = vmax.f32 %v3228_v8, 0.0  ;;  %v3054_v11 = vpop.f32.mrf.mxu2 }
 0x4a3   : > { %v3191_v12 = vpop.f32.mrf.mxu3 }
 0x4a4   : > { %v6009_v14 = vpack.c.bf16 %v3260_v10, %v3259_v9  ;;  %v3192_v15 = vadd.f32 %v3191_v12, %v3054_v11  ;;  %v3017_v16 = vpop.f32.mrf.mxu0 }
 0x4a5   : > { %v3154_v17 = vpop.f32.mrf.mxu1 }
 0x4a6   : > { %6077 = vst [vmem:[%s7321_s25 + $0x10] sm:$0xff] %v6009_v14   ;;  %v3244_v18 = vadd.f32 %v7314_v20, %v3192_v15  ;;  %v3155_v23 = vadd.f32 %v3154_v17, %v3017_v16 }
 0x4a8   : > { %v3276_v21 = vmax.f32 %v3244_v18, 0.0  ;;  %v3229_v28 = vadd.f32 %v7314_v20, %v3155_v23 }
 0x4aa   : > { %v6049_v22 = vpack.c.bf16 %v3276_v21, %v3275_v19  ;;  %v3057_v24 = vpop.f32.mrf.mxu2  ;;  %v3261_v32 = vmax.f32 %v3229_v28, 0.0 }
 0x4ab   : > { %v3194_v25 = vpop.f32.mrf.mxu3 }
 0x4ac   : > { %6085 = vst [vmem:[%s7321_s25 + $0x50] sm:$0xff] %v6049_v22   ;;  %v3019_v26 = vpop.f32.mrf.mxu0  ;;  %v3195_v30 = vadd.f32 %v3194_v25, %v3057_v24 }
 0x4ad   : > { %v3156_v27 = vpop.f32.mrf.mxu1 }
 0x4ae   : > { %v3157_v29 = vadd.f32 %v3156_v27, %v3019_v26  ;;  %v3245_v36 = vadd.f32 %v7314_v20, %v3195_v30 }
 0x4b0   : > { %v3230_v31 = vadd.f32 %v7314_v20, %v3157_v29  ;;  %v3277_v42 = vmax.f32 %v3245_v36, 0.0 }
 0x4b2   : > { %v3262_v33 = vmax.f32 %v3230_v31, 0.0  ;;  %v3059_v34 = vpop.f32.mrf.mxu2 }
 0x4b3   : > { %v3196_v35 = vpop.f32.mrf.mxu3 }
 0x4b4   : > { %v6014_v37 = vpack.c.bf16 %v3262_v33, %v3261_v32  ;;  %v3197_v38 = vadd.f32 %v3196_v35, %v3059_v34  ;;  %v3022_v39 = vpop.f32.mrf.mxu0 }
 0x4b5   : > { %v3159_v40 = vpop.f32.mrf.mxu1 }
 0x4b6   : > { %6078 = vst [vmem:[%s7321_s25 + $0x18] sm:$0xff] %v6014_v37   ;;  %v3246_v41 = vadd.f32 %v7314_v20, %v3197_v38  ;;  %v3160_v45 = vadd.f32 %v3159_v40, %v3022_v39 }
 0x4b8   : > { %v3278_v43 = vmax.f32 %v3246_v41, 0.0  ;;  %v3231_v50 = vadd.f32 %v7314_v20, %v3160_v45 }
 0x4ba   : > { %v6054_v44 = vpack.c.bf16 %v3278_v43, %v3277_v42  ;;  %v3062_v46 = vpop.f32.mrf.mxu2  ;;  %v3263_v54 = vmax.f32 %v3231_v50, 0.0 }
 0x4bb   : > { %v3199_v47 = vpop.f32.mrf.mxu3 }
 0x4bc   : > { %6086 = vst [vmem:[%s7321_s25 + $0x58] sm:$0xff] %v6054_v44   ;;  %v3024_v48 = vpop.f32.mrf.mxu0  ;;  %v3200_v52 = vadd.f32 %v3199_v47, %v3062_v46 }
 0x4bd   : > { %v3161_v49 = vpop.f32.mrf.mxu1 }
 0x4be   : > { %v3162_v51 = vadd.f32 %v3161_v49, %v3024_v48  ;;  %v3247_v58 = vadd.f32 %v7314_v20, %v3200_v52 }
 0x4c0   : > { %v3232_v53 = vadd.f32 %v7314_v20, %v3162_v51  ;;  %v3279_v0 = vmax.f32 %v3247_v58, 0.0 }
 0x4c2   : > { %v3264_v55 = vmax.f32 %v3232_v53, 0.0  ;;  %v3064_v56 = vpop.f32.mrf.mxu2 }
 0x4c3   : > { %v3201_v57 = vpop.f32.mrf.mxu3 }
 0x4c4   : > { %v6019_v59 = vpack.c.bf16 %v3264_v55, %v3263_v54  ;;  %v3202_v60 = vadd.f32 %v3201_v57, %v3064_v56  ;;  %v3027_v61 = vpop.f32.mrf.mxu0 }
 0x4c5   : > { %v3164_v62 = vpop.f32.mrf.mxu1 }
 0x4c6   : > { %6079 = vst [vmem:[%s7321_s25 + $0x20] sm:$0xff] %v6019_v59   ;;  %v3248_v63 = vadd.f32 %v7314_v20, %v3202_v60  ;;  %v3165_v3 = vadd.f32 %v3164_v62, %v3027_v61 }
 0x4c8   : > { %v3280_v1 = vmax.f32 %v3248_v63, 0.0  ;;  %v3233_v8 = vadd.f32 %v7314_v20, %v3165_v3 }
 0x4ca   : > { %v6059_v2 = vpack.c.bf16 %v3280_v1, %v3279_v0  ;;  %v3067_v4 = vpop.f32.mrf.mxu2  ;;  %v3265_v12 = vmax.f32 %v3233_v8, 0.0 }
 0x4cb   : > { %v3204_v5 = vpop.f32.mrf.mxu3 }
 0x4cc   : > { %6087 = vst [vmem:[%s7321_s25 + $0x60] sm:$0xff] %v6059_v2   ;;  %v3029_v6 = vpop.f32.mrf.mxu0  ;;  %v3205_v10 = vadd.f32 %v3204_v5, %v3067_v4 }
 0x4cd   : > { %v3166_v7 = vpop.f32.mrf.mxu1 }
 0x4ce   : > { %v3167_v9 = vadd.f32 %v3166_v7, %v3029_v6  ;;  %v3249_v16 = vadd.f32 %v7314_v20, %v3205_v10 }
 0x4d0   : > { %v3234_v11 = vadd.f32 %v7314_v20, %v3167_v9  ;;  %v3281_v23 = vmax.f32 %v3249_v16, 0.0 }
 0x4d2   : > { %v3266_v13 = vmax.f32 %v3234_v11, 0.0  ;;  %v3069_v14 = vpop.f32.mrf.mxu2 }
 0x4d3   : > { %v3206_v15 = vpop.f32.mrf.mxu3 }
 0x4d4   : > { %v6024_v17 = vpack.c.bf16 %v3266_v13, %v3265_v12  ;;  %v3207_v18 = vadd.f32 %v3206_v15, %v3069_v14  ;;  %v3032_v19 = vpop.f32.mrf.mxu0 }
 0x4d5   : > { %v3169_v21 = vpop.f32.mrf.mxu1 }
 0x4d6   : > { %6080 = vst [vmem:[%s7321_s25 + $0x28] sm:$0xff] %v6024_v17   ;;  %v3250_v22 = vadd.f32 %v7314_v20, %v3207_v18  ;;  %v3170_v26 = vadd.f32 %v3169_v21, %v3032_v19 }
 0x4d8   : > { %v3282_v24 = vmax.f32 %v3250_v22, 0.0  ;;  %v3235_v31 = vadd.f32 %v7314_v20, %v3170_v26 }
 0x4da   : > { %v6064_v25 = vpack.c.bf16 %v3282_v24, %v3281_v23  ;;  %v3072_v27 = vpop.f32.mrf.mxu2  ;;  %v3267_v35 = vmax.f32 %v3235_v31, 0.0 }
 0x4db   : > { %v3209_v28 = vpop.f32.mrf.mxu3 }
 0x4dc   : > { %6088 = vst [vmem:[%s7321_s25 + $0x68] sm:$0xff] %v6064_v25   ;;  %v3034_v29 = vpop.f32.mrf.mxu0  ;;  %v3210_v33 = vadd.f32 %v3209_v28, %v3072_v27 }
 0x4dd   : > { %v3171_v30 = vpop.f32.mrf.mxu1 }
 0x4de   : > { %v3172_v32 = vadd.f32 %v3171_v30, %v3034_v29  ;;  %v3251_v39 = vadd.f32 %v7314_v20, %v3210_v33 }
 0x4e0   : > { %v3236_v34 = vadd.f32 %v7314_v20, %v3172_v32  ;;  %v3283_v45 = vmax.f32 %v3251_v39, 0.0 }
 0x4e2   : > { %v3268_v36 = vmax.f32 %v3236_v34, 0.0  ;;  %v3074_v37 = vpop.f32.mrf.mxu2 }
 0x4e3   : > { %v3211_v38 = vpop.f32.mrf.mxu3 }
 0x4e4   : > { %v6029_v40 = vpack.c.bf16 %v3268_v36, %v3267_v35  ;;  %v3212_v41 = vadd.f32 %v3211_v38, %v3074_v37  ;;  %v3037_v42 = vpop.f32.mrf.mxu0 }
 0x4e5   : > { %v3174_v43 = vpop.f32.mrf.mxu1 }
 0x4e6   : > { %6081 = vst [vmem:[%s7321_s25 + $0x30] sm:$0xff] %v6029_v40   ;;  %v3252_v44 = vadd.f32 %v7314_v20, %v3212_v41  ;;  %v3175_v48 = vadd.f32 %v3174_v43, %v3037_v42 }
 0x4e8   : > { %v3284_v46 = vmax.f32 %v3252_v44, 0.0  ;;  %v3237_v53 = vadd.f32 %v7314_v20, %v3175_v48 }
 0x4ea   : > { %v6069_v47 = vpack.c.bf16 %v3284_v46, %v3283_v45  ;;  %v3077_v49 = vpop.f32.mrf.mxu2  ;;  %v3269_v57 = vmax.f32 %v3237_v53, 0.0 }
 0x4eb   : > { %v3214_v50 = vpop.f32.mrf.mxu3 }
 0x4ec   : > { %6089 = vst [vmem:[%s7321_s25 + $0x70] sm:$0xff] %v6069_v47   ;;  %v3039_v51 = vpop.f32.mrf.mxu0  ;;  %v3215_v55 = vadd.f32 %v3214_v50, %v3077_v49 }
 0x4ed   : > { %v3176_v52 = vpop.f32.mrf.mxu1 }
 0x4ee   : > { %v3177_v54 = vadd.f32 %v3176_v52, %v3039_v51  ;;  %v3253_v61 = vadd.f32 %v7314_v20, %v3215_v55 }
 0x4f0   : > { %v3238_v56 = vadd.f32 %v7314_v20, %v3177_v54  ;;  %v3285_v1 = vmax.f32 %v3253_v61, 0.0 }
 0x4f2   : > { %v3270_v58 = vmax.f32 %v3238_v56, 0.0  ;;  %v3079_v59 = vpop.f32.mrf.mxu2 }
 0x4f3   : > { %v3216_v60 = vpop.f32.mrf.mxu3 }
 0x4f4   : > { %v6034_v62 = vpack.c.bf16 %v3270_v58, %v3269_v57  ;;  %v3217_v63 = vadd.f32 %v3216_v60, %v3079_v59 }
 0x4f6   : > { %6082 = vst [vmem:[%s7321_s25 + $0x38] sm:$0xff] %v6034_v62   ;;  %v3254_v0 = vadd.f32 %v7314_v20, %v3217_v63 }
 0x4f8   : > { %v3286_v2 = vmax.f32 %v3254_v0, 0.0 }
 0x4fa   : > { %v6074_v3 = vpack.c.bf16 %v3286_v2, %v3285_v1 }
 0x4fc   : > { %6090 = vst [vmem:[%s7321_s25 + $0x78] sm:$0xff] %v6074_v3  }
 0x4fd PF: > { %3356 = sbr.rel (!%p1629_p2) target bundleno = 2034 (0x7f2), region = 109  ;;  %v5986_v4 = vld [vmem:[#allocation13 + $0x38] sm:$0xff] (%p1629_p2)  ;;  %v5985_v6 = vld [vmem:[#allocation13 + $0x30] sm:$0xff] (%p1629_p2)  ;;  %v5984_v8 = vld [vmem:[#allocation13 + $0x28] sm:$0xff] (%p1629_p2)  ;;  %s3405_s5 = sshra.s32 (%p1629_p2), %s4658_s16, 3 }
 0x4fe   : > { %v5978_v5 = vld [vmem:[#allocation11 + $0x38] sm:$0xff] (%p1629_p2)  ;;  %3617 = vmatpush.bf16.msra.mxu0 (%p1629_p2), %v5986_v4  ;;  %6107 = vmatpush.bf16.msra.mxu3 (%p1629_p2), %v5986_v4  ;;  %v5977_v7 = vld [vmem:[#allocation11 + $0x30] sm:$0xff] (%p1629_p2)  ;;  %v5976_v20 = vld [vmem:[#allocation11 + $0x28] sm:$0xff] (%p1629_p2)  ;;  %s5561_s6 = sshll.u32 (%p1629_p2), %s3405_s5, 2  ;;  %s7952_s26 = sld [smem:[#allocation38_spill]] (%p1629_p2) }
 0x4ff   : > { %3754 = vmatpush.bf16.msra.mxu1 (%p1629_p2), %v5978_v5  ;;  %v5983_v9 = vld [vmem:[#allocation13 + $0x20] sm:$0xff] (%p1629_p2)  ;;  %v5982_v11 = vld [vmem:[#allocation13 + $0x18] sm:$0xff] (%p1629_p2)  ;;  %v5981_v13 = vld [vmem:[#allocation13 + $0x10] sm:$0xff] (%p1629_p2)  ;;  %s7372_s29 = scalar_lea.vmem (%p1629_p2), [#allocation4], %s5561_s6  ;;  %s7953_s16 = sld [smem:[#allocation40_spill]] (%p1629_p2) }
 0x500   : > { %v5975_v10 = vld [vmem:[#allocation11 + $0x20] sm:$0xff] (%p1629_p2)  ;;  %v5974_v12 = vld [vmem:[#allocation11 + $0x18] sm:$0xff] (%p1629_p2)  ;;  %v5973_v14 = vld [vmem:[#allocation11 + $0x10] sm:$0xff] (%p1629_p2) }
 0x501   : > { %v5980_v15 = vld [vmem:[#allocation13 + $0x8] sm:$0xff] (%p1629_p2)  ;;  %v5979_v17 = vld [vmem:[#allocation13] sm:$0xff] (%p1629_p2)  ;;  %v3357_v19 = vld [vmem:[#allocation2 + $0xb0] sm:$0xff] (%p1629_p2) }
 0x502   : > { %3618 = vmatpush.bf16.msra.mxu0 %v5985_v6  ;;  %6108 = vmatpush.bf16.msra.mxu3 %v5985_v6  ;;  %v5972_v16 = vld [vmem:[#allocation11 + $0x8] sm:$0xff]  ;;  %v5971_v18 = vld [vmem:[#allocation11] sm:$0xff]  ;;  %v3359_v25 = vld [vmem:[#allocation2 + $0xd8] sm:$0xff] }
 0x503   : > { %3755 = vmatpush.bf16.msra.mxu1 %v5977_v7  ;;  %v3358_v21 = vld [vmem:[#allocation2] sm:$0xff]  ;;  %v3360_v26 = vld [vmem:[#allocation2 + $0x18] sm:$0xff]  ;;  %v5956_v27 = vld [vmem:[%s7372_s29 + $0x8] sm:$0xff] }
 0x504   : > { %v5955_v22 = vld [vmem:[%s7372_s29] sm:$0xff]  ;;  %v3389_v24 = vpack.c.bf16 %v3358_v21, %v3357_v19  ;;  %v5968_v28 = vld [vmem:[%s7372_s29 + $0x68] sm:$0xff]  ;;  %v3390_v29 = vpack.c.bf16 %v3360_v26, %v3359_v25  ;;  %v3361_v30 = vld [vmem:[#allocation2 + $0x50] sm:$0xff] }
 0x505   : > { %v5967_v23 = vld [vmem:[%s7372_s29 + $0x60] sm:$0xff]  ;;  %v3362_v31 = vld [vmem:[#allocation2 + $0x68] sm:$0xff]  ;;  %v5957_v32 = vld [vmem:[%s7372_s29 + $0x10] sm:$0xff] }
 0x506   : > { %3619 = vmatpush.bf16.msra.mxu0 %v5984_v8  ;;  %6109 = vmatpush.bf16.msra.mxu3 %v5984_v8  ;;  %v5969_v33 = vld [vmem:[%s7372_s29 + $0x70] sm:$0xff]  ;;  %v3391_v34 = vpack.c.bf16 %v3362_v31, %v3361_v30  ;;  %v3364_v36 = vld [vmem:[#allocation2 + $0x48] sm:$0xff]  ;;  %v5958_v37 = vld [vmem:[%s7372_s29 + $0x18] sm:$0xff] }
 0x507   : > { %3756 = vmatpush.bf16.msra.mxu1 %v5976_v20  ;;  %v3363_v35 = vld [vmem:[#allocation2 + $0x30] sm:$0xff]  ;;  %v5970_v38 = vld [vmem:[%s7372_s29 + $0x78] sm:$0xff]  ;;  %v3381_v40 = vld [vmem:[#allocation2 + $0xa8] sm:$0xff] }
 0x508   : > { %v3392_v39 = vpack.c.bf16 %v3364_v36, %v3363_v35  ;;  %v3382_v41 = vld [vmem:[#allocation2 + $0xd0] sm:$0xff]  ;;  %v3365_v42 = vld [vmem:[#allocation2 + $0x80] sm:$0xff]  ;;  %v3366_v43 = vld [vmem:[#allocation2 + $0x88] sm:$0xff] }
 0x509   : > { %v5959_v44 = vld [vmem:[%s7372_s29 + $0x20] sm:$0xff]  ;;  %v3401_v45 = vpack.c.bf16 %v3382_v41, %v3381_v40  ;;  %v3393_v46 = vpack.c.bf16 %v3366_v43, %v3365_v42  ;;  %v5994_v47 = vld [vmem:[#allocation14 + $0x38] sm:$0xff]  ;;  %v3383_v48 = vld [vmem:[#allocation2 + $0x10] sm:$0xff] }
 0x50a   : > { %3620 = vmatpush.bf16.msra.mxu0 %v5983_v9  ;;  %6110 = vmatpush.bf16.msra.mxu3 %v5983_v9  ;;  %v3384_v49 = vld [vmem:[#allocation2 + $0x28] sm:$0xff]  ;;  %v3368_v51 = vld [vmem:[#allocation2 + $0xb8] sm:$0xff]  ;;  %v5993_v55 = vld [vmem:[#allocation14 + $0x30] sm:$0xff] }
 0x50b   : > { %3757 = vmatpush.bf16.msra.mxu1 %v5975_v10  ;;  %3995 = vmatpush.bf16.msra.mxu2 %v5994_v47  ;;  %v3367_v50 = vld [vmem:[#allocation2 + $0xe8] sm:$0xff]  ;;  %v3402_v53 = vpack.c.bf16 %v3384_v49, %v3383_v48  ;;  %v5991_v57 = vld [vmem:[#allocation14 + $0x20] sm:$0xff]  ;;  %v3386_v59 = vld [vmem:[#allocation2 + $0xf8] sm:$0xff] }
 0x50c   : > { %v5960_v52 = vld [vmem:[%s7372_s29 + $0x28] sm:$0xff]  ;;  %v3394_v54 = vpack.c.bf16 %v3368_v51, %v3367_v50  ;;  %v3385_v58 = vld [vmem:[#allocation2 + $0xa0] sm:$0xff]  ;;  %v3370_v61 = vld [vmem:[#allocation2 + $0xf0] sm:$0xff] }
 0x50d   : > { %v5992_v56 = vld [vmem:[#allocation14 + $0x28] sm:$0xff]  ;;  %v3369_v60 = vld [vmem:[#allocation2 + $0x60] sm:$0xff]  ;;  %v5961_v62 = vld [vmem:[%s7372_s29 + $0x30] sm:$0xff]  ;;  %v3403_v63 = vpack.c.bf16 %v3386_v59, %v3385_v58 }
 0x50e   : > { %3621 = vmatpush.bf16.msra.mxu0 %v5982_v11  ;;  %6111 = vmatpush.bf16.msra.mxu3 %v5982_v11  ;;  %v3395_v0 = vpack.c.bf16 %v3370_v61, %v3369_v60  ;;  %v5990_v1 = vld [vmem:[#allocation14 + $0x18] sm:$0xff]  ;;  %v5989_v2 = vld [vmem:[#allocation14 + $0x10] sm:$0xff]  ;;  %v5988_v3 = vld [vmem:[#allocation14 + $0x8] sm:$0xff] }
 0x50f   : > { %3758 = vmatpush.bf16.msra.mxu1 %v5974_v12  ;;  %3996 = vmatpush.bf16.msra.mxu2 %v5993_v55  ;;  %v3387_v4 = vld [vmem:[#allocation2 + $0x20] sm:$0xff]  ;;  %v3371_v6 = vld [vmem:[#allocation2 + $0x8] sm:$0xff]  ;;  %v3373_v11 = vld [vmem:[#allocation2 + $0x38] sm:$0xff] }
 0x510   : > { %v5987_v8 = vld [vmem:[#allocation14] sm:$0xff]  ;;  %v5964_v31 = vld [vmem:[%s7372_s29 + $0x48] sm:$0xff]  ;;  %v5965_v48 = vld [vmem:[%s7372_s29 + $0x50] sm:$0xff] }
 0x511   : > { %v3375_v26 = vld [vmem:[#allocation2 + $0x40] sm:$0xff]  ;;  %v3379_v60 = vld [vmem:[#allocation2 + $0x70] sm:$0xff] }
 0x512   : > { %3622 = vmatpush.bf16.msra.mxu0 %v5981_v13  ;;  %6112 = vmatpush.bf16.msra.mxu3 %v5981_v13  ;;  %v5963_v13 = vld [vmem:[%s7372_s29 + $0x40] sm:$0xff] }
 0x513   : > { %3759 = vmatpush.bf16.msra.mxu1 %v5973_v14  ;;  %3997 = vmatpush.bf16.msra.mxu2 %v5992_v56  ;;  %v3377_v43 = vld [vmem:[#allocation2 + $0xe0] sm:$0xff] }
 0x514   : > { %v3380_v61 = vld [vmem:[#allocation2 + $0xc0] sm:$0xff] }
 0x516   : > { %3623 = vmatpush.bf16.msra.mxu0 %v5980_v15  ;;  %6113 = vmatpush.bf16.msra.mxu3 %v5980_v15 }
 0x517   : > { %3760 = vmatpush.bf16.msra.mxu1 %v5972_v16  ;;  %3998 = vmatpush.bf16.msra.mxu2 %v5991_v57 }
 0x51a   : > { %3624 = vmatpush.bf16.msra.mxu0 %v5979_v17  ;;  %6114 = vmatpush.bf16.msra.mxu3 %v5979_v17 }
 0x51b   : > { %3761 = vmatpush.bf16.msra.mxu1 %v5971_v18  ;;  %3999 = vmatpush.bf16.msra.mxu2 %v5990_v1 }
 0x51d   : > { %3625 = vmatmul.bf16.vlgmr.msra.gmra.mxu0 %v5955_v22  ;;  %3685 = vmatmul.bf16.vlgmr.msra.gmra.mxu3 %v5967_v23 }
 0x51e   : > { %6115 = vmatpush.bf16.msrb.mxu3 %v5978_v5  ;;  %3762 = vmatmul.bf16.vlgmr.msra.gmra.mxu1 %v3389_v24  ;;  %v3388_v5 = vld [vmem:[#allocation2 + $0x98] sm:$0xff] }
 0x51f   : > { %4000 = vmatpush.bf16.msra.mxu2 %v5989_v2  ;;  %v3404_v9 = vpack.c.bf16 %v3388_v5, %v3387_v4  ;;  %v3400_v4 = vpack.c.bf16 %v3380_v61, %v3379_v60 }
 0x522   : > { %6116 = vmatpush.bf16.msrb.mxu3 %v5977_v7  ;;  %v3372_v7 = vld [vmem:[#allocation2 + $0x78] sm:$0xff] }
 0x523   : > { %4001 = vmatpush.bf16.msra.mxu2 %v5988_v3 }
 0x526   : > { %6117 = vmatpush.bf16.msrb.mxu3 %v5976_v20  ;;  %v5962_v20 = vld [vmem:[%s7372_s29 + $0x38] sm:$0xff] }
 0x527   : > { %4002 = vmatpush.bf16.msra.mxu2 %v5987_v8 }
 0x52a   : > { %6118 = vmatpush.bf16.msrb.mxu3 %v5975_v10  ;;  %v3396_v10 = vpack.c.bf16 %v3372_v7, %v3371_v6 }
 0x52d   : > { %3630 = vmatmul.bf16.gmra.mxu0 %v5956_v27  ;;  %3690 = vmatmul.bf16.gmra.mxu3 %v5968_v28  ;;  %v3376_v27 = vld [vmem:[#allocation2 + $0xc8] sm:$0xff] }
 0x52e   : > { %6119 = vmatpush.bf16.msrb.mxu3 %v5974_v12  ;;  %3767 = vmatmul.bf16.gmra.mxu1 %v3390_v29  ;;  %v3374_v12 = vld [vmem:[#allocation2 + $0x58] sm:$0xff] }
 0x52f   : > { %v3397_v15 = vpack.c.bf16 %v3374_v12, %v3373_v11 }
 0x532   : > { %6120 = vmatpush.bf16.msrb.mxu3 %v5973_v14 }
 0x536   : > { %6121 = vmatpush.bf16.msrb.mxu3 %v5972_v16 }
 0x53a   : > { %6122 = vmatpush.bf16.msrb.mxu3 %v5971_v18  ;;  %v7390_v18 = vld [vmem:[%s7952_s26] ss:$0 sm:$0xff] }
 0x53d   : > { %3635 = vmatmul.bf16.gmra.mxu0 %v5957_v32  ;;  %3695 = vmatmul.bf16.gmra.mxu3 %v5969_v33 }
 0x53e   : > { %3772 = vmatmul.bf16.gmra.mxu1 %v3391_v34  ;;  %6123 = vmatpush.bf16.msra.mxu3 %v5994_v47  ;;  %v3398_v34 = vpack.c.bf16 %v3376_v27, %v3375_v26 }
 0x542   : > { %6124 = vmatpush.bf16.msra.mxu3 %v5993_v55 }
 0x546   : > { %6125 = vmatpush.bf16.msra.mxu3 %v5992_v56 }
 0x54a   : > { %6126 = vmatpush.bf16.msra.mxu3 %v5991_v57 }
 0x54d   : > { %3640 = vmatmul.bf16.gmra.mxu0 %v5958_v37  ;;  %3700 = vmatmul.bf16.gmra.mxu3 %v5970_v38 }
 0x54e   : > { %3777 = vmatmul.bf16.gmra.mxu1 %v3392_v39  ;;  %6127 = vmatpush.bf16.msra.mxu3 %v5990_v1  ;;  %v5966_v1 = vld [vmem:[%s7372_s29 + $0x58] sm:$0xff] }
 0x552   : > { %6128 = vmatpush.bf16.msra.mxu3 %v5989_v2 }
 0x556   : > { %6129 = vmatpush.bf16.msra.mxu3 %v5988_v3 }
 0x55a   : > { %6130 = vmatpush.bf16.msra.mxu3 %v5987_v8 }
 0x55d   : > { %3645 = vmatmul.bf16.gmra.mxu0 %v5959_v44  ;;  %3822 = vmatmul.bf16.vlgmr.msrb.gmra.mxu3 %v3401_v45  ;;  %v3378_v44 = vld [vmem:[#allocation2 + $0x90] sm:$0xff] }
 0x55e   : > { %3782 = vmatmul.bf16.gmra.mxu1 %v3393_v46  ;;  %v3399_v51 = vpack.c.bf16 %v3378_v44, %v3377_v43 }
 0x56d   : > { %3650 = vmatmul.bf16.gmra.mxu0 %v5960_v52  ;;  %3827 = vmatmul.bf16.gmra.mxu3 %v3402_v53 }
 0x56e   : > { %3787 = vmatmul.bf16.gmra.mxu1 %v3394_v54 }
 0x57d   : > { %3655 = vmatmul.bf16.gmra.mxu0 %v5961_v62  ;;  %3832 = vmatmul.bf16.gmra.mxu3 %v3403_v63 }
 0x57e   : > { %3792 = vmatmul.bf16.gmra.mxu1 %v3395_v0 }
 0x58d   : > { %3660 = vmatmul.bf16.gmra.mxu0 %v5962_v20  ;;  %3837 = vmatmul.bf16.gmra.mxu3 %v3404_v9 }
 0x58e   : > { %3797 = vmatmul.bf16.gmra.mxu1 %v3396_v10 }
 0x59a   : > { %v3626_v14 = vpop.f32.mrf.mxu0 }
 0x59b   : > { %v3763_v16 = vpop.f32.mrf.mxu1 }
 0x59c   : > { %v3764_v17 = vadd.f32 %v3763_v16, %v3626_v14 }
 0x59d   : > { %3665 = vmatmul.bf16.gmra.mxu0 %v5963_v13 }
 0x59e   : > { %3802 = vmatmul.bf16.gmra.mxu1 %v3397_v15  ;;  %v3847_v23 = vadd.f32 %v7390_v18, %v3764_v17 }
 0x5a0   : > { %v7392_v19 = vpop.f32.mrf.mxu3  ;;  %v3879_v28 = vmax.f32 %v3847_v23, 0.0 }
 0x5a2   : > { %v3628_v21 = vpop.f32.mrf.mxu0 }
 0x5a3   : > { %v3765_v22 = vpop.f32.mrf.mxu1 }
 0x5a4   : > { %v3766_v24 = vadd.f32 %v3765_v22, %v3628_v21 }
 0x5a6   : > { %v3848_v25 = vadd.f32 %v7390_v18, %v3766_v24 }
 0x5a8   : > { %v3880_v29 = vmax.f32 %v3848_v25, 0.0  ;;  %v7396_v30 = vpop.f32.mrf.mxu3 }
 0x5aa   : > { %v3631_v32 = vpop.f32.mrf.mxu0  ;;  %v3911_v33 = vpack.c.bf16 %v3880_v29, %v3879_v28 }
 0x5ab   : > { %v3768_v35 = vpop.f32.mrf.mxu1 }
 0x5ac   : > { %4003 = vmatmul.bf16.vlgmr.msra.gmra.mxu2 %v3911_v33  ;;  %v3769_v36 = vadd.f32 %v3768_v35, %v3631_v32 }
 0x5ad   : > { %3670 = vmatmul.bf16.gmra.mxu0 %v5964_v31 }
 0x5ae   : > { %3807 = vmatmul.bf16.gmra.mxu1 %v3398_v34  ;;  %v3849_v40 = vadd.f32 %v7390_v18, %v3769_v36 }
 0x5b0   : > { %v7399_v37 = vpop.f32.mrf.mxu3  ;;  %v3881_v45 = vmax.f32 %v3849_v40, 0.0 }
 0x5b2   : > { %v3633_v38 = vpop.f32.mrf.mxu0 }
 0x5b3   : > { %v3770_v39 = vpop.f32.mrf.mxu1 }
 0x5b4   : > { %v3771_v41 = vadd.f32 %v3770_v39, %v3633_v38 }
 0x5b6   : > { %v3850_v42 = vadd.f32 %v7390_v18, %v3771_v41 }
 0x5b8   : > { %v3882_v46 = vmax.f32 %v3850_v42, 0.0  ;;  %v7403_v47 = vpop.f32.mrf.mxu3 }
 0x5ba   : > { %v3636_v49 = vpop.f32.mrf.mxu0  ;;  %v3912_v50 = vpack.c.bf16 %v3882_v46, %v3881_v45 }
 0x5bb   : > { %v3773_v52 = vpop.f32.mrf.mxu1 }
 0x5bc   : > { %4008 = vmatmul.bf16.gmra.mxu2 %v3912_v50  ;;  %v3774_v53 = vadd.f32 %v3773_v52, %v3636_v49 }
 0x5bd   : > { %3675 = vmatmul.bf16.gmra.mxu0 %v5965_v48 }
 0x5be   : > { %3812 = vmatmul.bf16.gmra.mxu1 %v3399_v51  ;;  %v3851_v57 = vadd.f32 %v7390_v18, %v3774_v53 }
 0x5c0   : > { %v7406_v54 = vpop.f32.mrf.mxu3  ;;  %v3883_v62 = vmax.f32 %v3851_v57, 0.0 }
 0x5c2   : > { %v3638_v55 = vpop.f32.mrf.mxu0 }
 0x5c3   : > { %v3775_v56 = vpop.f32.mrf.mxu1 }
 0x5c4   : > { %v3776_v58 = vadd.f32 %v3775_v56, %v3638_v55 }
 0x5c6   : > { %v3852_v59 = vadd.f32 %v7390_v18, %v3776_v58 }
 0x5c8   : > { %v3884_v63 = vmax.f32 %v3852_v59, 0.0  ;;  %v7410_v0 = vpop.f32.mrf.mxu3 }
 0x5ca   : > { %v3641_v2 = vpop.f32.mrf.mxu0  ;;  %v3913_v3 = vpack.c.bf16 %v3884_v63, %v3883_v62 }
 0x5cb   : > { %v3778_v5 = vpop.f32.mrf.mxu1 }
 0x5cc   : > { %4013 = vmatmul.bf16.gmra.mxu2 %v3913_v3  ;;  %v3779_v6 = vadd.f32 %v3778_v5, %v3641_v2 }
 0x5cd   : > { %3680 = vmatmul.bf16.gmra.mxu0 %v5966_v1 }
 0x5ce   : > { %3817 = vmatmul.bf16.gmra.mxu1 %v3400_v4  ;;  %v3853_v9 = vadd.f32 %v7390_v18, %v3779_v6 }
 0x5d0   : > { %v7413_v7 = vpop.f32.mrf.mxu3  ;;  %v3885_v12 = vmax.f32 %v3853_v9, 0.0 }
 0x5d2   : > { %v3643_v8 = vpop.f32.mrf.mxu0 }
 0x5d3   : > { %v3780_v20 = vpop.f32.mrf.mxu1 }
 0x5d4   : > { %v3781_v10 = vadd.f32 %v3780_v20, %v3643_v8 }
 0x5d6   : > { %v3854_v11 = vadd.f32 %v7390_v18, %v3781_v10 }
 0x5d8   : > { %v3886_v13 = vmax.f32 %v3854_v11, 0.0  ;;  %v7417_v14 = vpop.f32.mrf.mxu3 }
 0x5da   : > { %v3646_v15 = vpop.f32.mrf.mxu0  ;;  %v3914_v16 = vpack.c.bf16 %v3886_v13, %v3885_v12 }
 0x5db   : > { %v3783_v17 = vpop.f32.mrf.mxu1 }
 0x5dc   : > { %4018 = vmatmul.bf16.gmra.mxu2 %v3914_v16  ;;  %v3784_v21 = vadd.f32 %v3783_v17, %v3646_v15 }
 0x5de   : > { %v3855_v25 = vadd.f32 %v7390_v18, %v3784_v21 }
 0x5e0   : > { %v3823_v22 = vpop.f32.mrf.mxu3  ;;  %v3887_v29 = vmax.f32 %v3855_v25, 0.0 }
 0x5e1   : > { %v3824_v27 = vadd.f32 %v3823_v22, %v7392_v19 }
 0x5e2   : > { %v3648_v23 = vpop.f32.mrf.mxu0 }
 0x5e3   : > { %v3785_v24 = vpop.f32.mrf.mxu1  ;;  %v3871_v33 = vadd.f32 %v7390_v18, %v3824_v27 }
 0x5e4   : > { %v3786_v26 = vadd.f32 %v3785_v24, %v3648_v23 }
 0x5e5   : > { %v3903_v40 = vmax.f32 %v3871_v33, 0.0 }
 0x5e6   : > { %v3856_v28 = vadd.f32 %v7390_v18, %v3786_v26 }
 0x5e8   : > { %v3888_v31 = vmax.f32 %v3856_v28, 0.0  ;;  %v3825_v32 = vpop.f32.mrf.mxu3 }
 0x5e9   : > { %v3826_v34 = vadd.f32 %v3825_v32, %v7396_v30 }
 0x5ea   : > { %v3651_v35 = vpop.f32.mrf.mxu0  ;;  %v3915_v36 = vpack.c.bf16 %v3888_v31, %v3887_v29 }
 0x5eb   : > { %v3872_v38 = vadd.f32 %v7390_v18, %v3826_v34  ;;  %v3788_v39 = vpop.f32.mrf.mxu1 }
 0x5ec   : > { %4023 = vmatmul.bf16.gmra.mxu2 %v3915_v36  ;;  %v3789_v43 = vadd.f32 %v3788_v39, %v3651_v35 }
 0x5ed   : > { %v3904_v41 = vmax.f32 %v3872_v38, 0.0 }
 0x5ee   : > { %v3857_v46 = vadd.f32 %v7390_v18, %v3789_v43 }
 0x5ef   : > { %v3923_v42 = vpack.c.bf16 %v3904_v41, %v3903_v40 }
 0x5f0   : > { %v3828_v19 = vpop.f32.mrf.mxu3  ;;  %v3889_v50 = vmax.f32 %v3857_v46, 0.0  ;;  %v4084_v46 = vlaneseq }
 0x5f1   : > { %4063 = vmatmul.bf16.vlgmr.msra.gmra.mxu3 %v3923_v42  ;;  %v3829_v49 = vadd.f32 %v3828_v19, %v7399_v37 }
 0x5f2   : > { %v3653_v44 = vpop.f32.mrf.mxu0 }
 0x5f3   : > { %v3790_v45 = vpop.f32.mrf.mxu1  ;;  %v3873_v53 = vadd.f32 %v7390_v18, %v3829_v49 }
 0x5f4   : > { %v3791_v48 = vadd.f32 %v3790_v45, %v3653_v44 }
 0x5f5   : > { %v3905_v60 = vmax.f32 %v3873_v53, 0.0 }
 0x5f6   : > { %v3858_v30 = vadd.f32 %v7390_v18, %v3791_v48 }
 0x5f8   : > { %v3890_v51 = vmax.f32 %v3858_v30, 0.0  ;;  %v3830_v52 = vpop.f32.mrf.mxu3 }
 0x5f9   : > { %v3831_v55 = vadd.f32 %v3830_v52, %v7403_v47  ;;  %v7450_v52 = vld [vmem:[%s7953_s16] ss:$0 sm:$0xff] }
 0x5fa   : > { %v3656_v56 = vpop.f32.mrf.mxu0  ;;  %v3916_v57 = vpack.c.bf16 %v3890_v51, %v3889_v50  ;;  %v7445_v51 = vand.u32 127, %v4084_v46 }
 0x5fb   : > { %v3874_v58 = vadd.f32 %v7390_v18, %v3831_v55  ;;  %v3793_v59 = vpop.f32.mrf.mxu1 }
 0x5fc   : > { %4028 = vmatmul.bf16.gmra.mxu2 %v3916_v57  ;;  %v3794_v63 = vadd.f32 %v3793_v59, %v3656_v56  ;;  %vm4086_vm0 = vcmp.lt.s32.totalorder %v7445_v51, 4 }
 0x5fd   : > { %v3906_v61 = vmax.f32 %v3874_v58, 0.0 }
 0x5fe   : > { %v3859_v3 = vadd.f32 %v7390_v18, %v3794_v63 }
 0x5ff   : > { %v3924_v62 = vpack.c.bf16 %v3906_v61, %v3905_v60 }
 0x600   : > { %v3833_v37 = vpop.f32.mrf.mxu3  ;;  %v3891_v6 = vmax.f32 %v3859_v3, 0.0 }
 0x601   : > { %4068 = vmatmul.bf16.gmra.mxu3 %v3924_v62  ;;  %v3834_v5 = vadd.f32 %v3833_v37, %v7406_v54 }
 0x602   : > { %v3658_v1 = vpop.f32.mrf.mxu0 }
 0x603   : > { %v3795_v2 = vpop.f32.mrf.mxu1  ;;  %v3875_v9 = vadd.f32 %v7390_v18, %v3834_v5 }
 0x604   : > { %v3796_v4 = vadd.f32 %v3795_v2, %v3658_v1 }
 0x605   : > { %v3907_v16 = vmax.f32 %v3875_v9, 0.0 }
 0x606   : > { %v3860_v47 = vadd.f32 %v7390_v18, %v3796_v4 }
 0x608   : > { %v3892_v8 = vmax.f32 %v3860_v47, 0.0  ;;  %v3835_v20 = vpop.f32.mrf.mxu3 }
 0x609   : > { %v3836_v10 = vadd.f32 %v3835_v20, %v7410_v0 }
 0x60a   : > { %v3661_v11 = vpop.f32.mrf.mxu0  ;;  %v3917_v12 = vpack.c.bf16 %v3892_v8, %v3891_v6 }
 0x60b   : > { %v3876_v13 = vadd.f32 %v7390_v18, %v3836_v10  ;;  %v3798_v15 = vpop.f32.mrf.mxu1 }
 0x60c   : > { %4033 = vmatmul.bf16.gmra.mxu2 %v3917_v12  ;;  %v3799_v22 = vadd.f32 %v3798_v15, %v3661_v11 }
 0x60d   : > { %v3908_v17 = vmax.f32 %v3876_v13, 0.0 }
 0x60e   : > { %v3861_v25 = vadd.f32 %v7390_v18, %v3799_v22 }
 0x60f   : > { %v3925_v21 = vpack.c.bf16 %v3908_v17, %v3907_v16 }
 0x610   : > { %v3838_v54 = vpop.f32.mrf.mxu3  ;;  %v3893_v28 = vmax.f32 %v3861_v25, 0.0 }
 0x611   : > { %4073 = vmatmul.bf16.gmra.mxu3 %v3925_v21  ;;  %v3839_v27 = vadd.f32 %v3838_v54, %v7413_v7 }
 0x612   : > { %v3663_v23 = vpop.f32.mrf.mxu0 }
 0x613   : > { %v3800_v24 = vpop.f32.mrf.mxu1  ;;  %v3877_v32 = vadd.f32 %v7390_v18, %v3839_v27 }
 0x614   : > { %v3801_v26 = vadd.f32 %v3800_v24, %v3663_v23 }
 0x615   : > { %v3909_v39 = vmax.f32 %v3877_v32, 0.0 }
 0x616   : > { %v3862_v0 = vadd.f32 %v7390_v18, %v3801_v26 }
 0x618   : > { %v3894_v29 = vmax.f32 %v3862_v0, 0.0  ;;  %v3840_v31 = vpop.f32.mrf.mxu3 }
 0x619   : > { %v3841_v33 = vadd.f32 %v3840_v31, %v7417_v14 }
 0x61a   : > { %v3666_v34 = vpop.f32.mrf.mxu0  ;;  %v3918_v35 = vpack.c.bf16 %v3894_v29, %v3893_v28 }
 0x61b   : > { %v3878_v36 = vadd.f32 %v7390_v18, %v3841_v33  ;;  %v3803_v38 = vpop.f32.mrf.mxu1 }
 0x61c   : > { %4038 = vmatmul.bf16.gmra.mxu2 %v3918_v35  ;;  %v3804_v42 = vadd.f32 %v3803_v38, %v3666_v34 }
 0x61d   : > { %v3910_v40 = vmax.f32 %v3878_v36, 0.0 }
 0x61e   : > { %v3863_v19 = vadd.f32 %v7390_v18, %v3804_v42 }
 0x61f   : > { %v3926_v41 = vpack.c.bf16 %v3910_v40, %v3909_v39 }
 0x620   : > { %v3895_v14 = vmax.f32 %v3863_v19, 0.0 }
 0x621   : > { %4078 = vmatmul.bf16.gmra.mxu3 %v3926_v41 }
 0x622   : > { %v3668_v7 = vpop.f32.mrf.mxu0 }
 0x623   : > { %v3805_v43 = vpop.f32.mrf.mxu1 }
 0x624   : > { %v3806_v44 = vadd.f32 %v3805_v43, %v3668_v7 }
 0x626   : > { %v3864_v45 = vadd.f32 %v7390_v18, %v3806_v44 }
 0x628   : > { %v3896_v48 = vmax.f32 %v3864_v45, 0.0 }
 0x62a   : > { %v3671_v49 = vpop.f32.mrf.mxu0  ;;  %v3919_v30 = vpack.c.bf16 %v3896_v48, %v3895_v14 }
 0x62b   : > { %v3808_v50 = vpop.f32.mrf.mxu1 }
 0x62c   : > { %4043 = vmatmul.bf16.gmra.mxu2 %v3919_v30  ;;  %v3809_v55 = vadd.f32 %v3808_v50, %v3671_v49 }
 0x62e   : > { %v3865_v60 = vadd.f32 %v7390_v18, %v3809_v55 }
 0x62f   : > { %v4004_v53 = vpop.f32.mrf.mxu2 }
 0x630   : > { %v4005_v56 = vadd.f32 %v7450_v52, %v4004_v53  ;;  %v3897_v37 = vmax.f32 %v3865_v60, 0.0 }
 0x632   : > { %v3673_v57 = vpop.f32.mrf.mxu0  ;;  %v7456_v58 = vsel %vm4086_vm0, %v4005_v56, -1e+30 }
 0x633   : > { %v3810_v59 = vpop.f32.mrf.mxu1  ;;  %4119 = vmax.xlane.f32.xlu0 %v7456_v58 }
 0x634   : > { %v3811_v61 = vadd.f32 %v3810_v59, %v3673_v57 }
 0x636   : > { %v3866_v62 = vadd.f32 %v7390_v18, %v3811_v61 }
 0x637   : > { %v4006_v63 = vpop.f32.mrf.mxu2 }
 0x638   : > { %v3898_v1 = vmax.f32 %v3866_v62, 0.0  ;;  %v4007_v2 = vadd.f32 %v7450_v52, %v4006_v63 }
 0x63a   : > { %v3676_v3 = vpop.f32.mrf.mxu0  ;;  %v7464_v4 = vsel %vm4086_vm0, %v4007_v2, -1e+30  ;;  %v3920_v5 = vpack.c.bf16 %v3898_v1, %v3897_v37 }
 0x63b   : > { %v3813_v47 = vpop.f32.mrf.mxu1  ;;  %4121 = vmax.xlane.f32.xlu0 %v7464_v4 }
 0x63c   : > { %4048 = vmatmul.bf16.gmra.mxu2 %v3920_v5  ;;  %v3814_v8 = vadd.f32 %v3813_v47, %v3676_v3 }
 0x63e   : > { %v3867_v12 = vadd.f32 %v7390_v18, %v3814_v8 }
 0x63f   : > { %v4009_v6 = vpop.f32.mrf.mxu2 }
 0x640   : > { %v4010_v20 = vadd.f32 %v7450_v52, %v4009_v6  ;;  %v3899_v17 = vmax.f32 %v3867_v12, 0.0 }
 0x642   : > { %v3678_v9 = vpop.f32.mrf.mxu0  ;;  %v7470_v10 = vsel %vm4086_vm0, %v4010_v20, -1e+30 }
 0x643   : > { %v3815_v11 = vpop.f32.mrf.mxu1  ;;  %4123 = vmax.xlane.f32.xlu1 %v7470_v10 }
 0x644   : > { %v3816_v13 = vadd.f32 %v3815_v11, %v3678_v9 }
 0x646   : > { %v3868_v15 = vadd.f32 %v7390_v18, %v3816_v13 }
 0x647   : > { %v4011_v16 = vpop.f32.mrf.mxu2 }
 0x648   : > { %v3900_v21 = vmax.f32 %v3868_v15, 0.0  ;;  %v4012_v22 = vadd.f32 %v7450_v52, %v4011_v16 }
 0x64a   : > { %v3681_v54 = vpop.f32.mrf.mxu0  ;;  %v7478_v23 = vsel %vm4086_vm0, %v4012_v22, -1e+30  ;;  %v3921_v24 = vpack.c.bf16 %v3900_v21, %v3899_v17 }
 0x64b   : > { %v3818_v25 = vpop.f32.mrf.mxu1  ;;  %4125 = vmax.xlane.f32.xlu1 %v7478_v23 }
 0x64c   : > { %4053 = vmatmul.bf16.gmra.mxu2 %v3921_v24  ;;  %v3819_v27 = vadd.f32 %v3818_v25, %v3681_v54 }
 0x64e   : > { %v3869_v32 = vadd.f32 %v7390_v18, %v3819_v27 }
 0x64f   : > { %v4014_v26 = vpop.f32.mrf.mxu2 }
 0x650   : > { %v4015_v0 = vadd.f32 %v7450_v52, %v4014_v26  ;;  %v3901_v36 = vmax.f32 %v3869_v32, 0.0 }
 0x652   : > { %v3683_v28 = vpop.f32.mrf.mxu0  ;;  %v7484_v29 = vsel %vm4086_vm0, %v4015_v0, -1e+30 }
 0x653   : > { %v3820_v31 = vpop.f32.mrf.mxu1  ;;  %4127 = vmax.xlane.f32.xlu2 %v7484_v29 }
 0x654   : > { %v3821_v33 = vadd.f32 %v3820_v31, %v3683_v28 }
 0x656   : > { %v3870_v34 = vadd.f32 %v7390_v18, %v3821_v33 }
 0x657   : > { %v4016_v35 = vpop.f32.mrf.mxu2 }
 0x658   : > { %v3902_v38 = vmax.f32 %v3870_v34, 0.0  ;;  %v4017_v39 = vadd.f32 %v7450_v52, %v4016_v35 }
 0x65a   : > { %v7492_v40 = vsel %vm4086_vm0, %v4017_v39, -1e+30  ;;  %v3922_v41 = vpack.c.bf16 %v3902_v38, %v3901_v36 }
 0x65b   : > { %4129 = vmax.xlane.f32.xlu2 %v7492_v40 }
 0x65c   : > { %4058 = vmatmul.bf16.gmra.mxu2 %v3922_v41 }
 0x65f   : > { %v4019_v42 = vpop.f32.mrf.mxu2 }
 0x660   : > { %v4020_v7 = vadd.f32 %v7450_v52, %v4019_v42 }
 0x662   : > { %v7498_v43 = vsel %vm4086_vm0, %v4020_v7, -1e+30 }
 0x663   : > { %4131 = vmax.xlane.f32.xlu0 %v7498_v43 }
 0x667   : > { %v4021_v18 = vpop.f32.mrf.mxu2 }
 0x668   : > { %v4022_v19 = vadd.f32 %v7450_v52, %v4021_v18 }
 0x66a   : > { %v7504_v44 = vsel %vm4086_vm0, %v4022_v19, -1e+30 }
 0x66b   : > { %4133 = vmax.xlane.f32.xlu1 %v7504_v44 }
 0x66f   : > { %v4024_v45 = vpop.f32.mrf.mxu2 }
 0x670   : > { %v4025_v46 = vadd.f32 %v7450_v52, %v4024_v45 }
 0x672   : > { %v7510_v14 = vsel %vm4086_vm0, %v4025_v46, -1e+30 }
 0x673   : > { %4135 = vmax.xlane.f32.xlu2 %v7510_v14 }
 0x674   : > { %v4064_v48 = vpop.f32.mrf.mxu3 }
 0x675   : > { %v4065_v49 = vadd.f32 %v7450_v52, %v4064_v48 }
 0x677   : > { %v4026_v30 = vpop.f32.mrf.mxu2  ;;  %v7516_v50 = vsel %vm4086_vm0, %v4065_v49, -1e+30 }
 0x678   : > { %4167 = vmax.xlane.f32.xlu0 %v7516_v50  ;;  %v4027_v53 = vadd.f32 %v7450_v52, %v4026_v30 }
 0x67a   : > { %v7527_v60 = vsel %vm4086_vm0, %v4027_v53, -1e+30 }
 0x67c   : > { %v4066_v55 = vpop.f32.mrf.mxu3 }
 0x67d   : > { %v4067_v56 = vadd.f32 %v7450_v52, %v4066_v55 }
 0x67f   : > { %v4029_v57 = vpop.f32.mrf.mxu2  ;;  %v7523_v59 = vsel %vm4086_vm0, %v4067_v56, -1e+30 }
 0x680   : > { %4169 = vmax.xlane.f32.xlu1 %v7523_v59  ;;  %4137 = vmax.xlane.f32.xlu0 %v7527_v60  ;;  %v4030_v61 = vadd.f32 %v7450_v52, %v4029_v57 }
 0x682   : > { %v7539_v2 = vsel %vm4086_vm0, %v4030_v61, -1e+30 }
 0x684   : > { %v4069_v62 = vpop.f32.mrf.mxu3 }
 0x685   : > { %v4070_v63 = vadd.f32 %v7450_v52, %v4069_v62 }
 0x687   : > { %v4031_v37 = vpop.f32.mrf.mxu2  ;;  %v7535_v1 = vsel %vm4086_vm0, %v4070_v63, -1e+30 }
 0x688   : > { %4171 = vmax.xlane.f32.xlu2 %v7535_v1  ;;  %4139 = vmax.xlane.f32.xlu1 %v7539_v2  ;;  %v4032_v3 = vadd.f32 %v7450_v52, %v4031_v37 }
 0x68a   : > { %v7547_v8 = vsel %vm4086_vm0, %v4032_v3, -1e+30 }
 0x68c   : > { %v4071_v5 = vpop.f32.mrf.mxu3 }
 0x68d   : > { %v4072_v47 = vadd.f32 %v7450_v52, %v4071_v5 }
 0x68f   : > { %v4034_v6 = vpop.f32.mrf.mxu2  ;;  %v7551_v20 = vsel %vm4086_vm0, %v4072_v47, -1e+30 }
 0x690   : > { %4141 = vmax.xlane.f32.xlu2 %v7547_v8  ;;  %4173 = vmax.xlane.f32.xlu0 %v7551_v20  ;;  %v4035_v9 = vadd.f32 %v7450_v52, %v4034_v6 }
 0x692   : > { %v7563_v16 = vsel %vm4086_vm0, %v4035_v9, -1e+30 }
 0x694   : > { %v4074_v11 = vpop.f32.mrf.mxu3 }
 0x695   : > { %v4075_v12 = vadd.f32 %v7450_v52, %v4074_v11 }
 0x697   : > { %v4036_v13 = vpop.f32.mrf.mxu2  ;;  %v7559_v15 = vsel %vm4086_vm0, %v4075_v12, -1e+30 }
 0x698   : > { %4175 = vmax.xlane.f32.xlu1 %v7559_v15  ;;  %4143 = vmax.xlane.f32.xlu0 %v7563_v16  ;;  %v4037_v17 = vadd.f32 %v7450_v52, %v4036_v13 }
 0x69a   : > { %v7575_v25 = vsel %vm4086_vm0, %v4037_v17, -1e+30 }
 0x69c   : > { %v4076_v21 = vpop.f32.mrf.mxu3 }
 0x69d   : > { %v4077_v22 = vadd.f32 %v7450_v52, %v4076_v21 }
 0x69f   : > { %v4039_v54 = vpop.f32.mrf.mxu2  ;;  %v7571_v24 = vsel %vm4086_vm0, %v4077_v22, -1e+30 }
 0x6a0   : > { %4177 = vmax.xlane.f32.xlu2 %v7571_v24  ;;  %4145 = vmax.xlane.f32.xlu1 %v7575_v25  ;;  %v4040_v26 = vadd.f32 %v7450_v52, %v4039_v54 }
 0x6a2   : > { %v7586_v33 = vsel %vm4086_vm0, %v4040_v26, -1e+30 }
 0x6a4   : > { %v4079_v27 = vpop.f32.mrf.mxu3 }
 0x6a5   : > { %v4080_v0 = vadd.f32 %v7450_v52, %v4079_v27 }
 0x6a6   : > { %v4120_v28 = vpop.xlane.xlu0 %4119 }
 0x6a7   : > { %v7582_v31 = vsub.f32 %v7456_v58, %v4120_v28  ;;  %v4041_v32 = vpop.f32.mrf.mxu2  ;;  %v7590_v34 = vsel %vm4086_vm0, %v4080_v0, -1e+30 }
 0x6a8   : > { %4147 = vmax.xlane.f32.xlu2 %v7586_v33  ;;  %4179 = vmax.xlane.f32.xlu0 %v7590_v34  ;;  %v4042_v36 = vadd.f32 %v7450_v52, %v4041_v32 }
 0x6a9   : > { %v4215_v35 = vmul.f32 1.442695, %v7582_v31 }
 0x6aa   : > { %v7606_v18 = vsel %vm4086_vm0, %v4042_v36, -1e+30 }
 0x6ab   : > { %6295 = vpow2.f32 %v4215_v35 }
 0x6ac   : > { %v4081_v58 = vpop.f32.mrf.mxu3 }
 0x6ad   : > { %v4082_v38 = vadd.f32 %v7450_v52, %v4081_v58 }
 0x6ae   : > { %v4122_v39 = vpop.xlane.xlu0 %4121 }
 0x6af   : > { %v7598_v41 = vsub.f32 %v7464_v4, %v4122_v39  ;;  %v4044_v42 = vpop.f32.mrf.mxu2  ;;  %v7602_v7 = vsel %vm4086_vm0, %v4082_v38, -1e+30 }
 0x6b0   : > { %4181 = vmax.xlane.f32.xlu1 %v7602_v7  ;;  %4149 = vmax.xlane.f32.xlu0 %v7606_v18  ;;  %v4045_v4 = vadd.f32 %v7450_v52, %v4044_v42 }
 0x6b1   : > { %v6296_v19 = vpop.eup %6295  ;;  %v4217_v45 = vmul.f32 1.442695, %v7598_v41 }
 0x6b2   : > { %4279 = vadd.xlane.f32.xlu2 %v6296_v19  ;;  %v7617_v30 = vsel %vm4086_vm0, %v4045_v4, -1e+30 }
 0x6b3   : > { %6297 = vpow2.f32 %v4217_v45 }
 0x6b6   : > { %v4124_v46 = vpop.xlane.xlu1 %4123 }
 0x6b7   : > { %v7613_v48 = vsub.f32 %v7470_v10, %v4124_v46  ;;  %v4046_v49 = vpop.f32.mrf.mxu2 }
 0x6b8   : > { %v4047_v53 = vadd.f32 %v7450_v52, %v4046_v49  ;;  %4151 = vmax.xlane.f32.xlu1 %v7617_v30 }
 0x6b9   : > { %v6298_v55 = vpop.eup %6297  ;;  %v4219_v56 = vmul.f32 1.442695, %v7613_v48 }
 0x6ba   : > { %4281 = vadd.xlane.f32.xlu0 %v6298_v55  ;;  %v7624_v57 = vsel %vm4086_vm0, %v4047_v53, -1e+30 }
 0x6bb   : > { %6299 = vpow2.f32 %v4219_v56  ;;  %4153 = vmax.xlane.f32.xlu2 %v7624_v57 }
 0x6be   : > { %v4126_v10 = vpop.xlane.xlu1 %4125 }
 0x6bf   : > { %v7628_v61 = vsub.f32 %v7478_v23, %v4126_v10  ;;  %v4049_v62 = vpop.f32.mrf.mxu2 }
 0x6c0   : > { %v4050_v63 = vadd.f32 %v7450_v52, %v4049_v62 }
 0x6c1   : > { %v6300_v37 = vpop.eup %6299  ;;  %v4221_v3 = vmul.f32 1.442695, %v7628_v61 }
 0x6c2   : > { %4283 = vadd.xlane.f32.xlu1 %v6300_v37  ;;  %v7634_v5 = vsel %vm4086_vm0, %v4050_v63, -1e+30 }
 0x6c3   : > { %6301 = vpow2.f32 %v4221_v3  ;;  %4155 = vmax.xlane.f32.xlu0 %v7634_v5 }
 0x6c6   : > { %v4128_v47 = vpop.xlane.xlu2 %4127 }
 0x6c7   : > { %v7638_v6 = vsub.f32 %v7484_v29, %v4128_v47  ;;  %v4051_v23 = vpop.f32.mrf.mxu2 }
 0x6c8   : > { %v4052_v9 = vadd.f32 %v7450_v52, %v4051_v23 }
 0x6c9   : > { %v6302_v11 = vpop.eup %6301  ;;  %v4223_v12 = vmul.f32 1.442695, %v7638_v6 }
 0x6ca   : > { %4285 = vadd.xlane.f32.xlu2 %v6302_v11  ;;  %v7644_v13 = vsel %vm4086_vm0, %v4052_v9, -1e+30 }
 0x6cb   : > { %6303 = vpow2.f32 %v4223_v12  ;;  %4157 = vmax.xlane.f32.xlu1 %v7644_v13 }
 0x6ce   : > { %v4130_v17 = vpop.xlane.xlu2 %4129 }
 0x6cf   : > { %v7648_v21 = vsub.f32 %v7492_v40, %v4130_v17  ;;  %v4054_v29 = vpop.f32.mrf.mxu2 }
 0x6d0   : > { %v4055_v22 = vadd.f32 %v7450_v52, %v4054_v29 }
 0x6d1   : > { %v6304_v54 = vpop.eup %6303  ;;  %v4225_v26 = vmul.f32 1.442695, %v7648_v21 }
 0x6d2   : > { %4287 = vadd.xlane.f32.xlu0 %v6304_v54  ;;  %v7654_v27 = vsel %vm4086_vm0, %v4055_v22, -1e+30 }
 0x6d3   : > { %6305 = vpow2.f32 %v4225_v26  ;;  %4159 = vmax.xlane.f32.xlu2 %v7654_v27 }
 0x6d6   : > { %v4132_v0 = vpop.xlane.xlu0 %4131 }
 0x6d7   : > { %v7658_v28 = vsub.f32 %v7498_v43, %v4132_v0  ;;  %v4056_v40 = vpop.f32.mrf.mxu2 }
 0x6d8   : > { %v4057_v32 = vadd.f32 %v7450_v52, %v4056_v40 }
 0x6d9   : > { %v6306_v35 = vpop.eup %6305  ;;  %v4227_v36 = vmul.f32 1.442695, %v7658_v28 }
 0x6da   : > { %4289 = vadd.xlane.f32.xlu1 %v6306_v35  ;;  %v7664_v58 = vsel %vm4086_vm0, %v4057_v32, -1e+30 }
 0x6db   : > { %6307 = vpow2.f32 %v4227_v36  ;;  %4161 = vmax.xlane.f32.xlu0 %v7664_v58 }
 0x6de   : > { %v4134_v38 = vpop.xlane.xlu1 %4133 }
 0x6df   : > { %v7668_v39 = vsub.f32 %v7504_v44, %v4134_v38  ;;  %v4059_v43 = vpop.f32.mrf.mxu2 }
 0x6e0   : > { %v4060_v42 = vadd.f32 %v7450_v52, %v4059_v43 }
 0x6e1   : > { %v6308_v19 = vpop.eup %6307  ;;  %v4229_v45 = vmul.f32 1.442695, %v7668_v39 }
 0x6e2   : > { %4291 = vadd.xlane.f32.xlu2 %v6308_v19  ;;  %v7674_v4 = vsel %vm4086_vm0, %v4060_v42, -1e+30 }
 0x6e3   : > { %6309 = vpow2.f32 %v4229_v45  ;;  %4163 = vmax.xlane.f32.xlu1 %v7674_v4 }
 0x6e6   : > { %v4136_v46 = vpop.xlane.xlu2 %4135 }
 0x6e7   : > { %v7678_v49 = vsub.f32 %v7510_v14, %v4136_v46  ;;  %v4061_v44 = vpop.f32.mrf.mxu2 }
 0x6e8   : > { %v4062_v53 = vadd.f32 %v7450_v52, %v4061_v44 }
 0x6e9   : > { %v6310_v55 = vpop.eup %6309  ;;  %v4231_v56 = vmul.f32 1.442695, %v7678_v49 }
 0x6ea   : > { %4293 = vadd.xlane.f32.xlu0 %v6310_v55  ;;  %v7684_v10 = vsel %vm4086_vm0, %v4062_v53, -1e+30 }
 0x6eb   : > { %6311 = vpow2.f32 %v4231_v56  ;;  %4165 = vmax.xlane.f32.xlu2 %v7684_v10  ;;  %v4168_v62 = vpop.xlane.xlu0 %4167 }
 0x6ec   : > { %v7688_v63 = vsub.f32 %v7516_v50, %v4168_v62 }
 0x6ee   : > { %v4263_v14 = vmul.f32 1.442695, %v7688_v63 }
 0x6f0   : > { %6313 = vpow2.f32 %v4263_v14 }
 0x6f1   : > { %v6312_v37 = vpop.eup %6311 }
 0x6f2   : > { %4295 = vadd.xlane.f32.xlu1 %v6312_v37 }
 0x6f3   : > { %v4170_v52 = vpop.xlane.xlu1 %4169  ;;  %v4138_v3 = vpop.xlane.xlu0 %4137 }
 0x6f4   : > { %v7692_v47 = vsub.f32 %v7523_v59, %v4170_v52  ;;  %v7695_v51 = vsub.f32 %v7527_v60, %v4138_v3 }
 0x6f6   : > { %v6314_v23 = vpop.eup %6313  ;;  %v4265_v9 = vmul.f32 1.442695, %v7692_v47  ;;  %v4233_v11 = vmul.f32 1.442695, %v7695_v51 }
 0x6f7   : > { %4327 = vadd.xlane.f32.xlu2 %v6314_v23 }
 0x6f8   : > { %6315 = vpow2.f32 %v4265_v9 }
 0x6f9   : > { %6317 = vpow2.f32 %v4233_v11 }
 0x6fb   : > { %v4172_v50 = vpop.xlane.xlu2 %4171  ;;  %v4140_v12 = vpop.xlane.xlu1 %4139 }
 0x6fc   : > { %v7700_v17 = vsub.f32 %v7535_v1, %v4172_v50  ;;  %v7703_v29 = vsub.f32 %v7539_v2, %v4140_v12 }
 0x6fe   : > { %v6316_v59 = vpop.eup %6315  ;;  %v4267_v60 = vmul.f32 1.442695, %v7700_v17  ;;  %v4235_v22 = vmul.f32 1.442695, %v7703_v29 }
 0x6ff   : > { %v6318_v54 = vpop.eup %6317  ;;  %4329 = vadd.xlane.f32.xlu0 %v6316_v59 }
 0x700   : > { %6319 = vpow2.f32 %v4267_v60  ;;  %4297 = vadd.xlane.f32.xlu2 %v6318_v54 }
 0x701   : > { %6321 = vpow2.f32 %v4235_v22 }
 0x703   : > { %v4142_v26 = vpop.xlane.xlu2 %4141  ;;  %v4174_v0 = vpop.xlane.xlu0 %4173 }
 0x704   : > { %v7708_v40 = vsub.f32 %v7547_v8, %v4142_v26  ;;  %v7711_v1 = vsub.f32 %v7551_v20, %v4174_v0 }
 0x706   : > { %v6320_v2 = vpop.eup %6319  ;;  %v4237_v32 = vmul.f32 1.442695, %v7708_v40  ;;  %v4269_v35 = vmul.f32 1.442695, %v7711_v1 }
 0x707   : > { %v6322_v36 = vpop.eup %6321  ;;  %4331 = vadd.xlane.f32.xlu1 %v6320_v2 }
 0x708   : > { %6323 = vpow2.f32 %v4237_v32  ;;  %4299 = vadd.xlane.f32.xlu0 %v6322_v36 }
 0x709   : > { %6325 = vpow2.f32 %v4269_v35 }
 0x70b   : > { %v4176_v38 = vpop.xlane.xlu1 %4175  ;;  %v4144_v43 = vpop.xlane.xlu0 %4143 }
 0x70c   : > { %v7716_v42 = vsub.f32 %v7559_v15, %v4176_v38  ;;  %v7719_v8 = vsub.f32 %v7563_v16, %v4144_v43 }
 0x70e   : > { %v6324_v20 = vpop.eup %6323  ;;  %v4271_v19 = vmul.f32 1.442695, %v7716_v42  ;;  %v4239_v45 = vmul.f32 1.442695, %v7719_v8 }
 0x70f   : > { %v6326_v46 = vpop.eup %6325  ;;  %4301 = vadd.xlane.f32.xlu1 %v6324_v20 }
 0x710   : > { %6327 = vpow2.f32 %v4271_v19  ;;  %4333 = vadd.xlane.f32.xlu2 %v6326_v46 }
 0x711   : > { %6329 = vpow2.f32 %v4239_v45 }
 0x713   : > { %v7723_v44 = vpop.xlane.xlu2 %4177  ;;  %v4146_v53 = vpop.xlane.xlu1 %4145 }
 0x714   : > { %v7726_v55 = vsub.f32 %v7575_v25, %v4146_v53 }
 0x716   : > { %v6328_v15 = vpop.eup %6327  ;;  %v4241_v16 = vmul.f32 1.442695, %v7726_v55 }
 0x717   : > { %v6330_v56 = vpop.eup %6329  ;;  %4335 = vadd.xlane.f32.xlu0 %v6328_v15 }
 0x718   : > { %4303 = vadd.xlane.f32.xlu2 %v6330_v56  ;;  %6331 = vpow2.f32 %v4241_v16 }
 0x71b   : > { %v4148_v62 = vpop.xlane.xlu2 %4147  ;;  %v7729_v14 = vpop.xlane.xlu0 %4179 }
 0x71c   : > { %v7732_v37 = vsub.f32 %v7586_v33, %v4148_v62 }
 0x71e   : > { %v4243_v52 = vmul.f32 1.442695, %v7732_v37  ;;  %v6332_v3 = vpop.eup %6331 }
 0x71f   : > { %4305 = vadd.xlane.f32.xlu0 %v6332_v3 }
 0x720   : > { %6333 = vpow2.f32 %v4243_v52 }
 0x723   : > { %v7735_v25 = vpop.xlane.xlu1 %4181  ;;  %v4150_v23 = vpop.xlane.xlu0 %4149 }
 0x724   : > { %v7738_v9 = vsub.f32 %v7606_v18, %v4150_v23 }
 0x725   : > { %v4280_v11 = vpop.xlane.xlu2 %4279 }
 0x726   : > { %v6334_v50 = vpop.eup %6333  ;;  %v4245_v12 = vmul.f32 1.442695, %v7738_v9  ;;  %6335 = vlog2.f32 %v4280_v11 }
 0x727   : > { %4307 = vadd.xlane.f32.xlu1 %v6334_v50 }
 0x728   : > { %6337 = vpow2.f32 %v4245_v12 }
 0x72b   : > { %v4152_v33 = vpop.xlane.xlu1 %4151 }
 0x72c   : > { %v6336_v59 = vpop.eup %6335  ;;  %v7742_v60 = vsub.f32 %v7617_v30, %v4152_v33 }
 0x72d   : > { %v4344_v22 = vmul.f32 0.6931472, %v6336_v59  ;;  %v4282_v54 = vpop.xlane.xlu0 %4281 }
 0x72e   : > { %v4247_v26 = vmul.f32 1.442695, %v7742_v60  ;;  %6339 = vlog2.f32 %v4282_v54  ;;  %v4154_v18 = vpop.xlane.xlu2 %4153  ;;  %v6338_v0 = vpop.eup %6337 }
 0x72f   : > { %v4407_v2 = vsub.f32 %v7582_v31, %v4344_v22  ;;  %v7747_v32 = vsub.f32 %v7624_v57, %v4154_v18  ;;  %4309 = vadd.xlane.f32.xlu2 %v6338_v0  ;;  %v7777_v0 = vsub.f32 %v7590_v34, %v7729_v14  ;;  %v7788_v14 = vsub.f32 %v7602_v7, %v7735_v25 }
 0x730   : > { %6341 = vpow2.f32 %v4247_v26  ;;  %v7799_v25 = vsub.f32 %v7571_v24, %v7723_v44 }
 0x731   : > { %4439 = vst [vmem:[%s7019_s8] sm:$0xff] %v4407_v2  ;;  %v4249_v35 = vmul.f32 1.442695, %v7747_v32 }
 0x733   : > { %6343 = vpow2.f32 %v4249_v35 }
 0x734   : > { %v6340_v30 = vpop.eup %6339 }
 0x735   : > { %v4346_v36 = vmul.f32 0.6931472, %v6340_v30  ;;  %v4284_v38 = vpop.xlane.xlu1 %4283 }
 0x736   : > { %v6342_v43 = vpop.eup %6341  ;;  %6345 = vlog2.f32 %v4284_v38  ;;  %v4156_v20 = vpop.xlane.xlu0 %4155 }
 0x737   : > { %v4408_v19 = vsub.f32 %v7598_v41, %v4346_v36  ;;  %v7753_v31 = vsub.f32 %v7634_v5, %v4156_v20  ;;  %4311 = vadd.xlane.f32.xlu0 %v6342_v43  ;;  %v4275_v36 = vmul.f32 1.442695, %v7777_v0 }
 0x739   : > { %v6344_v57 = vpop.eup %6343  ;;  %4440 = vst [vmem:[%s7019_s8 + $0x8] sm:$0xff] %v4408_v19  ;;  %v4251_v45 = vmul.f32 1.442695, %v7753_v31 }
 0x73a   : > { %4313 = vadd.xlane.f32.xlu1 %v6344_v57 }
 0x73b   : > { %6347 = vpow2.f32 %v4251_v45 }
 0x73c   : > { %v6346_v46 = vpop.eup %6345 }
 0x73d   : > { %v4348_v53 = vmul.f32 0.6931472, %v6346_v46  ;;  %v4286_v15 = vpop.xlane.xlu2 %4285 }
 0x73e   : > { %6349 = vlog2.f32 %v4286_v15  ;;  %v4158_v16 = vpop.xlane.xlu1 %4157 }
 0x73f   : > { %v4409_v56 = vsub.f32 %v7613_v48, %v4348_v53  ;;  %v7759_v41 = vsub.f32 %v7644_v13, %v4158_v16 }
 0x741   : > { %v6348_v5 = vpop.eup %6347  ;;  %4441 = vst [vmem:[%s7019_s8 + $0x10] sm:$0xff] %v4409_v56  ;;  %v4253_v62 = vmul.f32 1.442695, %v7759_v41 }
 0x742   : > { %4315 = vadd.xlane.f32.xlu2 %v6348_v5 }
 0x743   : > { %6351 = vpow2.f32 %v4253_v62 }
 0x744   : > { %v6350_v52 = vpop.eup %6349 }
 0x745   : > { %v4350_v3 = vmul.f32 0.6931472, %v6350_v52  ;;  %v4288_v23 = vpop.xlane.xlu0 %4287 }
 0x746   : > { %6353 = vlog2.f32 %v4288_v23  ;;  %v4160_v11 = vpop.xlane.xlu2 %4159 }
 0x747   : > { %v4410_v50 = vsub.f32 %v7628_v61, %v4350_v3  ;;  %v7765_v12 = vsub.f32 %v7654_v27, %v4160_v11 }
 0x749   : > { %v6352_v48 = vpop.eup %6351  ;;  %4442 = vst [vmem:[%s7019_s8 + $0x18] sm:$0xff] %v4410_v50  ;;  %v4255_v13 = vmul.f32 1.442695, %v7765_v12 }
 0x74a   : > { %4317 = vadd.xlane.f32.xlu0 %v6352_v48 }
 0x74b   : > { %6355 = vpow2.f32 %v4255_v13 }
 0x74c   : > { %v6354_v33 = vpop.eup %6353 }
 0x74d   : > { %v4352_v59 = vmul.f32 0.6931472, %v6354_v33  ;;  %v4290_v22 = vpop.xlane.xlu1 %4289 }
 0x74e   : > { %6357 = vlog2.f32 %v4290_v22  ;;  %v4162_v54 = vpop.xlane.xlu0 %4161 }
 0x74f   : > { %v4411_v26 = vsub.f32 %v7638_v6, %v4352_v59  ;;  %v7771_v18 = vsub.f32 %v7664_v58, %v4162_v54 }
 0x751   : > { %v6356_v61 = vpop.eup %6355  ;;  %4443 = vst [vmem:[%s7019_s8 + $0x20] sm:$0xff] %v4411_v26  ;;  %v4257_v27 = vmul.f32 1.442695, %v7771_v18 }
 0x752   : > { %4319 = vadd.xlane.f32.xlu1 %v6356_v61 }
 0x753   : > { %6359 = vpow2.f32 %v4257_v27 }
 0x754   : > { %v6358_v2 = vpop.eup %6357 }
 0x755   : > { %v4354_v35 = vmul.f32 0.6931472, %v6358_v2  ;;  %v4292_v30 = vpop.xlane.xlu2 %4291 }
 0x756   : > { %6361 = vlog2.f32 %v4292_v30  ;;  %v4164_v6 = vpop.xlane.xlu1 %4163 }
 0x757   : > { %v4412_v58 = vsub.f32 %v7648_v21, %v4354_v35  ;;  %v7782_v38 = vsub.f32 %v7674_v4, %v4164_v6  ;;  %6363 = vpow2.f32 %v4275_v36  ;;  %v4277_v21 = vmul.f32 1.442695, %v7788_v14 }
 0x759   : > { %v6360_v43 = vpop.eup %6359  ;;  %4444 = vst [vmem:[%s7019_s8 + $0x28] sm:$0xff] %v4412_v58  ;;  %v4259_v34 = vmul.f32 1.442695, %v7782_v38 }
 0x75a   : > { %4321 = vadd.xlane.f32.xlu2 %v6360_v43 }
 0x75b   : > { %6365 = vpow2.f32 %v4259_v34 }
 0x75c   : > { %v6362_v20 = vpop.eup %6361 }
 0x75d   : > { %v4356_v19 = vmul.f32 0.6931472, %v6362_v20  ;;  %v4294_v57 = vpop.xlane.xlu0 %4293  ;;  %v6364_v53 = vpop.eup %6363 }
 0x75e   : > { %6367 = vlog2.f32 %v4294_v57  ;;  %v4166_v4 = vpop.xlane.xlu2 %4165 }
 0x75f   : > { %v4413_v45 = vsub.f32 %v7658_v28, %v4356_v19  ;;  %v7793_v46 = vsub.f32 %v7684_v10, %v4166_v4  ;;  %6369 = vpow2.f32 %v4277_v21  ;;  %v4273_v10 = vmul.f32 1.442695, %v7799_v25 }
 0x761   : > { %v6366_v15 = vpop.eup %6365  ;;  %4445 = vst [vmem:[%s7019_s8 + $0x30] sm:$0xff] %v4413_v45  ;;  %v4261_v7 = vmul.f32 1.442695, %v7793_v46 }
 0x762   : > { %4323 = vadd.xlane.f32.xlu0 %v6366_v15  ;;  %4339 = vadd.xlane.f32.xlu2 %v6364_v53 }
 0x763   : > { %6371 = vpow2.f32 %v4261_v7 }
 0x764   : > { %v6368_v16 = vpop.eup %6367 }
 0x765   : > { %v4358_v56 = vmul.f32 0.6931472, %v6368_v16  ;;  %v4296_v28 = vpop.xlane.xlu1 %4295  ;;  %v6370_v62 = vpop.eup %6369 }
 0x766   : > { %6373 = vlog2.f32 %v4296_v28 }
 0x767   : > { %v4414_v5 = vsub.f32 %v7668_v39, %v4358_v56  ;;  %6375 = vpow2.f32 %v4273_v10 }
 0x769   : > { %v6372_v52 = vpop.eup %6371  ;;  %4446 = vst [vmem:[%s7019_s8 + $0x38] sm:$0xff] %v4414_v5 }
 0x76a   : > { %4341 = vadd.xlane.f32.xlu0 %v6370_v62  ;;  %4325 = vadd.xlane.f32.xlu1 %v6372_v52  ;;  %v4328_v24 = vpop.xlane.xlu2 %4327 }
 0x76b   : > { %6377 = vlog2.f32 %v4328_v24 }
 0x76c   : > { %v6374_v44 = vpop.eup %6373 }
 0x76d   : > { %v4360_v3 = vmul.f32 0.6931472, %v6374_v44  ;;  %v6376_v11 = vpop.eup %6375 }
 0x76f   : > { %v4415_v23 = vsub.f32 %v7678_v49, %v4360_v3 }
 0x771   : > { %v6378_v50 = vpop.eup %6377  ;;  %4447 = vst [vmem:[%s7019_s8 + $0x40] sm:$0xff] %v4415_v23 }
 0x772   : > { %v4392_v48 = vmul.f32 0.6931472, %v6378_v50  ;;  %4337 = vadd.xlane.f32.xlu1 %v6376_v11  ;;  %v4330_v13 = vpop.xlane.xlu0 %4329 }
 0x773   : > { %v4298_v39 = vpop.xlane.xlu2 %4297  ;;  %6379 = vlog2.f32 %v4330_v13 }
 0x774   : > { %v4431_v33 = vsub.f32 %v7688_v63, %v4392_v48  ;;  %6381 = vlog2.f32 %v4298_v39 }
 0x776   : > { %4463 = vst [vmem:[%s7019_s8 + $0xc0] sm:$0xff] %v4431_v33 }
 0x779   : > { %v6380_v59 = vpop.eup %6379 }
 0x77a   : > { %v6382_v22 = vpop.eup %6381  ;;  %v4394_v54 = vmul.f32 0.6931472, %v6380_v59  ;;  %v4332_v26 = vpop.xlane.xlu1 %4331 }
 0x77b   : > { %v4362_v61 = vmul.f32 0.6931472, %v6382_v22  ;;  %6383 = vlog2.f32 %v4332_v26  ;;  %v4300_v49 = vpop.xlane.xlu0 %4299 }
 0x77c   : > { %v4432_v27 = vsub.f32 %v7692_v47, %v4394_v54  ;;  %6385 = vlog2.f32 %v4300_v49 }
 0x77d   : > { %v4416_v2 = vsub.f32 %v7695_v51, %v4362_v61 }
 0x77e   : > { %4464 = vst [vmem:[%s7019_s8 + $0xc8] sm:$0xff] %v4432_v27 }
 0x77f   : > { %4448 = vst [vmem:[%s7019_s8 + $0x48] sm:$0xff] %v4416_v2 }
 0x781   : > { %v6384_v35 = vpop.eup %6383 }
 0x782   : > { %v6386_v63 = vpop.eup %6385  ;;  %v4396_v30 = vmul.f32 0.6931472, %v6384_v35  ;;  %v4302_v36 = vpop.xlane.xlu1 %4301 }
 0x783   : > { %v4364_v6 = vmul.f32 0.6931472, %v6386_v63  ;;  %6387 = vlog2.f32 %v4302_v36  ;;  %v4334_v58 = vpop.xlane.xlu2 %4333 }
 0x784   : > { %v4433_v43 = vsub.f32 %v7700_v17, %v4396_v30  ;;  %6389 = vlog2.f32 %v4334_v58 }
 0x785   : > { %v4417_v47 = vsub.f32 %v7703_v29, %v4364_v6 }
 0x786   : > { %4465 = vst [vmem:[%s7019_s8 + $0xd0] sm:$0xff] %v4433_v43 }
 0x787   : > { %4449 = vst [vmem:[%s7019_s8 + $0x50] sm:$0xff] %v4417_v47 }
 0x789   : > { %v6388_v34 = vpop.eup %6387 }
 0x78a   : > { %v6390_v51 = vpop.eup %6389  ;;  %v4366_v20 = vmul.f32 0.6931472, %v6388_v34  ;;  %v4336_v19 = vpop.xlane.xlu0 %4335 }
 0x78b   : > { %v4398_v57 = vmul.f32 0.6931472, %v6390_v51  ;;  %v4304_v21 = vpop.xlane.xlu2 %4303  ;;  %6391 = vlog2.f32 %v4336_v19 }
 0x78c   : > { %v4418_v4 = vsub.f32 %v7708_v40, %v4366_v20  ;;  %6393 = vlog2.f32 %v4304_v21 }
 0x78d   : > { %v4434_v17 = vsub.f32 %v7711_v1, %v4398_v57 }
 0x78e   : > { %4450 = vst [vmem:[%s7019_s8 + $0x58] sm:$0xff] %v4418_v4 }
 0x78f   : > { %4466 = vst [vmem:[%s7019_s8 + $0xd8] sm:$0xff] %v4434_v17 }
 0x791   : > { %v6392_v29 = vpop.eup %6391 }
 0x792   : > { %v6394_v45 = vpop.eup %6393  ;;  %v4400_v53 = vmul.f32 0.6931472, %v6392_v29  ;;  %v4306_v7 = vpop.xlane.xlu0 %4305 }
 0x793   : > { %v4368_v15 = vmul.f32 0.6931472, %v6394_v45  ;;  %6395 = vlog2.f32 %v4306_v7 }
 0x794   : > { %v4435_v16 = vsub.f32 %v7716_v42, %v4400_v53 }
 0x795   : > { %v4419_v56 = vsub.f32 %v7719_v8, %v4368_v15 }
 0x796   : > { %4467 = vst [vmem:[%s7019_s8 + $0xe0] sm:$0xff] %v4435_v16 }
 0x797   : > { %4451 = vst [vmem:[%s7019_s8 + $0x60] sm:$0xff] %v4419_v56 }
 0x799   : > { %v6396_v40 = vpop.eup %6395 }
 0x79a   : > { %v4308_v28 = vpop.xlane.xlu1 %4307  ;;  %v4370_v10 = vmul.f32 0.6931472, %v6396_v40 }
 0x79b   : > { %6397 = vlog2.f32 %v4308_v28 }
 0x79c   : > { %v4420_v1 = vsub.f32 %v7726_v55, %v4370_v10 }
 0x79e   : > { %4452 = vst [vmem:[%s7019_s8 + $0x68] sm:$0xff] %v4420_v1 }
 0x7a1   : > { %v6398_v5 = vpop.eup %6397 }
 0x7a2   : > { %v4372_v62 = vmul.f32 0.6931472, %v6398_v5  ;;  %v4310_v52 = vpop.xlane.xlu2 %4309 }
 0x7a3   : > { %6399 = vlog2.f32 %v4310_v52 }
 0x7a4   : > { %v4421_v24 = vsub.f32 %v7732_v37, %v4372_v62 }
 0x7a6   : > { %4453 = vst [vmem:[%s7019_s8 + $0x70] sm:$0xff] %v4421_v24 }
 0x7a9   : > { %v6400_v42 = vpop.eup %6399 }
 0x7aa   : > { %v4312_v8 = vpop.xlane.xlu0 %4311  ;;  %v4374_v44 = vmul.f32 0.6931472, %v6400_v42 }
 0x7ab   : > { %6401 = vlog2.f32 %v4312_v8 }
 0x7ac   : > { %v4422_v3 = vsub.f32 %v7738_v9, %v4374_v44 }
 0x7ad   : > { %v4314_v23 = vpop.xlane.xlu1 %4313 }
 0x7ae   : > { %6403 = vlog2.f32 %v4314_v23  ;;  %4454 = vst [vmem:[%s7019_s8 + $0x78] sm:$0xff] %v4422_v3 }
 0x7b1   : > { %v6402_v55 = vpop.eup %6401 }
 0x7b2   : > { %v4376_v11 = vmul.f32 0.6931472, %v6402_v55 }
 0x7b4   : > { %v6404_v50 = vpop.eup %6403  ;;  %v4423_v48 = vsub.f32 %v7742_v60, %v4376_v11 }
 0x7b5   : > { %v4378_v37 = vmul.f32 0.6931472, %v6404_v50  ;;  %v4316_v13 = vpop.xlane.xlu2 %4315 }
 0x7b6   : > { %4455 = vst [vmem:[%s7019_s8 + $0x80] sm:$0xff] %v4423_v48  ;;  %6405 = vlog2.f32 %v4316_v13 }
 0x7b7   : > { %v4424_v39 = vsub.f32 %v7747_v32, %v4378_v37 }
 0x7b9   : > { %4456 = vst [vmem:[%s7019_s8 + $0x88] sm:$0xff] %v4424_v39 }
 0x7bc   : > { %v6406_v33 = vpop.eup %6405 }
 0x7bd   : > { %v4380_v59 = vmul.f32 0.6931472, %v6406_v33  ;;  %v4318_v9 = vpop.xlane.xlu0 %4317 }
 0x7be   : > { %6407 = vlog2.f32 %v4318_v9 }
 0x7bf   : > { %v4425_v22 = vsub.f32 %v7753_v31, %v4380_v59 }
 0x7c1   : > { %4457 = vst [vmem:[%s7019_s8 + $0x90] sm:$0xff] %v4425_v22 }
 0x7c4   : > { %v6408_v54 = vpop.eup %6407 }
 0x7c5   : > { %v4382_v26 = vmul.f32 0.6931472, %v6408_v54  ;;  %v4320_v61 = vpop.xlane.xlu1 %4319 }
 0x7c6   : > { %6409 = vlog2.f32 %v4320_v61 }
 0x7c7   : > { %v4426_v60 = vsub.f32 %v7759_v41, %v4382_v26 }
 0x7c9   : > { %4458 = vst [vmem:[%s7019_s8 + $0x98] sm:$0xff] %v4426_v60 }
 0x7cc   : > { %v6410_v49 = vpop.eup %6409 }
 0x7cd   : > { %v4384_v27 = vmul.f32 0.6931472, %v6410_v49  ;;  %v4322_v32 = vpop.xlane.xlu2 %4321 }
 0x7ce   : > { %6411 = vlog2.f32 %v4322_v32 }
 0x7cf   : > { %v4427_v2 = vsub.f32 %v7765_v12, %v4384_v27 }
 0x7d1   : > { %4459 = vst [vmem:[%s7019_s8 + $0xa0] sm:$0xff] %v4427_v2 }
 0x7d4   : > { %v6412_v35 = vpop.eup %6411 }
 0x7d5   : > { %v4386_v63 = vmul.f32 0.6931472, %v6412_v35  ;;  %v4340_v30 = vpop.xlane.xlu2 %4339  ;;  %v4324_v31 = vpop.xlane.xlu0 %4323 }
 0x7d6   : > { %6413 = vlog2.f32 %v4340_v30 }
 0x7d7   : > { %v4428_v36 = vsub.f32 %v7771_v18, %v4386_v63  ;;  %6415 = vlog2.f32 %v4324_v31 }
 0x7d9   : > { %4460 = vst [vmem:[%s7019_s8 + $0xa8] sm:$0xff] %v4428_v36 }
 0x7dc   : > { %v6414_v41 = vpop.eup %6413 }
 0x7dd   : > { %v6416_v6 = vpop.eup %6415  ;;  %v4404_v58 = vmul.f32 0.6931472, %v6414_v41  ;;  %v4326_v43 = vpop.xlane.xlu1 %4325 }
 0x7de   : > { %v4342_v47 = vpop.xlane.xlu0 %4341  ;;  %v4388_v34 = vmul.f32 0.6931472, %v6416_v6  ;;  %6417 = vlog2.f32 %v4326_v43 }
 0x7df   : > { %v4437_v12 = vsub.f32 %v7777_v0, %v4404_v58  ;;  %6419 = vlog2.f32 %v4342_v47 }
 0x7e0   : > { %v4429_v51 = vsub.f32 %v7782_v38, %v4388_v34 }
 0x7e1   : > { %4469 = vst [vmem:[%s7019_s8 + $0xf0] sm:$0xff] %v4437_v12 }
 0x7e2   : > { %4461 = vst [vmem:[%s7019_s8 + $0xb0] sm:$0xff] %v4429_v51 }
 0x7e4   : > { %v6418_v18 = vpop.eup %6417 }
 0x7e5   : > { %v6420_v20 = vpop.eup %6419  ;;  %v4390_v19 = vmul.f32 0.6931472, %v6418_v18  ;;  %v4338_v57 = vpop.xlane.xlu1 %4337 }
 0x7e6   : > { %v4406_v21 = vmul.f32 0.6931472, %v6420_v20  ;;  %6421 = vlog2.f32 %v4338_v57 }
 0x7e7   : > { %v4430_v4 = vsub.f32 %v7793_v46, %v4390_v19 }
 0x7e8   : > { %v4438_v17 = vsub.f32 %v7788_v14, %v4406_v21 }
 0x7e9   : > { %4462 = vst [vmem:[%s7019_s8 + $0xb8] sm:$0xff] %v4430_v4 }
 0x7ea   : > { %4470 = vst [vmem:[%s7019_s8 + $0xf8] sm:$0xff] %v4438_v17 }
 0x7ec   : > { %v6422_v29 = vpop.eup %6421 }
 0x7ed   : > { %v4402_v0 = vmul.f32 0.6931472, %v6422_v29 }
 0x7ef   : > { %v4436_v45 = vsub.f32 %v7799_v25, %v4402_v0 }
 0x7f1   : > { %4468 = vst [vmem:[%s7019_s8 + $0xe8] sm:$0xff] %v4436_v45 }
 0x7f2 PF: > { %s4479_s28 = smul.u32 %s6747_s19, %s6751_s20  ;;  %s4485_s30 = sshll.u32 %s7019_s8, 4  ;;  %s4486_s30 = int_to_ptr.vmem [resolvable:$true] %s4485_s30 }
 0x7f3   : > { %s7955_s25 = sld [smem:[#allocation41_spill]]  ;;  %s4472_s29 = scalar_lea.sflag [#allocation7], %s460_s3 }
 0x7f4   : > { %s5995_s2 = sshll.u32 %s4479_s28, 8 }
 0x7f9   : > { %s4484_s5 = scalar_lea.hbm %s7955_s25, %s5995_s2  ;;  %s6647_s20 = scalar_lea.hbm %s7955_s25, 512 }
 0x7fa   : > { %s4487_s6 = sshll.u32 %s4484_s5, 4  ;;  %s4488_s6 = int_to_ptr.hbm [resolvable:$true] %s4487_s6 }
 0x7fb   : > { %s6641_s24 = sshra.s32 %s4488_s6, 4  ;;  %s6642_s24 = int_to_ptr.hbm [resolvable:$true] %s6641_s24 }
 0x7fc   : > { %s6643_s13 = scalar_lea.hbm %s6642_s24, 256  ;;  %p6648_p10 = scmp.lt.s32.totalorder %s6642_s24, %s7955_s25 }
 0x7fd   : > { %p6644_p4 = scmp.ne.s32.totalorder %s6642_s24, %s6643_s13  ;;  %p6649_p11 = scmp.lt.s32.totalorder %s6647_s20, %s6643_s13 }
 0x7ff   : > { %p6645_p5 = pnand %p6644_p4, %p6899_p6  ;;  %p6650_p12 = por %p6649_p11, %p6648_p10 }
 0x801   : > { %p6646_p7 = pneg %p6645_p5 }
 0x803   : > { %p6651_p9 = pnand %p6650_p12, %p6646_p7 }
 0x805   : > { %6654 = shalt.err (!%p6651_p9)
}
 0x806   : > { %s6776_s3 = smov 128   ;;  %s6777_s27 = smov 8  }
 0x807   : > { %6153 = dma.vmem_to_hbm [thread:$0]  (%p6899_p6), %s4486_s30, 4096, %s4488_s6, %s4472_s29, %s6776_s3, %s6776_s3, %s6777_s27  }
 0x808 PF: > { %s7956_s16 = sld [smem:[#allocation28_spill]]  ;;  %p6190_p13 = scmp.ge.s32.totalorder %s6763_s23, 2 }
 0x80a   : > { %p6176_p1 = pnand %p6190_p13, %p6904_p8 }
 0x80c   : > { %p6177_p0 = pneg %p6176_p1 }
 0x80e   : > { %s4502_s2 = sand.u32 1, %s7956_s16  }
 0x80f   : > { %s4503_s7 = scalar_lea.sflag [#allocation7], %s4502_s2 }
 0x810   : > { %6718 = dma.done.wait (%p6177_p0), %s4503_s7, 4096  }
 0x811   : > { %6720 = vsyncadd (%p6177_p0), %s4503_s7, 4294963200  ;;  %s29_s23 = sadd.s32 1, %s6763_s23   ;;  %s7958_s10 = sld [smem:[#allocation31_spill]] }
 0x812   : > { %p26_p2 = scmp.ge.s32.totalorder %s29_s23, 6   ;;  %s7959_s13 = smov %s6727_s14 }
 0x813   : > { %s7960_s14 = smov %s6731_s15  ;;  %s7961_s15 = smov %s6982_s1 }
 0x814   : > { %s7962_s16 = smov %s6739_s17  ;;  %s7963_s17 = smov %s6743_s18 }
 0x815   : > { %s7964_s18 = smov %s6967_s11  ;;  %s7965_s19 = smov %s6755_s21 }
 0x816   : > { %s7966_s20 = smov %s6759_s22  ;;  %s7967_s21 = smov %s7970_s9 }
 0x817   : > { %s7968_s22 = smov %s7958_s10  ;;  %28 = sbr.rel (!%p26_p2) target bundleno = 23 (0x17), region = 155 }
 0x81c   :  { %4509 = vsyncpa [#allocation6], 1 }
 0x81d   :  { %4511 = vsyncpa [#allocation6 + $0x1], 1 }
 0x81e   :  { %4512 = vsyncpa [#allocation9], 1 }
 0x81f   :  { %4513 = vsyncpa [#allocation12], 1 }
 0x820   :  { %4514 = vsyncpa [#allocation15], 1 }
 0x821   :  { %4515 = vsyncpa [#allocation7], 1 }
 0x822   :  { %4517 = vsyncpa [#allocation7 + $0x1], 1 }

</bundles_post_ra>
